<compile_context>
chip_gen: v5e
topology: v5e:2x2
jax: 0.10.0
libtpu: 0.0.40
codegen_flags: <defaults>
</compile_context>

<pallas_src>
import jax
import jax.numpy as jnp
from jax.experimental import pallas as pl
from jax.experimental.pallas import tpu as pltpu

NUM_LAYERS = 3


def _lstm_kernel(xp_ref, whh_ref, wih_ref, br_ref, out_ref, h_scr, c_scr):
    """Runs one (batch block, time chunk) tile of the stacked-LSTM recurrence.

    xp_ref : (Tc, Bblk, 4*SE)    layer-0 pre-activations chunk
                                 (x_t @ W_ih[0] + b[0]), time-major,
                                 gate order (i, f, o, g), matmul dtype
    whh_ref: (L, SE, 4*SE)       recurrent weights, all layers (matmul dtype)
    wih_ref: (L-1, SE, 4*SE)     input weights, layers 1..L-1 (matmul dtype)
    br_ref : (L-1, 1, 4*SE)      combined bias (b_ih+b_hh), layers 1..L-1 (f32)
    out_ref: (Bblk, SE)          top-layer h at the last time step
    h_scr  : (L, Bblk, SE) f32   hidden state carried across time chunks
    c_scr  : (L, Bblk, SE) f32   cell state carried across time chunks
    """
    t_chunk = xp_ref.shape[0]
    nb, se = out_ref.shape
    num_layers = whh_ref.shape[0]
    mm_dtype = whh_ref.dtype
    t_idx = pl.program_id(1)

    @pl.when(t_idx == 0)
    def _():
        h_scr[...] = jnp.zeros_like(h_scr)
        c_scr[...] = jnp.zeros_like(c_scr)

    def gate_update(gates, c_prev):
        # Gate order (i, f, o, g): one full-width sigmoid slab + one tanh slab
        # (2 EUP regions per layer/step instead of 4 sub-vreg ones).
        ifo = jax.nn.sigmoid(gates[:, : 3 * se])
        g_g = jnp.tanh(gates[:, 3 * se:])
        i_g = ifo[:, 0 * se:1 * se]
        f_g = ifo[:, 1 * se:2 * se]
        o_g = ifo[:, 2 * se:3 * se]
        c_new = f_g * c_prev + i_g * g_g
        h_new = o_g * jnp.tanh(c_new)
        return h_new, c_new

    def step(t, carry):
        h, c = carry
        # Layer 0: input GEMM was hoisted out of the recurrence; only the
        # recurrent matmul sits on the serial critical path.  Weights are
        # read from the VMEM ref here (no loop-invariant vreg hoist).
        g0 = (xp_ref[t].astype(jnp.float32)
              + jnp.dot(h[0].astype(mm_dtype), whh_ref[0],
                        preferred_element_type=jnp.float32))
        h0, c0 = gate_update(g0, c[0])
        new_h, new_c = [h0], [c0]
        layer_in = h0
        # Layers 1..L-1: two independent dots (no lane-axis concat); the
        # second dot's latency hides under the first.
        for l in range(1, num_layers):
            g = (jnp.dot(layer_in.astype(mm_dtype), wih_ref[l - 1],
                         preferred_element_type=jnp.float32)
                 + jnp.dot(h[l].astype(mm_dtype), whh_ref[l],
                           preferred_element_type=jnp.float32)
                 + br_ref[l - 1])
            hl, cl = gate_update(g, c[l])
            new_h.append(hl)
            new_c.append(cl)
            layer_in = hl
        return tuple(new_h), tuple(new_c)

    h_init = tuple(h_scr[l] for l in range(num_layers))
    c_init = tuple(c_scr[l] for l in range(num_layers))
    h_fin, c_fin = jax.lax.fori_loop(0, t_chunk, step, (h_init, c_init),
                                     unroll=min(t_chunk, 8))

    # Persist state for the next time chunk of this batch block.
    for l in range(num_layers):
        h_scr[l] = h_fin[l]
        c_scr[l] = c_fin[l]

    @pl.when(t_idx == pl.num_programs(1) - 1)
    def _():
        out_ref[...] = h_fin[num_layers - 1].astype(out_ref.dtype)


def lstm_history_embedder(service_history, w_ih, w_hh, bias, *,
                          matmul_dtype=jnp.float32):
    """service_history: [B, N, SE] -> [B, SE] (top-layer h at last step).

    Weights are pre-transposed to "x @ W" form with PyTorch gate order
    (i, f, g, o):
        w_ih: [L, SE, 4*SE], w_hh: [L, SE, 4*SE], bias: [L, 1, 4*SE]
    (bias = b_ih + b_hh).  Gate columns are permuted internally to
    (i, f, o, g); `matmul_dtype=jnp.bfloat16` enables bf16 matmul operands
    (f32 accumulation + f32 gate/cell math) for v6e/v7x.
    """
    B, N, SE = service_history.shape
    L = w_ih.shape[0]
    assert L >= 2

    # --- Gate-column permutation (i,f,g,o) -> (i,f,o,g), applied consistently
    # to w_ih, w_hh, bias (and hence to the hoisted xp projection below).
    def permute_gates(w):
        w = w.astype(jnp.float32)
        return jnp.concatenate(
            [w[..., 0 * SE:1 * SE],     # i
             w[..., 1 * SE:2 * SE],     # f
             w[..., 3 * SE:4 * SE],     # o
             w[..., 2 * SE:3 * SE]],    # g
            axis=-1)

    w_ih_p = permute_gates(w_ih)
    w_hh_p = permute_gates(w_hh)
    bias_p = permute_gates(bias)

    # --- Hoisted layer-0 input projection: one batched GEMM over all B*N
    # rows (no recurrent dependency), time-major output.
    x_tm = jnp.swapaxes(service_history, 0, 1).astype(jnp.float32)   # (N, B, SE)
    xp = jnp.einsum("nbs,sg->nbg", x_tm, w_ih_p[0],
                    preferred_element_type=jnp.float32) + bias_p[0]  # (N, B, 4SE)

    # --- Matmul operands in matmul_dtype (bf16 halves VMEM/DMA + MXU passes).
    xp = xp.astype(matmul_dtype)
    w_hh_mm = w_hh_p.astype(matmul_dtype)           # (L,   SE, 4*SE)
    w_ih_rest = w_ih_p[1:].astype(matmul_dtype)     # (L-1, SE, 4*SE)
    b_rest = bias_p[1:]                             # (L-1, 1, 4*SE) f32

    # --- Batch-block size: fill the MXU M dimension (cap 128), preferring
    # multiple-of-8 divisors of B.
    cap = 128
    if B <= cap:
        b_blk = B
    else:
        divs = [d for d in range(cap, 0, -1) if B % d == 0]
        m8 = [d for d in divs if d % 8 == 0]
        b_blk = (m8 or divs)[0]
    # If the parallel batch axis would have a single block, split it so both
    # v7x TensorCores get work (only when each half still fills >=8 sublanes).
    if B == b_blk and b_blk % 16 == 0:
        b_blk //= 2

    # --- Time-chunk size: bound the per-chunk xp footprint so double-buffered
    # DMA overlaps the recurrence (and fits v7x's 64 MiB VMEM at large SE/N).
    itemsize = jnp.dtype(matmul_dtype).itemsize
    step_bytes = b_blk * 4 * SE * itemsize            # one time step of xp
    chunk_budget = 4 << 20                            # per xp buffer
    t_max = max(1, chunk_budget // step_bytes)
    t_chunk = max(d for d in range(1, N + 1) if N % d == 0 and d <= t_max)

    # --- VMEM budget: double-buffered xp chunk + resident weights + state.
    f32b = 4
    weight_bytes = (L + (L - 1)) * SE * 4 * SE * itemsize + (L - 1) * 4 * SE * f32b
    state_bytes = 2 * L * b_blk * SE * f32b
    xp_bytes = 2 * t_chunk * step_bytes
    out_bytes = 2 * b_blk * SE * f32b
    needed = xp_bytes + weight_bytes + state_bytes + out_bytes
    vmem_limit = int(min(100 << 20, max(32 << 20, 2 * needed + (4 << 20))))

    grid = (B // b_blk, N // t_chunk)

    return pl.pallas_call(
        _lstm_kernel,
        out_shape=jax.ShapeDtypeStruct((B, SE), jnp.float32),
        grid=grid,
        in_specs=[
            # xp: tiled over (time chunk, batch block).
            pl.BlockSpec((t_chunk, b_blk, 4 * SE), lambda b, t: (t, b, 0)),
            # Weights/biases: constant index_map -> fetched once, stay resident.
            pl.BlockSpec((L, SE, 4 * SE), lambda b, t: (0, 0, 0)),
            pl.BlockSpec((L - 1, SE, 4 * SE), lambda b, t: (0, 0, 0)),
            pl.BlockSpec((L - 1, 1, 4 * SE), lambda b, t: (0, 0, 0)),
        ],
        out_specs=pl.BlockSpec((b_blk, SE), lambda b, t: (b, 0)),
        scratch_shapes=[
            pltpu.VMEM((L, b_blk, SE), jnp.float32),   # h state
            pltpu.VMEM((L, b_blk, SE), jnp.float32),   # c state
        ],
        compiler_params=pltpu.CompilerParams(
            dimension_semantics=("parallel", "arbitrary"),
            vmem_limit_bytes=vmem_limit,
        ),
    )(xp, w_hh_mm, w_ih_rest, b_rest)


def _lstm_reference(x, w_ih, w_hh, bias):
    """Pure-JAX reference of the same stacked LSTM (inference, no dropout).

    Uses the original PyTorch gate order (i, f, g, o)."""
    B, N, SE = x.shape
    L = w_ih.shape[0]
    h = jnp.zeros((L, B, SE), jnp.float32)
    c = jnp.zeros((L, B, SE), jnp.float32)

    def step(carry, x_t):
        h, c = carry
        layer_in = x_t
        h_new_list, c_new_list = [], []
        for l in range(L):
            gates = layer_in @ w_ih[l] + h[l] @ w_hh[l] + bias[l]
            i_g = jax.nn.sigmoid(gates[:, 0 * SE:1 * SE])
            f_g = jax.nn.sigmoid(gates[:, 1 * SE:2 * SE])
            g_g = jnp.tanh(gates[:, 2 * SE:3 * SE])
            o_g = jax.nn.sigmoid(gates[:, 3 * SE:4 * SE])
            c_l = f_g * c[l] + i_g * g_g
            h_l = o_g * jnp.tanh(c_l)
            h_new_list.append(h_l)
            c_new_list.append(c_l)
            layer_in = h_l
        h = jnp.stack(h_new_list)
        c = jnp.stack(c_new_list)
        return (h, c), layer_in

    (h, c), _ = jax.lax.scan(step, (h, c), jnp.swapaxes(x, 0, 1))
    return h[-1]  # top-layer hidden at last time step, [B, SE]


def make_params(key, se, num_layers=NUM_LAYERS):
    """Deterministic PyTorch-style init: U(-1/sqrt(SE), 1/sqrt(SE)).

    Returned in PyTorch gate order (i, f, g, o), pre-transposed to 'x @ W'."""
    k = 1.0 / jnp.sqrt(jnp.float32(se))
    keys = jax.random.split(key, 4)
    w_ih = jax.random.uniform(keys[0], (num_layers, se, 4 * se), jnp.float32, -k, k)
    w_hh = jax.random.uniform(keys[1], (num_layers, se, 4 * se), jnp.float32, -k, k)
    b_ih = jax.random.uniform(keys[2], (num_layers, 1, 4 * se), jnp.float32, -k, k)
    b_hh = jax.random.uniform(keys[3], (num_layers, 1, 4 * se), jnp.float32, -k, k)
    return w_ih, w_hh, b_ih + b_hh


if __name__ == "__main__":
    B, N, SE = 2, 8, 32

    key = jax.random.PRNGKey(0)
    k_x, k_p = jax.random.split(key)
    service_history = jax.random.normal(k_x, (B, N, SE), jnp.float32)
    w_ih, w_hh, bias = make_params(k_p, SE)

    ref = _lstm_reference(service_history, w_ih, w_hh, bias)

    # f32 matmul operands: tight parity with the f32 reference.
    out = lstm_history_embedder(service_history, w_ih, w_hh, bias,
                                matmul_dtype=jnp.float32)
    out = jax.block_until_ready(out)
    assert out.shape == (B, SE)
    assert jnp.allclose(out, ref, atol=1e-5, rtol=1e-5), "f32 mismatch vs reference"

    # bf16 matmul operands (the v6e/v7x path): looser tolerance, f32 gate math.
    out_bf16 = lstm_history_embedder(service_history, w_ih, w_hh, bias,
                                     matmul_dtype=jnp.bfloat16)
    out_bf16 = jax.block_until_ready(out_bf16)
    assert out_bf16.shape == (B, SE)
    assert jnp.allclose(out_bf16, ref, atol=5e-2, rtol=5e-2), "bf16 mismatch vs reference"

    print("KERNEL_OK")
</pallas_src>

<mosaic_0001>
module attributes {stable_mosaic.version = 11 : i64} {
  func.func @_lstm_kernel(%arg0: i32, %arg1: i32, %arg2: memref<8x2x128xf32, #tpu.memory_space<vmem>>, %arg3: memref<3x32x128xf32, #tpu.memory_space<vmem>>, %arg4: memref<2x32x128xf32, #tpu.memory_space<vmem>>, %arg5: memref<2x1x128xf32, #tpu.memory_space<vmem>>, %arg6: memref<2x32xf32, #tpu.memory_space<vmem>>, %arg7: memref<3x2x32xf32, #tpu.memory_space<vmem>>, %arg8: memref<3x2x32xf32, #tpu.memory_space<vmem>>) attributes {dimension_semantics = [#tpu.dimension_semantics<parallel>, #tpu.dimension_semantics<arbitrary>], iteration_bounds = array<i64: 1, 1>, scalar_prefetch = 0 : i64, scratch_operands = 2 : i64, tpu.core_type = #tpu.core_type<tc>, window_params = [{transform_indices = @transform_0, window_bounds = array<i64: 8, 2, 128>}, {pipeline_mode = #tpu.pipeline_mode<synchronous>, transform_indices = @transform_1, window_bounds = array<i64: 3, 32, 128>}, {pipeline_mode = #tpu.pipeline_mode<synchronous>, transform_indices = @transform_2, window_bounds = array<i64: 2, 32, 128>}, {pipeline_mode = #tpu.pipeline_mode<synchronous>, transform_indices = @transform_3, window_bounds = array<i64: 2, 1, 128>}, {transform_indices = @transform_4, window_bounds = array<i64: 2, 32>}]} {
    %c0_i32 = arith.constant 0 : i32
    %0 = arith.cmpi eq, %arg1, %c0_i32 : i32
    %1 = arith.extui %0 : i1 to i32
    %c0_i32_0 = arith.constant 0 : i32
    %2 = arith.cmpi ne, %1, %c0_i32_0 : i32
    scf.if %2 {
      %cst_284 = arith.constant 0.000000e+00 : f32
      %652 = vector.broadcast %cst_284 : f32 to vector<3x2x32xf32>
      %c0_285 = arith.constant 0 : index
      %c0_286 = arith.constant 0 : index
      %c0_287 = arith.constant 0 : index
      %653 = vector.load %arg7[%c0_285, %c0_286, %c0_287] : memref<3x2x32xf32, #tpu.memory_space<vmem>>, vector<3x2x32xf32>
      tpu.vector_store %arg7[%c0_285, %c0_286, %c0_287], %652 {strides = array<i32>} : memref<3x2x32xf32, #tpu.memory_space<vmem>>, vector<3x2x32xf32>,
      %cst_288 = arith.constant 0.000000e+00 : f32
      %654 = vector.broadcast %cst_288 : f32 to vector<3x2x32xf32>
      %c0_289 = arith.constant 0 : index
      %c0_290 = arith.constant 0 : index
      %c0_291 = arith.constant 0 : index
      %655 = vector.load %arg8[%c0_289, %c0_290, %c0_291] : memref<3x2x32xf32, #tpu.memory_space<vmem>>, vector<3x2x32xf32>
      tpu.vector_store %arg8[%c0_289, %c0_290, %c0_291], %654 {strides = array<i32>} : memref<3x2x32xf32, #tpu.memory_space<vmem>>, vector<3x2x32xf32>,
    } else {
    }
    %c0 = arith.constant 0 : index
    %c0_1 = arith.constant 0 : index
    %c0_2 = arith.constant 0 : index
    %3 = vector.load %arg7[%c0, %c0_1, %c0_2] : memref<3x2x32xf32, #tpu.memory_space<vmem>>, vector<1x2x32xf32>
    %4 = vector.shape_cast %3 : vector<1x2x32xf32> to vector<2x32xf32>
    %c1 = arith.constant 1 : index
    %c0_3 = arith.constant 0 : index
    %c0_4 = arith.constant 0 : index
    %5 = vector.load %arg7[%c1, %c0_3, %c0_4] : memref<3x2x32xf32, #tpu.memory_space<vmem>>, vector<1x2x32xf32>
    %6 = vector.shape_cast %5 : vector<1x2x32xf32> to vector<2x32xf32>
    %c2 = arith.constant 2 : index
    %c0_5 = arith.constant 0 : index
    %c0_6 = arith.constant 0 : index
    %7 = vector.load %arg7[%c2, %c0_5, %c0_6] : memref<3x2x32xf32, #tpu.memory_space<vmem>>, vector<1x2x32xf32>
    %8 = vector.shape_cast %7 : vector<1x2x32xf32> to vector<2x32xf32>
    %c0_7 = arith.constant 0 : index
    %c0_8 = arith.constant 0 : index
    %c0_9 = arith.constant 0 : index
    %9 = vector.load %arg8[%c0_7, %c0_8, %c0_9] : memref<3x2x32xf32, #tpu.memory_space<vmem>>, vector<1x2x32xf32>
    %10 = vector.shape_cast %9 : vector<1x2x32xf32> to vector<2x32xf32>
    %c1_10 = arith.constant 1 : index
    %c0_11 = arith.constant 0 : index
    %c0_12 = arith.constant 0 : index
    %11 = vector.load %arg8[%c1_10, %c0_11, %c0_12] : memref<3x2x32xf32, #tpu.memory_space<vmem>>, vector<1x2x32xf32>
    %12 = vector.shape_cast %11 : vector<1x2x32xf32> to vector<2x32xf32>
    %c2_13 = arith.constant 2 : index
    %c0_14 = arith.constant 0 : index
    %c0_15 = arith.constant 0 : index
    %13 = vector.load %arg8[%c2_13, %c0_14, %c0_15] : memref<3x2x32xf32, #tpu.memory_space<vmem>>, vector<1x2x32xf32>
    %14 = vector.shape_cast %13 : vector<1x2x32xf32> to vector<2x32xf32>
    %c0_i32_16 = arith.constant 0 : i32
    %15 = arith.index_cast %c0_i32_16 : i32 to index
    %c0_17 = arith.constant 0 : index
    %c0_18 = arith.constant 0 : index
    %16 = vector.load %arg2[%15, %c0_17, %c0_18] : memref<8x2x128xf32, #tpu.memory_space<vmem>>, vector<1x2x128xf32>
    %17 = vector.shape_cast %16 : vector<1x2x128xf32> to vector<2x128xf32>
    %c0_19 = arith.constant 0 : index
    %c0_20 = arith.constant 0 : index
    %c0_21 = arith.constant 0 : index
    %18 = vector.load %arg3[%c0_19, %c0_20, %c0_21] : memref<3x32x128xf32, #tpu.memory_space<vmem>>, vector<1x32x128xf32>
    %19 = vector.shape_cast %18 : vector<1x32x128xf32> to vector<32x128xf32>
    %cst = arith.constant dense<0.000000e+00> : vector<2x128xf32>
    %20 = tpu.matmul %4, %19, %cst {dimension_numbers = #tpu.dot_dimension_numbers<[1], [0], [0], [1], [0, 0, 1, 1], [], []>} : vector<2x32xf32>, vector<32x128xf32>, vector<2x128xf32> -> vector<2x128xf32>
    %21 = arith.addf %17, %20 : vector<2x128xf32>
    %22 = vector.extract_strided_slice %21 {offsets = [0, 0], sizes = [2, 96], strides = [1, 1]} : vector<2x128xf32> to vector<2x96xf32>
    %23 = arith.negf %22 : vector<2x96xf32>
    %24 = math.exp %23 : vector<2x96xf32>
    %cst_22 = arith.constant 1.000000e+00 : f32
    %25 = vector.broadcast %cst_22 : f32 to vector<2x96xf32>
    %26 = arith.addf %25, %24 : vector<2x96xf32>
    %27 = arith.divf %25, %26 : vector<2x96xf32>
    %28 = vector.extract_strided_slice %21 {offsets = [0, 96], sizes = [2, 32], strides = [1, 1]} : vector<2x128xf32> to vector<2x32xf32>
    %29 = math.tanh %28 : vector<2x32xf32>
    %30 = vector.extract_strided_slice %27 {offsets = [0, 0], sizes = [2, 32], strides = [1, 1]} : vector<2x96xf32> to vector<2x32xf32>
    %31 = vector.extract_strided_slice %27 {offsets = [0, 32], sizes = [2, 32], strides = [1, 1]} : vector<2x96xf32> to vector<2x32xf32>
    %32 = vector.extract_strided_slice %27 {offsets = [0, 64], sizes = [2, 32], strides = [1, 1]} : vector<2x96xf32> to vector<2x32xf32>
    %33 = arith.mulf %31, %10 : vector<2x32xf32>
    %34 = arith.mulf %30, %29 : vector<2x32xf32>
    %35 = arith.addf %33, %34 : vector<2x32xf32>
    %36 = math.tanh %35 : vector<2x32xf32>
    %37 = arith.mulf %32, %36 : vector<2x32xf32>
    %c0_23 = arith.constant 0 : index
    %c0_24 = arith.constant 0 : index
    %c0_25 = arith.constant 0 : index
    %38 = vector.load %arg4[%c0_23, %c0_24, %c0_25] : memref<2x32x128xf32, #tpu.memory_space<vmem>>, vector<1x32x128xf32>
    %39 = vector.shape_cast %38 : vector<1x32x128xf32> to vector<32x128xf32>
    %cst_26 = arith.constant dense<0.000000e+00> : vector<2x128xf32>
    %40 = tpu.matmul %37, %39, %cst_26 {dimension_numbers = #tpu.dot_dimension_numbers<[1], [0], [0], [1], [0, 0, 1, 1], [], []>} : vector<2x32xf32>, vector<32x128xf32>, vector<2x128xf32> -> vector<2x128xf32>
    %c1_27 = arith.constant 1 : index
    %c0_28 = arith.constant 0 : index
    %c0_29 = arith.constant 0 : index
    %41 = vector.load %arg3[%c1_27, %c0_28, %c0_29] : memref<3x32x128xf32, #tpu.memory_space<vmem>>, vector<1x32x128xf32>
    %42 = vector.shape_cast %41 : vector<1x32x128xf32> to vector<32x128xf32>
    %cst_30 = arith.constant dense<0.000000e+00> : vector<2x128xf32>
    %43 = tpu.matmul %6, %42, %cst_30 {dimension_numbers = #tpu.dot_dimension_numbers<[1], [0], [0], [1], [0, 0, 1, 1], [], []>} : vector<2x32xf32>, vector<32x128xf32>, vector<2x128xf32> -> vector<2x128xf32>
    %44 = arith.addf %40, %43 : vector<2x128xf32>
    %c0_31 = arith.constant 0 : index
    %c0_32 = arith.constant 0 : index
    %c0_33 = arith.constant 0 : index
    %45 = vector.load %arg5[%c0_31, %c0_32, %c0_33] : memref<2x1x128xf32, #tpu.memory_space<vmem>>, vector<1x1x128xf32>
    %46 = vector.shape_cast %45 : vector<1x1x128xf32> to vector<1x128xf32>
    %47 = vector.broadcast %46 : vector<1x128xf32> to vector<2x128xf32>
    %48 = arith.addf %44, %47 : vector<2x128xf32>
    %49 = vector.extract_strided_slice %48 {offsets = [0, 0], sizes = [2, 96], strides = [1, 1]} : vector<2x128xf32> to vector<2x96xf32>
    %50 = arith.negf %49 : vector<2x96xf32>
    %51 = math.exp %50 : vector<2x96xf32>
    %cst_34 = arith.constant 1.000000e+00 : f32
    %52 = vector.broadcast %cst_34 : f32 to vector<2x96xf32>
    %53 = arith.addf %52, %51 : vector<2x96xf32>
    %54 = arith.divf %52, %53 : vector<2x96xf32>
    %55 = vector.extract_strided_slice %48 {offsets = [0, 96], sizes = [2, 32], strides = [1, 1]} : vector<2x128xf32> to vector<2x32xf32>
    %56 = math.tanh %55 : vector<2x32xf32>
    %57 = vector.extract_strided_slice %54 {offsets = [0, 0], sizes = [2, 32], strides = [1, 1]} : vector<2x96xf32> to vector<2x32xf32>
    %58 = vector.extract_strided_slice %54 {offsets = [0, 32], sizes = [2, 32], strides = [1, 1]} : vector<2x96xf32> to vector<2x32xf32>
    %59 = vector.extract_strided_slice %54 {offsets = [0, 64], sizes = [2, 32], strides = [1, 1]} : vector<2x96xf32> to vector<2x32xf32>
    %60 = arith.mulf %58, %12 : vector<2x32xf32>
    %61 = arith.mulf %57, %56 : vector<2x32xf32>
    %62 = arith.addf %60, %61 : vector<2x32xf32>
    %63 = math.tanh %62 : vector<2x32xf32>
    %64 = arith.mulf %59, %63 : vector<2x32xf32>
    %c1_35 = arith.constant 1 : index
    %c0_36 = arith.constant 0 : index
    %c0_37 = arith.constant 0 : index
    %65 = vector.load %arg4[%c1_35, %c0_36, %c0_37] : memref<2x32x128xf32, #tpu.memory_space<vmem>>, vector<1x32x128xf32>
    %66 = vector.shape_cast %65 : vector<1x32x128xf32> to vector<32x128xf32>
    %cst_38 = arith.constant dense<0.000000e+00> : vector<2x128xf32>
    %67 = tpu.matmul %64, %66, %cst_38 {dimension_numbers = #tpu.dot_dimension_numbers<[1], [0], [0], [1], [0, 0, 1, 1], [], []>} : vector<2x32xf32>, vector<32x128xf32>, vector<2x128xf32> -> vector<2x128xf32>
    %c2_39 = arith.constant 2 : index
    %c0_40 = arith.constant 0 : index
    %c0_41 = arith.constant 0 : index
    %68 = vector.load %arg3[%c2_39, %c0_40, %c0_41] : memref<3x32x128xf32, #tpu.memory_space<vmem>>, vector<1x32x128xf32>
    %69 = vector.shape_cast %68 : vector<1x32x128xf32> to vector<32x128xf32>
    %cst_42 = arith.constant dense<0.000000e+00> : vector<2x128xf32>
    %70 = tpu.matmul %8, %69, %cst_42 {dimension_numbers = #tpu.dot_dimension_numbers<[1], [0], [0], [1], [0, 0, 1, 1], [], []>} : vector<2x32xf32>, vector<32x128xf32>, vector<2x128xf32> -> vector<2x128xf32>
    %71 = arith.addf %67, %70 : vector<2x128xf32>
    %c1_43 = arith.constant 1 : index
    %c0_44 = arith.constant 0 : index
    %c0_45 = arith.constant 0 : index
    %72 = vector.load %arg5[%c1_43, %c0_44, %c0_45] : memref<2x1x128xf32, #tpu.memory_space<vmem>>, vector<1x1x128xf32>
    %73 = vector.shape_cast %72 : vector<1x1x128xf32> to vector<1x128xf32>
    %74 = vector.broadcast %73 : vector<1x128xf32> to vector<2x128xf32>
    %75 = arith.addf %71, %74 : vector<2x128xf32>
    %76 = vector.extract_strided_slice %75 {offsets = [0, 0], sizes = [2, 96], strides = [1, 1]} : vector<2x128xf32> to vector<2x96xf32>
    %77 = arith.negf %76 : vector<2x96xf32>
    %78 = math.exp %77 : vector<2x96xf32>
    %cst_46 = arith.constant 1.000000e+00 : f32
    %79 = vector.broadcast %cst_46 : f32 to vector<2x96xf32>
    %80 = arith.addf %79, %78 : vector<2x96xf32>
    %81 = arith.divf %79, %80 : vector<2x96xf32>
    %82 = vector.extract_strided_slice %75 {offsets = [0, 96], sizes = [2, 32], strides = [1, 1]} : vector<2x128xf32> to vector<2x32xf32>
    %83 = math.tanh %82 : vector<2x32xf32>
    %84 = vector.extract_strided_slice %81 {offsets = [0, 0], sizes = [2, 32], strides = [1, 1]} : vector<2x96xf32> to vector<2x32xf32>
    %85 = vector.extract_strided_slice %81 {offsets = [0, 32], sizes = [2, 32], strides = [1, 1]} : vector<2x96xf32> to vector<2x32xf32>
    %86 = vector.extract_strided_slice %81 {offsets = [0, 64], sizes = [2, 32], strides = [1, 1]} : vector<2x96xf32> to vector<2x32xf32>
    %87 = arith.mulf %85, %14 : vector<2x32xf32>
    %88 = arith.mulf %84, %83 : vector<2x32xf32>
    %89 = arith.addf %87, %88 : vector<2x32xf32>
    %90 = math.tanh %89 : vector<2x32xf32>
    %91 = arith.mulf %86, %90 : vector<2x32xf32>
    %c1_i32 = arith.constant 1 : i32
    %92 = arith.index_cast %c1_i32 : i32 to index
    %c0_47 = arith.constant 0 : index
    %c0_48 = arith.constant 0 : index
    %93 = vector.load %arg2[%92, %c0_47, %c0_48] : memref<8x2x128xf32, #tpu.memory_space<vmem>>, vector<1x2x128xf32>
    %94 = vector.shape_cast %93 : vector<1x2x128xf32> to vector<2x128xf32>
    %c0_49 = arith.constant 0 : index
    %c0_50 = arith.constant 0 : index
    %c0_51 = arith.constant 0 : index
    %95 = vector.load %arg3[%c0_49, %c0_50, %c0_51] : memref<3x32x128xf32, #tpu.memory_space<vmem>>, vector<1x32x128xf32>
    %96 = vector.shape_cast %95 : vector<1x32x128xf32> to vector<32x128xf32>
    %cst_52 = arith.constant dense<0.000000e+00> : vector<2x128xf32>
    %97 = tpu.matmul %37, %96, %cst_52 {dimension_numbers = #tpu.dot_dimension_numbers<[1], [0], [0], [1], [0, 0, 1, 1], [], []>} : vector<2x32xf32>, vector<32x128xf32>, vector<2x128xf32> -> vector<2x128xf32>
    %98 = arith.addf %94, %97 : vector<2x128xf32>
    %99 = vector.extract_strided_slice %98 {offsets = [0, 0], sizes = [2, 96], strides = [1, 1]} : vector<2x128xf32> to vector<2x96xf32>
    %100 = arith.negf %99 : vector<2x96xf32>
    %101 = math.exp %100 : vector<2x96xf32>
    %cst_53 = arith.constant 1.000000e+00 : f32
    %102 = vector.broadcast %cst_53 : f32 to vector<2x96xf32>
    %103 = arith.addf %102, %101 : vector<2x96xf32>
    %104 = arith.divf %102, %103 : vector<2x96xf32>
    %105 = vector.extract_strided_slice %98 {offsets = [0, 96], sizes = [2, 32], strides = [1, 1]} : vector<2x128xf32> to vector<2x32xf32>
    %106 = math.tanh %105 : vector<2x32xf32>
    %107 = vector.extract_strided_slice %104 {offsets = [0, 0], sizes = [2, 32], strides = [1, 1]} : vector<2x96xf32> to vector<2x32xf32>
    %108 = vector.extract_strided_slice %104 {offsets = [0, 32], sizes = [2, 32], strides = [1, 1]} : vector<2x96xf32> to vector<2x32xf32>
    %109 = vector.extract_strided_slice %104 {offsets = [0, 64], sizes = [2, 32], strides = [1, 1]} : vector<2x96xf32> to vector<2x32xf32>
    %110 = arith.mulf %108, %35 : vector<2x32xf32>
    %111 = arith.mulf %107, %106 : vector<2x32xf32>
    %112 = arith.addf %110, %111 : vector<2x32xf32>
    %113 = math.tanh %112 : vector<2x32xf32>
    %114 = arith.mulf %109, %113 : vector<2x32xf32>
    %c0_54 = arith.constant 0 : index
    %c0_55 = arith.constant 0 : index
    %c0_56 = arith.constant 0 : index
    %115 = vector.load %arg4[%c0_54, %c0_55, %c0_56] : memref<2x32x128xf32, #tpu.memory_space<vmem>>, vector<1x32x128xf32>
    %116 = vector.shape_cast %115 : vector<1x32x128xf32> to vector<32x128xf32>
    %cst_57 = arith.constant dense<0.000000e+00> : vector<2x128xf32>
    %117 = tpu.matmul %114, %116, %cst_57 {dimension_numbers = #tpu.dot_dimension_numbers<[1], [0], [0], [1], [0, 0, 1, 1], [], []>} : vector<2x32xf32>, vector<32x128xf32>, vector<2x128xf32> -> vector<2x128xf32>
    %c1_58 = arith.constant 1 : index
    %c0_59 = arith.constant 0 : index
    %c0_60 = arith.constant 0 : index
    %118 = vector.load %arg3[%c1_58, %c0_59, %c0_60] : memref<3x32x128xf32, #tpu.memory_space<vmem>>, vector<1x32x128xf32>
    %119 = vector.shape_cast %118 : vector<1x32x128xf32> to vector<32x128xf32>
    %cst_61 = arith.constant dense<0.000000e+00> : vector<2x128xf32>
    %120 = tpu.matmul %64, %119, %cst_61 {dimension_numbers = #tpu.dot_dimension_numbers<[1], [0], [0], [1], [0, 0, 1, 1], [], []>} : vector<2x32xf32>, vector<32x128xf32>, vector<2x128xf32> -> vector<2x128xf32>
    %121 = arith.addf %117, %120 : vector<2x128xf32>
    %c0_62 = arith.constant 0 : index
    %c0_63 = arith.constant 0 : index
    %c0_64 = arith.constant 0 : index
    %122 = vector.load %arg5[%c0_62, %c0_63, %c0_64] : memref<2x1x128xf32, #tpu.memory_space<vmem>>, vector<1x1x128xf32>
    %123 = vector.shape_cast %122 : vector<1x1x128xf32> to vector<1x128xf32>
    %124 = vector.broadcast %123 : vector<1x128xf32> to vector<2x128xf32>
    %125 = arith.addf %121, %124 : vector<2x128xf32>
    %126 = vector.extract_strided_slice %125 {offsets = [0, 0], sizes = [2, 96], strides = [1, 1]} : vector<2x128xf32> to vector<2x96xf32>
    %127 = arith.negf %126 : vector<2x96xf32>
    %128 = math.exp %127 : vector<2x96xf32>
    %cst_65 = arith.constant 1.000000e+00 : f32
    %129 = vector.broadcast %cst_65 : f32 to vector<2x96xf32>
    %130 = arith.addf %129, %128 : vector<2x96xf32>
    %131 = arith.divf %129, %130 : vector<2x96xf32>
    %132 = vector.extract_strided_slice %125 {offsets = [0, 96], sizes = [2, 32], strides = [1, 1]} : vector<2x128xf32> to vector<2x32xf32>
    %133 = math.tanh %132 : vector<2x32xf32>
    %134 = vector.extract_strided_slice %131 {offsets = [0, 0], sizes = [2, 32], strides = [1, 1]} : vector<2x96xf32> to vector<2x32xf32>
    %135 = vector.extract_strided_slice %131 {offsets = [0, 32], sizes = [2, 32], strides = [1, 1]} : vector<2x96xf32> to vector<2x32xf32>
    %136 = vector.extract_strided_slice %131 {offsets = [0, 64], sizes = [2, 32], strides = [1, 1]} : vector<2x96xf32> to vector<2x32xf32>
    %137 = arith.mulf %135, %62 : vector<2x32xf32>
    %138 = arith.mulf %134, %133 : vector<2x32xf32>
    %139 = arith.addf %137, %138 : vector<2x32xf32>
    %140 = math.tanh %139 : vector<2x32xf32>
    %141 = arith.mulf %136, %140 : vector<2x32xf32>
    %c1_66 = arith.constant 1 : index
    %c0_67 = arith.constant 0 : index
    %c0_68 = arith.constant 0 : index
    %142 = vector.load %arg4[%c1_66, %c0_67, %c0_68] : memref<2x32x128xf32, #tpu.memory_space<vmem>>, vector<1x32x128xf32>
    %143 = vector.shape_cast %142 : vector<1x32x128xf32> to vector<32x128xf32>
    %cst_69 = arith.constant dense<0.000000e+00> : vector<2x128xf32>
    %144 = tpu.matmul %141, %143, %cst_69 {dimension_numbers = #tpu.dot_dimension_numbers<[1], [0], [0], [1], [0, 0, 1, 1], [], []>} : vector<2x32xf32>, vector<32x128xf32>, vector<2x128xf32> -> vector<2x128xf32>
    %c2_70 = arith.constant 2 : index
    %c0_71 = arith.constant 0 : index
    %c0_72 = arith.constant 0 : index
    %145 = vector.load %arg3[%c2_70, %c0_71, %c0_72] : memref<3x32x128xf32, #tpu.memory_space<vmem>>, vector<1x32x128xf32>
    %146 = vector.shape_cast %145 : vector<1x32x128xf32> to vector<32x128xf32>
    %cst_73 = arith.constant dense<0.000000e+00> : vector<2x128xf32>
    %147 = tpu.matmul %91, %146, %cst_73 {dimension_numbers = #tpu.dot_dimension_numbers<[1], [0], [0], [1], [0, 0, 1, 1], [], []>} : vector<2x32xf32>, vector<32x128xf32>, vector<2x128xf32> -> vector<2x128xf32>
    %148 = arith.addf %144, %147 : vector<2x128xf32>
    %c1_74 = arith.constant 1 : index
    %c0_75 = arith.constant 0 : index
    %c0_76 = arith.constant 0 : index
    %149 = vector.load %arg5[%c1_74, %c0_75, %c0_76] : memref<2x1x128xf32, #tpu.memory_space<vmem>>, vector<1x1x128xf32>
    %150 = vector.shape_cast %149 : vector<1x1x128xf32> to vector<1x128xf32>
    %151 = vector.broadcast %150 : vector<1x128xf32> to vector<2x128xf32>
    %152 = arith.addf %148, %151 : vector<2x128xf32>
    %153 = vector.extract_strided_slice %152 {offsets = [0, 0], sizes = [2, 96], strides = [1, 1]} : vector<2x128xf32> to vector<2x96xf32>
    %154 = arith.negf %153 : vector<2x96xf32>
    %155 = math.exp %154 : vector<2x96xf32>
    %cst_77 = arith.constant 1.000000e+00 : f32
    %156 = vector.broadcast %cst_77 : f32 to vector<2x96xf32>
    %157 = arith.addf %156, %155 : vector<2x96xf32>
    %158 = arith.divf %156, %157 : vector<2x96xf32>
    %159 = vector.extract_strided_slice %152 {offsets = [0, 96], sizes = [2, 32], strides = [1, 1]} : vector<2x128xf32> to vector<2x32xf32>
    %160 = math.tanh %159 : vector<2x32xf32>
    %161 = vector.extract_strided_slice %158 {offsets = [0, 0], sizes = [2, 32], strides = [1, 1]} : vector<2x96xf32> to vector<2x32xf32>
    %162 = vector.extract_strided_slice %158 {offsets = [0, 32], sizes = [2, 32], strides = [1, 1]} : vector<2x96xf32> to vector<2x32xf32>
    %163 = vector.extract_strided_slice %158 {offsets = [0, 64], sizes = [2, 32], strides = [1, 1]} : vector<2x96xf32> to vector<2x32xf32>
    %164 = arith.mulf %162, %89 : vector<2x32xf32>
    %165 = arith.mulf %161, %160 : vector<2x32xf32>
    %166 = arith.addf %164, %165 : vector<2x32xf32>
    %167 = math.tanh %166 : vector<2x32xf32>
    %168 = arith.mulf %163, %167 : vector<2x32xf32>
    %c2_i32 = arith.constant 2 : i32
    %169 = arith.index_cast %c2_i32 : i32 to index
    %c0_78 = arith.constant 0 : index
    %c0_79 = arith.constant 0 : index
    %170 = vector.load %arg2[%169, %c0_78, %c0_79] : memref<8x2x128xf32, #tpu.memory_space<vmem>>, vector<1x2x128xf32>
    %171 = vector.shape_cast %170 : vector<1x2x128xf32> to vector<2x128xf32>
    %c0_80 = arith.constant 0 : index
    %c0_81 = arith.constant 0 : index
    %c0_82 = arith.constant 0 : index
    %172 = vector.load %arg3[%c0_80, %c0_81, %c0_82] : memref<3x32x128xf32, #tpu.memory_space<vmem>>, vector<1x32x128xf32>
    %173 = vector.shape_cast %172 : vector<1x32x128xf32> to vector<32x128xf32>
    %cst_83 = arith.constant dense<0.000000e+00> : vector<2x128xf32>
    %174 = tpu.matmul %114, %173, %cst_83 {dimension_numbers = #tpu.dot_dimension_numbers<[1], [0], [0], [1], [0, 0, 1, 1], [], []>} : vector<2x32xf32>, vector<32x128xf32>, vector<2x128xf32> -> vector<2x128xf32>
    %175 = arith.addf %171, %174 : vector<2x128xf32>
    %176 = vector.extract_strided_slice %175 {offsets = [0, 0], sizes = [2, 96], strides = [1, 1]} : vector<2x128xf32> to vector<2x96xf32>
    %177 = arith.negf %176 : vector<2x96xf32>
    %178 = math.exp %177 : vector<2x96xf32>
    %cst_84 = arith.constant 1.000000e+00 : f32
    %179 = vector.broadcast %cst_84 : f32 to vector<2x96xf32>
    %180 = arith.addf %179, %178 : vector<2x96xf32>
    %181 = arith.divf %179, %180 : vector<2x96xf32>
    %182 = vector.extract_strided_slice %175 {offsets = [0, 96], sizes = [2, 32], strides = [1, 1]} : vector<2x128xf32> to vector<2x32xf32>
    %183 = math.tanh %182 : vector<2x32xf32>
    %184 = vector.extract_strided_slice %181 {offsets = [0, 0], sizes = [2, 32], strides = [1, 1]} : vector<2x96xf32> to vector<2x32xf32>
    %185 = vector.extract_strided_slice %181 {offsets = [0, 32], sizes = [2, 32], strides = [1, 1]} : vector<2x96xf32> to vector<2x32xf32>
    %186 = vector.extract_strided_slice %181 {offsets = [0, 64], sizes = [2, 32], strides = [1, 1]} : vector<2x96xf32> to vector<2x32xf32>
    %187 = arith.mulf %185, %112 : vector<2x32xf32>
    %188 = arith.mulf %184, %183 : vector<2x32xf32>
    %189 = arith.addf %187, %188 : vector<2x32xf32>
    %190 = math.tanh %189 : vector<2x32xf32>
    %191 = arith.mulf %186, %190 : vector<2x32xf32>
    %c0_85 = arith.constant 0 : index
    %c0_86 = arith.constant 0 : index
    %c0_87 = arith.constant 0 : index
    %192 = vector.load %arg4[%c0_85, %c0_86, %c0_87] : memref<2x32x128xf32, #tpu.memory_space<vmem>>, vector<1x32x128xf32>
    %193 = vector.shape_cast %192 : vector<1x32x128xf32> to vector<32x128xf32>
    %cst_88 = arith.constant dense<0.000000e+00> : vector<2x128xf32>
    %194 = tpu.matmul %191, %193, %cst_88 {dimension_numbers = #tpu.dot_dimension_numbers<[1], [0], [0], [1], [0, 0, 1, 1], [], []>} : vector<2x32xf32>, vector<32x128xf32>, vector<2x128xf32> -> vector<2x128xf32>
    %c1_89 = arith.constant 1 : index
    %c0_90 = arith.constant 0 : index
    %c0_91 = arith.constant 0 : index
    %195 = vector.load %arg3[%c1_89, %c0_90, %c0_91] : memref<3x32x128xf32, #tpu.memory_space<vmem>>, vector<1x32x128xf32>
    %196 = vector.shape_cast %195 : vector<1x32x128xf32> to vector<32x128xf32>
    %cst_92 = arith.constant dense<0.000000e+00> : vector<2x128xf32>
    %197 = tpu.matmul %141, %196, %cst_92 {dimension_numbers = #tpu.dot_dimension_numbers<[1], [0], [0], [1], [0, 0, 1, 1], [], []>} : vector<2x32xf32>, vector<32x128xf32>, vector<2x128xf32> -> vector<2x128xf32>
    %198 = arith.addf %194, %197 : vector<2x128xf32>
    %c0_93 = arith.constant 0 : index
    %c0_94 = arith.constant 0 : index
    %c0_95 = arith.constant 0 : index
    %199 = vector.load %arg5[%c0_93, %c0_94, %c0_95] : memref<2x1x128xf32, #tpu.memory_space<vmem>>, vector<1x1x128xf32>
    %200 = vector.shape_cast %199 : vector<1x1x128xf32> to vector<1x128xf32>
    %201 = vector.broadcast %200 : vector<1x128xf32> to vector<2x128xf32>
    %202 = arith.addf %198, %201 : vector<2x128xf32>
    %203 = vector.extract_strided_slice %202 {offsets = [0, 0], sizes = [2, 96], strides = [1, 1]} : vector<2x128xf32> to vector<2x96xf32>
    %204 = arith.negf %203 : vector<2x96xf32>
    %205 = math.exp %204 : vector<2x96xf32>
    %cst_96 = arith.constant 1.000000e+00 : f32
    %206 = vector.broadcast %cst_96 : f32 to vector<2x96xf32>
    %207 = arith.addf %206, %205 : vector<2x96xf32>
    %208 = arith.divf %206, %207 : vector<2x96xf32>
    %209 = vector.extract_strided_slice %202 {offsets = [0, 96], sizes = [2, 32], strides = [1, 1]} : vector<2x128xf32> to vector<2x32xf32>
    %210 = math.tanh %209 : vector<2x32xf32>
    %211 = vector.extract_strided_slice %208 {offsets = [0, 0], sizes = [2, 32], strides = [1, 1]} : vector<2x96xf32> to vector<2x32xf32>
    %212 = vector.extract_strided_slice %208 {offsets = [0, 32], sizes = [2, 32], strides = [1, 1]} : vector<2x96xf32> to vector<2x32xf32>
    %213 = vector.extract_strided_slice %208 {offsets = [0, 64], sizes = [2, 32], strides = [1, 1]} : vector<2x96xf32> to vector<2x32xf32>
    %214 = arith.mulf %212, %139 : vector<2x32xf32>
    %215 = arith.mulf %211, %210 : vector<2x32xf32>
    %216 = arith.addf %214, %215 : vector<2x32xf32>
    %217 = math.tanh %216 : vector<2x32xf32>
    %218 = arith.mulf %213, %217 : vector<2x32xf32>
    %c1_97 = arith.constant 1 : index
    %c0_98 = arith.constant 0 : index
    %c0_99 = arith.constant 0 : index
    %219 = vector.load %arg4[%c1_97, %c0_98, %c0_99] : memref<2x32x128xf32, #tpu.memory_space<vmem>>, vector<1x32x128xf32>
    %220 = vector.shape_cast %219 : vector<1x32x128xf32> to vector<32x128xf32>
    %cst_100 = arith.constant dense<0.000000e+00> : vector<2x128xf32>
    %221 = tpu.matmul %218, %220, %cst_100 {dimension_numbers = #tpu.dot_dimension_numbers<[1], [0], [0], [1], [0, 0, 1, 1], [], []>} : vector<2x32xf32>, vector<32x128xf32>, vector<2x128xf32> -> vector<2x128xf32>
    %c2_101 = arith.constant 2 : index
    %c0_102 = arith.constant 0 : index
    %c0_103 = arith.constant 0 : index
    %222 = vector.load %arg3[%c2_101, %c0_102, %c0_103] : memref<3x32x128xf32, #tpu.memory_space<vmem>>, vector<1x32x128xf32>
    %223 = vector.shape_cast %222 : vector<1x32x128xf32> to vector<32x128xf32>
    %cst_104 = arith.constant dense<0.000000e+00> : vector<2x128xf32>
    %224 = tpu.matmul %168, %223, %cst_104 {dimension_numbers = #tpu.dot_dimension_numbers<[1], [0], [0], [1], [0, 0, 1, 1], [], []>} : vector<2x32xf32>, vector<32x128xf32>, vector<2x128xf32> -> vector<2x128xf32>
    %225 = arith.addf %221, %224 : vector<2x128xf32>
    %c1_105 = arith.constant 1 : index
    %c0_106 = arith.constant 0 : index
    %c0_107 = arith.constant 0 : index
    %226 = vector.load %arg5[%c1_105, %c0_106, %c0_107] : memref<2x1x128xf32, #tpu.memory_space<vmem>>, vector<1x1x128xf32>
    %227 = vector.shape_cast %226 : vector<1x1x128xf32> to vector<1x128xf32>
    %228 = vector.broadcast %227 : vector<1x128xf32> to vector<2x128xf32>
    %229 = arith.addf %225, %228 : vector<2x128xf32>
    %230 = vector.extract_strided_slice %229 {offsets = [0, 0], sizes = [2, 96], strides = [1, 1]} : vector<2x128xf32> to vector<2x96xf32>
    %231 = arith.negf %230 : vector<2x96xf32>
    %232 = math.exp %231 : vector<2x96xf32>
    %cst_108 = arith.constant 1.000000e+00 : f32
    %233 = vector.broadcast %cst_108 : f32 to vector<2x96xf32>
    %234 = arith.addf %233, %232 : vector<2x96xf32>
    %235 = arith.divf %233, %234 : vector<2x96xf32>
    %236 = vector.extract_strided_slice %229 {offsets = [0, 96], sizes = [2, 32], strides = [1, 1]} : vector<2x128xf32> to vector<2x32xf32>
    %237 = math.tanh %236 : vector<2x32xf32>
    %238 = vector.extract_strided_slice %235 {offsets = [0, 0], sizes = [2, 32], strides = [1, 1]} : vector<2x96xf32> to vector<2x32xf32>
    %239 = vector.extract_strided_slice %235 {offsets = [0, 32], sizes = [2, 32], strides = [1, 1]} : vector<2x96xf32> to vector<2x32xf32>
    %240 = vector.extract_strided_slice %235 {offsets = [0, 64], sizes = [2, 32], strides = [1, 1]} : vector<2x96xf32> to vector<2x32xf32>
    %241 = arith.mulf %239, %166 : vector<2x32xf32>
    %242 = arith.mulf %238, %237 : vector<2x32xf32>
    %243 = arith.addf %241, %242 : vector<2x32xf32>
    %244 = math.tanh %243 : vector<2x32xf32>
    %245 = arith.mulf %240, %244 : vector<2x32xf32>
    %c3_i32 = arith.constant 3 : i32
    %246 = arith.index_cast %c3_i32 : i32 to index
    %c0_109 = arith.constant 0 : index
    %c0_110 = arith.constant 0 : index
    %247 = vector.load %arg2[%246, %c0_109, %c0_110] : memref<8x2x128xf32, #tpu.memory_space<vmem>>, vector<1x2x128xf32>
    %248 = vector.shape_cast %247 : vector<1x2x128xf32> to vector<2x128xf32>
    %c0_111 = arith.constant 0 : index
    %c0_112 = arith.constant 0 : index
    %c0_113 = arith.constant 0 : index
    %249 = vector.load %arg3[%c0_111, %c0_112, %c0_113] : memref<3x32x128xf32, #tpu.memory_space<vmem>>, vector<1x32x128xf32>
    %250 = vector.shape_cast %249 : vector<1x32x128xf32> to vector<32x128xf32>
    %cst_114 = arith.constant dense<0.000000e+00> : vector<2x128xf32>
    %251 = tpu.matmul %191, %250, %cst_114 {dimension_numbers = #tpu.dot_dimension_numbers<[1], [0], [0], [1], [0, 0, 1, 1], [], []>} : vector<2x32xf32>, vector<32x128xf32>, vector<2x128xf32> -> vector<2x128xf32>
    %252 = arith.addf %248, %251 : vector<2x128xf32>
    %253 = vector.extract_strided_slice %252 {offsets = [0, 0], sizes = [2, 96], strides = [1, 1]} : vector<2x128xf32> to vector<2x96xf32>
    %254 = arith.negf %253 : vector<2x96xf32>
    %255 = math.exp %254 : vector<2x96xf32>
    %cst_115 = arith.constant 1.000000e+00 : f32
    %256 = vector.broadcast %cst_115 : f32 to vector<2x96xf32>
    %257 = arith.addf %256, %255 : vector<2x96xf32>
    %258 = arith.divf %256, %257 : vector<2x96xf32>
    %259 = vector.extract_strided_slice %252 {offsets = [0, 96], sizes = [2, 32], strides = [1, 1]} : vector<2x128xf32> to vector<2x32xf32>
    %260 = math.tanh %259 : vector<2x32xf32>
    %261 = vector.extract_strided_slice %258 {offsets = [0, 0], sizes = [2, 32], strides = [1, 1]} : vector<2x96xf32> to vector<2x32xf32>
    %262 = vector.extract_strided_slice %258 {offsets = [0, 32], sizes = [2, 32], strides = [1, 1]} : vector<2x96xf32> to vector<2x32xf32>
    %263 = vector.extract_strided_slice %258 {offsets = [0, 64], sizes = [2, 32], strides = [1, 1]} : vector<2x96xf32> to vector<2x32xf32>
    %264 = arith.mulf %262, %189 : vector<2x32xf32>
    %265 = arith.mulf %261, %260 : vector<2x32xf32>
    %266 = arith.addf %264, %265 : vector<2x32xf32>
    %267 = math.tanh %266 : vector<2x32xf32>
    %268 = arith.mulf %263, %267 : vector<2x32xf32>
    %c0_116 = arith.constant 0 : index
    %c0_117 = arith.constant 0 : index
    %c0_118 = arith.constant 0 : index
    %269 = vector.load %arg4[%c0_116, %c0_117, %c0_118] : memref<2x32x128xf32, #tpu.memory_space<vmem>>, vector<1x32x128xf32>
    %270 = vector.shape_cast %269 : vector<1x32x128xf32> to vector<32x128xf32>
    %cst_119 = arith.constant dense<0.000000e+00> : vector<2x128xf32>
    %271 = tpu.matmul %268, %270, %cst_119 {dimension_numbers = #tpu.dot_dimension_numbers<[1], [0], [0], [1], [0, 0, 1, 1], [], []>} : vector<2x32xf32>, vector<32x128xf32>, vector<2x128xf32> -> vector<2x128xf32>
    %c1_120 = arith.constant 1 : index
    %c0_121 = arith.constant 0 : index
    %c0_122 = arith.constant 0 : index
    %272 = vector.load %arg3[%c1_120, %c0_121, %c0_122] : memref<3x32x128xf32, #tpu.memory_space<vmem>>, vector<1x32x128xf32>
    %273 = vector.shape_cast %272 : vector<1x32x128xf32> to vector<32x128xf32>
    %cst_123 = arith.constant dense<0.000000e+00> : vector<2x128xf32>
    %274 = tpu.matmul %218, %273, %cst_123 {dimension_numbers = #tpu.dot_dimension_numbers<[1], [0], [0], [1], [0, 0, 1, 1], [], []>} : vector<2x32xf32>, vector<32x128xf32>, vector<2x128xf32> -> vector<2x128xf32>
    %275 = arith.addf %271, %274 : vector<2x128xf32>
    %c0_124 = arith.constant 0 : index
    %c0_125 = arith.constant 0 : index
    %c0_126 = arith.constant 0 : index
    %276 = vector.load %arg5[%c0_124, %c0_125, %c0_126] : memref<2x1x128xf32, #tpu.memory_space<vmem>>, vector<1x1x128xf32>
    %277 = vector.shape_cast %276 : vector<1x1x128xf32> to vector<1x128xf32>
    %278 = vector.broadcast %277 : vector<1x128xf32> to vector<2x128xf32>
    %279 = arith.addf %275, %278 : vector<2x128xf32>
    %280 = vector.extract_strided_slice %279 {offsets = [0, 0], sizes = [2, 96], strides = [1, 1]} : vector<2x128xf32> to vector<2x96xf32>
    %281 = arith.negf %280 : vector<2x96xf32>
    %282 = math.exp %281 : vector<2x96xf32>
    %cst_127 = arith.constant 1.000000e+00 : f32
    %283 = vector.broadcast %cst_127 : f32 to vector<2x96xf32>
    %284 = arith.addf %283, %282 : vector<2x96xf32>
    %285 = arith.divf %283, %284 : vector<2x96xf32>
    %286 = vector.extract_strided_slice %279 {offsets = [0, 96], sizes = [2, 32], strides = [1, 1]} : vector<2x128xf32> to vector<2x32xf32>
    %287 = math.tanh %286 : vector<2x32xf32>
    %288 = vector.extract_strided_slice %285 {offsets = [0, 0], sizes = [2, 32], strides = [1, 1]} : vector<2x96xf32> to vector<2x32xf32>
    %289 = vector.extract_strided_slice %285 {offsets = [0, 32], sizes = [2, 32], strides = [1, 1]} : vector<2x96xf32> to vector<2x32xf32>
    %290 = vector.extract_strided_slice %285 {offsets = [0, 64], sizes = [2, 32], strides = [1, 1]} : vector<2x96xf32> to vector<2x32xf32>
    %291 = arith.mulf %289, %216 : vector<2x32xf32>
    %292 = arith.mulf %288, %287 : vector<2x32xf32>
    %293 = arith.addf %291, %292 : vector<2x32xf32>
    %294 = math.tanh %293 : vector<2x32xf32>
    %295 = arith.mulf %290, %294 : vector<2x32xf32>
    %c1_128 = arith.constant 1 : index
    %c0_129 = arith.constant 0 : index
    %c0_130 = arith.constant 0 : index
    %296 = vector.load %arg4[%c1_128, %c0_129, %c0_130] : memref<2x32x128xf32, #tpu.memory_space<vmem>>, vector<1x32x128xf32>
    %297 = vector.shape_cast %296 : vector<1x32x128xf32> to vector<32x128xf32>
    %cst_131 = arith.constant dense<0.000000e+00> : vector<2x128xf32>
    %298 = tpu.matmul %295, %297, %cst_131 {dimension_numbers = #tpu.dot_dimension_numbers<[1], [0], [0], [1], [0, 0, 1, 1], [], []>} : vector<2x32xf32>, vector<32x128xf32>, vector<2x128xf32> -> vector<2x128xf32>
    %c2_132 = arith.constant 2 : index
    %c0_133 = arith.constant 0 : index
    %c0_134 = arith.constant 0 : index
    %299 = vector.load %arg3[%c2_132, %c0_133, %c0_134] : memref<3x32x128xf32, #tpu.memory_space<vmem>>, vector<1x32x128xf32>
    %300 = vector.shape_cast %299 : vector<1x32x128xf32> to vector<32x128xf32>
    %cst_135 = arith.constant dense<0.000000e+00> : vector<2x128xf32>
    %301 = tpu.matmul %245, %300, %cst_135 {dimension_numbers = #tpu.dot_dimension_numbers<[1], [0], [0], [1], [0, 0, 1, 1], [], []>} : vector<2x32xf32>, vector<32x128xf32>, vector<2x128xf32> -> vector<2x128xf32>
    %302 = arith.addf %298, %301 : vector<2x128xf32>
    %c1_136 = arith.constant 1 : index
    %c0_137 = arith.constant 0 : index
    %c0_138 = arith.constant 0 : index
    %303 = vector.load %arg5[%c1_136, %c0_137, %c0_138] : memref<2x1x128xf32, #tpu.memory_space<vmem>>, vector<1x1x128xf32>
    %304 = vector.shape_cast %303 : vector<1x1x128xf32> to vector<1x128xf32>
    %305 = vector.broadcast %304 : vector<1x128xf32> to vector<2x128xf32>
    %306 = arith.addf %302, %305 : vector<2x128xf32>
    %307 = vector.extract_strided_slice %306 {offsets = [0, 0], sizes = [2, 96], strides = [1, 1]} : vector<2x128xf32> to vector<2x96xf32>
    %308 = arith.negf %307 : vector<2x96xf32>
    %309 = math.exp %308 : vector<2x96xf32>
    %cst_139 = arith.constant 1.000000e+00 : f32
    %310 = vector.broadcast %cst_139 : f32 to vector<2x96xf32>
    %311 = arith.addf %310, %309 : vector<2x96xf32>
    %312 = arith.divf %310, %311 : vector<2x96xf32>
    %313 = vector.extract_strided_slice %306 {offsets = [0, 96], sizes = [2, 32], strides = [1, 1]} : vector<2x128xf32> to vector<2x32xf32>
    %314 = math.tanh %313 : vector<2x32xf32>
    %315 = vector.extract_strided_slice %312 {offsets = [0, 0], sizes = [2, 32], strides = [1, 1]} : vector<2x96xf32> to vector<2x32xf32>
    %316 = vector.extract_strided_slice %312 {offsets = [0, 32], sizes = [2, 32], strides = [1, 1]} : vector<2x96xf32> to vector<2x32xf32>
    %317 = vector.extract_strided_slice %312 {offsets = [0, 64], sizes = [2, 32], strides = [1, 1]} : vector<2x96xf32> to vector<2x32xf32>
    %318 = arith.mulf %316, %243 : vector<2x32xf32>
    %319 = arith.mulf %315, %314 : vector<2x32xf32>
    %320 = arith.addf %318, %319 : vector<2x32xf32>
    %321 = math.tanh %320 : vector<2x32xf32>
    %322 = arith.mulf %317, %321 : vector<2x32xf32>
    %c4_i32 = arith.constant 4 : i32
    %323 = arith.index_cast %c4_i32 : i32 to index
    %c0_140 = arith.constant 0 : index
    %c0_141 = arith.constant 0 : index
    %324 = vector.load %arg2[%323, %c0_140, %c0_141] : memref<8x2x128xf32, #tpu.memory_space<vmem>>, vector<1x2x128xf32>
    %325 = vector.shape_cast %324 : vector<1x2x128xf32> to vector<2x128xf32>
    %c0_142 = arith.constant 0 : index
    %c0_143 = arith.constant 0 : index
    %c0_144 = arith.constant 0 : index
    %326 = vector.load %arg3[%c0_142, %c0_143, %c0_144] : memref<3x32x128xf32, #tpu.memory_space<vmem>>, vector<1x32x128xf32>
    %327 = vector.shape_cast %326 : vector<1x32x128xf32> to vector<32x128xf32>
    %cst_145 = arith.constant dense<0.000000e+00> : vector<2x128xf32>
    %328 = tpu.matmul %268, %327, %cst_145 {dimension_numbers = #tpu.dot_dimension_numbers<[1], [0], [0], [1], [0, 0, 1, 1], [], []>} : vector<2x32xf32>, vector<32x128xf32>, vector<2x128xf32> -> vector<2x128xf32>
    %329 = arith.addf %325, %328 : vector<2x128xf32>
    %330 = vector.extract_strided_slice %329 {offsets = [0, 0], sizes = [2, 96], strides = [1, 1]} : vector<2x128xf32> to vector<2x96xf32>
    %331 = arith.negf %330 : vector<2x96xf32>
    %332 = math.exp %331 : vector<2x96xf32>
    %cst_146 = arith.constant 1.000000e+00 : f32
    %333 = vector.broadcast %cst_146 : f32 to vector<2x96xf32>
    %334 = arith.addf %333, %332 : vector<2x96xf32>
    %335 = arith.divf %333, %334 : vector<2x96xf32>
    %336 = vector.extract_strided_slice %329 {offsets = [0, 96], sizes = [2, 32], strides = [1, 1]} : vector<2x128xf32> to vector<2x32xf32>
    %337 = math.tanh %336 : vector<2x32xf32>
    %338 = vector.extract_strided_slice %335 {offsets = [0, 0], sizes = [2, 32], strides = [1, 1]} : vector<2x96xf32> to vector<2x32xf32>
    %339 = vector.extract_strided_slice %335 {offsets = [0, 32], sizes = [2, 32], strides = [1, 1]} : vector<2x96xf32> to vector<2x32xf32>
    %340 = vector.extract_strided_slice %335 {offsets = [0, 64], sizes = [2, 32], strides = [1, 1]} : vector<2x96xf32> to vector<2x32xf32>
    %341 = arith.mulf %339, %266 : vector<2x32xf32>
    %342 = arith.mulf %338, %337 : vector<2x32xf32>
    %343 = arith.addf %341, %342 : vector<2x32xf32>
    %344 = math.tanh %343 : vector<2x32xf32>
    %345 = arith.mulf %340, %344 : vector<2x32xf32>
    %c0_147 = arith.constant 0 : index
    %c0_148 = arith.constant 0 : index
    %c0_149 = arith.constant 0 : index
    %346 = vector.load %arg4[%c0_147, %c0_148, %c0_149] : memref<2x32x128xf32, #tpu.memory_space<vmem>>, vector<1x32x128xf32>
    %347 = vector.shape_cast %346 : vector<1x32x128xf32> to vector<32x128xf32>
    %cst_150 = arith.constant dense<0.000000e+00> : vector<2x128xf32>
    %348 = tpu.matmul %345, %347, %cst_150 {dimension_numbers = #tpu.dot_dimension_numbers<[1], [0], [0], [1], [0, 0, 1, 1], [], []>} : vector<2x32xf32>, vector<32x128xf32>, vector<2x128xf32> -> vector<2x128xf32>
    %c1_151 = arith.constant 1 : index
    %c0_152 = arith.constant 0 : index
    %c0_153 = arith.constant 0 : index
    %349 = vector.load %arg3[%c1_151, %c0_152, %c0_153] : memref<3x32x128xf32, #tpu.memory_space<vmem>>, vector<1x32x128xf32>
    %350 = vector.shape_cast %349 : vector<1x32x128xf32> to vector<32x128xf32>
    %cst_154 = arith.constant dense<0.000000e+00> : vector<2x128xf32>
    %351 = tpu.matmul %295, %350, %cst_154 {dimension_numbers = #tpu.dot_dimension_numbers<[1], [0], [0], [1], [0, 0, 1, 1], [], []>} : vector<2x32xf32>, vector<32x128xf32>, vector<2x128xf32> -> vector<2x128xf32>
    %352 = arith.addf %348, %351 : vector<2x128xf32>
    %c0_155 = arith.constant 0 : index
    %c0_156 = arith.constant 0 : index
    %c0_157 = arith.constant 0 : index
    %353 = vector.load %arg5[%c0_155, %c0_156, %c0_157] : memref<2x1x128xf32, #tpu.memory_space<vmem>>, vector<1x1x128xf32>
    %354 = vector.shape_cast %353 : vector<1x1x128xf32> to vector<1x128xf32>
    %355 = vector.broadcast %354 : vector<1x128xf32> to vector<2x128xf32>
    %356 = arith.addf %352, %355 : vector<2x128xf32>
    %357 = vector.extract_strided_slice %356 {offsets = [0, 0], sizes = [2, 96], strides = [1, 1]} : vector<2x128xf32> to vector<2x96xf32>
    %358 = arith.negf %357 : vector<2x96xf32>
    %359 = math.exp %358 : vector<2x96xf32>
    %cst_158 = arith.constant 1.000000e+00 : f32
    %360 = vector.broadcast %cst_158 : f32 to vector<2x96xf32>
    %361 = arith.addf %360, %359 : vector<2x96xf32>
    %362 = arith.divf %360, %361 : vector<2x96xf32>
    %363 = vector.extract_strided_slice %356 {offsets = [0, 96], sizes = [2, 32], strides = [1, 1]} : vector<2x128xf32> to vector<2x32xf32>
    %364 = math.tanh %363 : vector<2x32xf32>
    %365 = vector.extract_strided_slice %362 {offsets = [0, 0], sizes = [2, 32], strides = [1, 1]} : vector<2x96xf32> to vector<2x32xf32>
    %366 = vector.extract_strided_slice %362 {offsets = [0, 32], sizes = [2, 32], strides = [1, 1]} : vector<2x96xf32> to vector<2x32xf32>
    %367 = vector.extract_strided_slice %362 {offsets = [0, 64], sizes = [2, 32], strides = [1, 1]} : vector<2x96xf32> to vector<2x32xf32>
    %368 = arith.mulf %366, %293 : vector<2x32xf32>
    %369 = arith.mulf %365, %364 : vector<2x32xf32>
    %370 = arith.addf %368, %369 : vector<2x32xf32>
    %371 = math.tanh %370 : vector<2x32xf32>
    %372 = arith.mulf %367, %371 : vector<2x32xf32>
    %c1_159 = arith.constant 1 : index
    %c0_160 = arith.constant 0 : index
    %c0_161 = arith.constant 0 : index
    %373 = vector.load %arg4[%c1_159, %c0_160, %c0_161] : memref<2x32x128xf32, #tpu.memory_space<vmem>>, vector<1x32x128xf32>
    %374 = vector.shape_cast %373 : vector<1x32x128xf32> to vector<32x128xf32>
    %cst_162 = arith.constant dense<0.000000e+00> : vector<2x128xf32>
    %375 = tpu.matmul %372, %374, %cst_162 {dimension_numbers = #tpu.dot_dimension_numbers<[1], [0], [0], [1], [0, 0, 1, 1], [], []>} : vector<2x32xf32>, vector<32x128xf32>, vector<2x128xf32> -> vector<2x128xf32>
    %c2_163 = arith.constant 2 : index
    %c0_164 = arith.constant 0 : index
    %c0_165 = arith.constant 0 : index
    %376 = vector.load %arg3[%c2_163, %c0_164, %c0_165] : memref<3x32x128xf32, #tpu.memory_space<vmem>>, vector<1x32x128xf32>
    %377 = vector.shape_cast %376 : vector<1x32x128xf32> to vector<32x128xf32>
    %cst_166 = arith.constant dense<0.000000e+00> : vector<2x128xf32>
    %378 = tpu.matmul %322, %377, %cst_166 {dimension_numbers = #tpu.dot_dimension_numbers<[1], [0], [0], [1], [0, 0, 1, 1], [], []>} : vector<2x32xf32>, vector<32x128xf32>, vector<2x128xf32> -> vector<2x128xf32>
    %379 = arith.addf %375, %378 : vector<2x128xf32>
    %c1_167 = arith.constant 1 : index
    %c0_168 = arith.constant 0 : index
    %c0_169 = arith.constant 0 : index
    %380 = vector.load %arg5[%c1_167, %c0_168, %c0_169] : memref<2x1x128xf32, #tpu.memory_space<vmem>>, vector<1x1x128xf32>
    %381 = vector.shape_cast %380 : vector<1x1x128xf32> to vector<1x128xf32>
    %382 = vector.broadcast %381 : vector<1x128xf32> to vector<2x128xf32>
    %383 = arith.addf %379, %382 : vector<2x128xf32>
    %384 = vector.extract_strided_slice %383 {offsets = [0, 0], sizes = [2, 96], strides = [1, 1]} : vector<2x128xf32> to vector<2x96xf32>
    %385 = arith.negf %384 : vector<2x96xf32>
    %386 = math.exp %385 : vector<2x96xf32>
    %cst_170 = arith.constant 1.000000e+00 : f32
    %387 = vector.broadcast %cst_170 : f32 to vector<2x96xf32>
    %388 = arith.addf %387, %386 : vector<2x96xf32>
    %389 = arith.divf %387, %388 : vector<2x96xf32>
    %390 = vector.extract_strided_slice %383 {offsets = [0, 96], sizes = [2, 32], strides = [1, 1]} : vector<2x128xf32> to vector<2x32xf32>
    %391 = math.tanh %390 : vector<2x32xf32>
    %392 = vector.extract_strided_slice %389 {offsets = [0, 0], sizes = [2, 32], strides = [1, 1]} : vector<2x96xf32> to vector<2x32xf32>
    %393 = vector.extract_strided_slice %389 {offsets = [0, 32], sizes = [2, 32], strides = [1, 1]} : vector<2x96xf32> to vector<2x32xf32>
    %394 = vector.extract_strided_slice %389 {offsets = [0, 64], sizes = [2, 32], strides = [1, 1]} : vector<2x96xf32> to vector<2x32xf32>
    %395 = arith.mulf %393, %320 : vector<2x32xf32>
    %396 = arith.mulf %392, %391 : vector<2x32xf32>
    %397 = arith.addf %395, %396 : vector<2x32xf32>
    %398 = math.tanh %397 : vector<2x32xf32>
    %399 = arith.mulf %394, %398 : vector<2x32xf32>
    %c5_i32 = arith.constant 5 : i32
    %400 = arith.index_cast %c5_i32 : i32 to index
    %c0_171 = arith.constant 0 : index
    %c0_172 = arith.constant 0 : index
    %401 = vector.load %arg2[%400, %c0_171, %c0_172] : memref<8x2x128xf32, #tpu.memory_space<vmem>>, vector<1x2x128xf32>
    %402 = vector.shape_cast %401 : vector<1x2x128xf32> to vector<2x128xf32>
    %c0_173 = arith.constant 0 : index
    %c0_174 = arith.constant 0 : index
    %c0_175 = arith.constant 0 : index
    %403 = vector.load %arg3[%c0_173, %c0_174, %c0_175] : memref<3x32x128xf32, #tpu.memory_space<vmem>>, vector<1x32x128xf32>
    %404 = vector.shape_cast %403 : vector<1x32x128xf32> to vector<32x128xf32>
    %cst_176 = arith.constant dense<0.000000e+00> : vector<2x128xf32>
    %405 = tpu.matmul %345, %404, %cst_176 {dimension_numbers = #tpu.dot_dimension_numbers<[1], [0], [0], [1], [0, 0, 1, 1], [], []>} : vector<2x32xf32>, vector<32x128xf32>, vector<2x128xf32> -> vector<2x128xf32>
    %406 = arith.addf %402, %405 : vector<2x128xf32>
    %407 = vector.extract_strided_slice %406 {offsets = [0, 0], sizes = [2, 96], strides = [1, 1]} : vector<2x128xf32> to vector<2x96xf32>
    %408 = arith.negf %407 : vector<2x96xf32>
    %409 = math.exp %408 : vector<2x96xf32>
    %cst_177 = arith.constant 1.000000e+00 : f32
    %410 = vector.broadcast %cst_177 : f32 to vector<2x96xf32>
    %411 = arith.addf %410, %409 : vector<2x96xf32>
    %412 = arith.divf %410, %411 : vector<2x96xf32>
    %413 = vector.extract_strided_slice %406 {offsets = [0, 96], sizes = [2, 32], strides = [1, 1]} : vector<2x128xf32> to vector<2x32xf32>
    %414 = math.tanh %413 : vector<2x32xf32>
    %415 = vector.extract_strided_slice %412 {offsets = [0, 0], sizes = [2, 32], strides = [1, 1]} : vector<2x96xf32> to vector<2x32xf32>
    %416 = vector.extract_strided_slice %412 {offsets = [0, 32], sizes = [2, 32], strides = [1, 1]} : vector<2x96xf32> to vector<2x32xf32>
    %417 = vector.extract_strided_slice %412 {offsets = [0, 64], sizes = [2, 32], strides = [1, 1]} : vector<2x96xf32> to vector<2x32xf32>
    %418 = arith.mulf %416, %343 : vector<2x32xf32>
    %419 = arith.mulf %415, %414 : vector<2x32xf32>
    %420 = arith.addf %418, %419 : vector<2x32xf32>
    %421 = math.tanh %420 : vector<2x32xf32>
    %422 = arith.mulf %417, %421 : vector<2x32xf32>
    %c0_178 = arith.constant 0 : index
    %c0_179 = arith.constant 0 : index
    %c0_180 = arith.constant 0 : index
    %423 = vector.load %arg4[%c0_178, %c0_179, %c0_180] : memref<2x32x128xf32, #tpu.memory_space<vmem>>, vector<1x32x128xf32>
    %424 = vector.shape_cast %423 : vector<1x32x128xf32> to vector<32x128xf32>
    %cst_181 = arith.constant dense<0.000000e+00> : vector<2x128xf32>
    %425 = tpu.matmul %422, %424, %cst_181 {dimension_numbers = #tpu.dot_dimension_numbers<[1], [0], [0], [1], [0, 0, 1, 1], [], []>} : vector<2x32xf32>, vector<32x128xf32>, vector<2x128xf32> -> vector<2x128xf32>
    %c1_182 = arith.constant 1 : index
    %c0_183 = arith.constant 0 : index
    %c0_184 = arith.constant 0 : index
    %426 = vector.load %arg3[%c1_182, %c0_183, %c0_184] : memref<3x32x128xf32, #tpu.memory_space<vmem>>, vector<1x32x128xf32>
    %427 = vector.shape_cast %426 : vector<1x32x128xf32> to vector<32x128xf32>
    %cst_185 = arith.constant dense<0.000000e+00> : vector<2x128xf32>
    %428 = tpu.matmul %372, %427, %cst_185 {dimension_numbers = #tpu.dot_dimension_numbers<[1], [0], [0], [1], [0, 0, 1, 1], [], []>} : vector<2x32xf32>, vector<32x128xf32>, vector<2x128xf32> -> vector<2x128xf32>
    %429 = arith.addf %425, %428 : vector<2x128xf32>
    %c0_186 = arith.constant 0 : index
    %c0_187 = arith.constant 0 : index
    %c0_188 = arith.constant 0 : index
    %430 = vector.load %arg5[%c0_186, %c0_187, %c0_188] : memref<2x1x128xf32, #tpu.memory_space<vmem>>, vector<1x1x128xf32>
    %431 = vector.shape_cast %430 : vector<1x1x128xf32> to vector<1x128xf32>
    %432 = vector.broadcast %431 : vector<1x128xf32> to vector<2x128xf32>
    %433 = arith.addf %429, %432 : vector<2x128xf32>
    %434 = vector.extract_strided_slice %433 {offsets = [0, 0], sizes = [2, 96], strides = [1, 1]} : vector<2x128xf32> to vector<2x96xf32>
    %435 = arith.negf %434 : vector<2x96xf32>
    %436 = math.exp %435 : vector<2x96xf32>
    %cst_189 = arith.constant 1.000000e+00 : f32
    %437 = vector.broadcast %cst_189 : f32 to vector<2x96xf32>
    %438 = arith.addf %437, %436 : vector<2x96xf32>
    %439 = arith.divf %437, %438 : vector<2x96xf32>
    %440 = vector.extract_strided_slice %433 {offsets = [0, 96], sizes = [2, 32], strides = [1, 1]} : vector<2x128xf32> to vector<2x32xf32>
    %441 = math.tanh %440 : vector<2x32xf32>
    %442 = vector.extract_strided_slice %439 {offsets = [0, 0], sizes = [2, 32], strides = [1, 1]} : vector<2x96xf32> to vector<2x32xf32>
    %443 = vector.extract_strided_slice %439 {offsets = [0, 32], sizes = [2, 32], strides = [1, 1]} : vector<2x96xf32> to vector<2x32xf32>
    %444 = vector.extract_strided_slice %439 {offsets = [0, 64], sizes = [2, 32], strides = [1, 1]} : vector<2x96xf32> to vector<2x32xf32>
    %445 = arith.mulf %443, %370 : vector<2x32xf32>
    %446 = arith.mulf %442, %441 : vector<2x32xf32>
    %447 = arith.addf %445, %446 : vector<2x32xf32>
    %448 = math.tanh %447 : vector<2x32xf32>
    %449 = arith.mulf %444, %448 : vector<2x32xf32>
    %c1_190 = arith.constant 1 : index
    %c0_191 = arith.constant 0 : index
    %c0_192 = arith.constant 0 : index
    %450 = vector.load %arg4[%c1_190, %c0_191, %c0_192] : memref<2x32x128xf32, #tpu.memory_space<vmem>>, vector<1x32x128xf32>
    %451 = vector.shape_cast %450 : vector<1x32x128xf32> to vector<32x128xf32>
    %cst_193 = arith.constant dense<0.000000e+00> : vector<2x128xf32>
    %452 = tpu.matmul %449, %451, %cst_193 {dimension_numbers = #tpu.dot_dimension_numbers<[1], [0], [0], [1], [0, 0, 1, 1], [], []>} : vector<2x32xf32>, vector<32x128xf32>, vector<2x128xf32> -> vector<2x128xf32>
    %c2_194 = arith.constant 2 : index
    %c0_195 = arith.constant 0 : index
    %c0_196 = arith.constant 0 : index
    %453 = vector.load %arg3[%c2_194, %c0_195, %c0_196] : memref<3x32x128xf32, #tpu.memory_space<vmem>>, vector<1x32x128xf32>
    %454 = vector.shape_cast %453 : vector<1x32x128xf32> to vector<32x128xf32>
    %cst_197 = arith.constant dense<0.000000e+00> : vector<2x128xf32>
    %455 = tpu.matmul %399, %454, %cst_197 {dimension_numbers = #tpu.dot_dimension_numbers<[1], [0], [0], [1], [0, 0, 1, 1], [], []>} : vector<2x32xf32>, vector<32x128xf32>, vector<2x128xf32> -> vector<2x128xf32>
    %456 = arith.addf %452, %455 : vector<2x128xf32>
    %c1_198 = arith.constant 1 : index
    %c0_199 = arith.constant 0 : index
    %c0_200 = arith.constant 0 : index
    %457 = vector.load %arg5[%c1_198, %c0_199, %c0_200] : memref<2x1x128xf32, #tpu.memory_space<vmem>>, vector<1x1x128xf32>
    %458 = vector.shape_cast %457 : vector<1x1x128xf32> to vector<1x128xf32>
    %459 = vector.broadcast %458 : vector<1x128xf32> to vector<2x128xf32>
    %460 = arith.addf %456, %459 : vector<2x128xf32>
    %461 = vector.extract_strided_slice %460 {offsets = [0, 0], sizes = [2, 96], strides = [1, 1]} : vector<2x128xf32> to vector<2x96xf32>
    %462 = arith.negf %461 : vector<2x96xf32>
    %463 = math.exp %462 : vector<2x96xf32>
    %cst_201 = arith.constant 1.000000e+00 : f32
    %464 = vector.broadcast %cst_201 : f32 to vector<2x96xf32>
    %465 = arith.addf %464, %463 : vector<2x96xf32>
    %466 = arith.divf %464, %465 : vector<2x96xf32>
    %467 = vector.extract_strided_slice %460 {offsets = [0, 96], sizes = [2, 32], strides = [1, 1]} : vector<2x128xf32> to vector<2x32xf32>
    %468 = math.tanh %467 : vector<2x32xf32>
    %469 = vector.extract_strided_slice %466 {offsets = [0, 0], sizes = [2, 32], strides = [1, 1]} : vector<2x96xf32> to vector<2x32xf32>
    %470 = vector.extract_strided_slice %466 {offsets = [0, 32], sizes = [2, 32], strides = [1, 1]} : vector<2x96xf32> to vector<2x32xf32>
    %471 = vector.extract_strided_slice %466 {offsets = [0, 64], sizes = [2, 32], strides = [1, 1]} : vector<2x96xf32> to vector<2x32xf32>
    %472 = arith.mulf %470, %397 : vector<2x32xf32>
    %473 = arith.mulf %469, %468 : vector<2x32xf32>
    %474 = arith.addf %472, %473 : vector<2x32xf32>
    %475 = math.tanh %474 : vector<2x32xf32>
    %476 = arith.mulf %471, %475 : vector<2x32xf32>
    %c6_i32 = arith.constant 6 : i32
    %477 = arith.index_cast %c6_i32 : i32 to index
    %c0_202 = arith.constant 0 : index
    %c0_203 = arith.constant 0 : index
    %478 = vector.load %arg2[%477, %c0_202, %c0_203] : memref<8x2x128xf32, #tpu.memory_space<vmem>>, vector<1x2x128xf32>
    %479 = vector.shape_cast %478 : vector<1x2x128xf32> to vector<2x128xf32>
    %c0_204 = arith.constant 0 : index
    %c0_205 = arith.constant 0 : index
    %c0_206 = arith.constant 0 : index
    %480 = vector.load %arg3[%c0_204, %c0_205, %c0_206] : memref<3x32x128xf32, #tpu.memory_space<vmem>>, vector<1x32x128xf32>
    %481 = vector.shape_cast %480 : vector<1x32x128xf32> to vector<32x128xf32>
    %cst_207 = arith.constant dense<0.000000e+00> : vector<2x128xf32>
    %482 = tpu.matmul %422, %481, %cst_207 {dimension_numbers = #tpu.dot_dimension_numbers<[1], [0], [0], [1], [0, 0, 1, 1], [], []>} : vector<2x32xf32>, vector<32x128xf32>, vector<2x128xf32> -> vector<2x128xf32>
    %483 = arith.addf %479, %482 : vector<2x128xf32>
    %484 = vector.extract_strided_slice %483 {offsets = [0, 0], sizes = [2, 96], strides = [1, 1]} : vector<2x128xf32> to vector<2x96xf32>
    %485 = arith.negf %484 : vector<2x96xf32>
    %486 = math.exp %485 : vector<2x96xf32>
    %cst_208 = arith.constant 1.000000e+00 : f32
    %487 = vector.broadcast %cst_208 : f32 to vector<2x96xf32>
    %488 = arith.addf %487, %486 : vector<2x96xf32>
    %489 = arith.divf %487, %488 : vector<2x96xf32>
    %490 = vector.extract_strided_slice %483 {offsets = [0, 96], sizes = [2, 32], strides = [1, 1]} : vector<2x128xf32> to vector<2x32xf32>
    %491 = math.tanh %490 : vector<2x32xf32>
    %492 = vector.extract_strided_slice %489 {offsets = [0, 0], sizes = [2, 32], strides = [1, 1]} : vector<2x96xf32> to vector<2x32xf32>
    %493 = vector.extract_strided_slice %489 {offsets = [0, 32], sizes = [2, 32], strides = [1, 1]} : vector<2x96xf32> to vector<2x32xf32>
    %494 = vector.extract_strided_slice %489 {offsets = [0, 64], sizes = [2, 32], strides = [1, 1]} : vector<2x96xf32> to vector<2x32xf32>
    %495 = arith.mulf %493, %420 : vector<2x32xf32>
    %496 = arith.mulf %492, %491 : vector<2x32xf32>
    %497 = arith.addf %495, %496 : vector<2x32xf32>
    %498 = math.tanh %497 : vector<2x32xf32>
    %499 = arith.mulf %494, %498 : vector<2x32xf32>
    %c0_209 = arith.constant 0 : index
    %c0_210 = arith.constant 0 : index
    %c0_211 = arith.constant 0 : index
    %500 = vector.load %arg4[%c0_209, %c0_210, %c0_211] : memref<2x32x128xf32, #tpu.memory_space<vmem>>, vector<1x32x128xf32>
    %501 = vector.shape_cast %500 : vector<1x32x128xf32> to vector<32x128xf32>
    %cst_212 = arith.constant dense<0.000000e+00> : vector<2x128xf32>
    %502 = tpu.matmul %499, %501, %cst_212 {dimension_numbers = #tpu.dot_dimension_numbers<[1], [0], [0], [1], [0, 0, 1, 1], [], []>} : vector<2x32xf32>, vector<32x128xf32>, vector<2x128xf32> -> vector<2x128xf32>
    %c1_213 = arith.constant 1 : index
    %c0_214 = arith.constant 0 : index
    %c0_215 = arith.constant 0 : index
    %503 = vector.load %arg3[%c1_213, %c0_214, %c0_215] : memref<3x32x128xf32, #tpu.memory_space<vmem>>, vector<1x32x128xf32>
    %504 = vector.shape_cast %503 : vector<1x32x128xf32> to vector<32x128xf32>
    %cst_216 = arith.constant dense<0.000000e+00> : vector<2x128xf32>
    %505 = tpu.matmul %449, %504, %cst_216 {dimension_numbers = #tpu.dot_dimension_numbers<[1], [0], [0], [1], [0, 0, 1, 1], [], []>} : vector<2x32xf32>, vector<32x128xf32>, vector<2x128xf32> -> vector<2x128xf32>
    %506 = arith.addf %502, %505 : vector<2x128xf32>
    %c0_217 = arith.constant 0 : index
    %c0_218 = arith.constant 0 : index
    %c0_219 = arith.constant 0 : index
    %507 = vector.load %arg5[%c0_217, %c0_218, %c0_219] : memref<2x1x128xf32, #tpu.memory_space<vmem>>, vector<1x1x128xf32>
    %508 = vector.shape_cast %507 : vector<1x1x128xf32> to vector<1x128xf32>
    %509 = vector.broadcast %508 : vector<1x128xf32> to vector<2x128xf32>
    %510 = arith.addf %506, %509 : vector<2x128xf32>
    %511 = vector.extract_strided_slice %510 {offsets = [0, 0], sizes = [2, 96], strides = [1, 1]} : vector<2x128xf32> to vector<2x96xf32>
    %512 = arith.negf %511 : vector<2x96xf32>
    %513 = math.exp %512 : vector<2x96xf32>
    %cst_220 = arith.constant 1.000000e+00 : f32
    %514 = vector.broadcast %cst_220 : f32 to vector<2x96xf32>
    %515 = arith.addf %514, %513 : vector<2x96xf32>
    %516 = arith.divf %514, %515 : vector<2x96xf32>
    %517 = vector.extract_strided_slice %510 {offsets = [0, 96], sizes = [2, 32], strides = [1, 1]} : vector<2x128xf32> to vector<2x32xf32>
    %518 = math.tanh %517 : vector<2x32xf32>
    %519 = vector.extract_strided_slice %516 {offsets = [0, 0], sizes = [2, 32], strides = [1, 1]} : vector<2x96xf32> to vector<2x32xf32>
    %520 = vector.extract_strided_slice %516 {offsets = [0, 32], sizes = [2, 32], strides = [1, 1]} : vector<2x96xf32> to vector<2x32xf32>
    %521 = vector.extract_strided_slice %516 {offsets = [0, 64], sizes = [2, 32], strides = [1, 1]} : vector<2x96xf32> to vector<2x32xf32>
    %522 = arith.mulf %520, %447 : vector<2x32xf32>
    %523 = arith.mulf %519, %518 : vector<2x32xf32>
    %524 = arith.addf %522, %523 : vector<2x32xf32>
    %525 = math.tanh %524 : vector<2x32xf32>
    %526 = arith.mulf %521, %525 : vector<2x32xf32>
    %c1_221 = arith.constant 1 : index
    %c0_222 = arith.constant 0 : index
    %c0_223 = arith.constant 0 : index
    %527 = vector.load %arg4[%c1_221, %c0_222, %c0_223] : memref<2x32x128xf32, #tpu.memory_space<vmem>>, vector<1x32x128xf32>
    %528 = vector.shape_cast %527 : vector<1x32x128xf32> to vector<32x128xf32>
    %cst_224 = arith.constant dense<0.000000e+00> : vector<2x128xf32>
    %529 = tpu.matmul %526, %528, %cst_224 {dimension_numbers = #tpu.dot_dimension_numbers<[1], [0], [0], [1], [0, 0, 1, 1], [], []>} : vector<2x32xf32>, vector<32x128xf32>, vector<2x128xf32> -> vector<2x128xf32>
    %c2_225 = arith.constant 2 : index
    %c0_226 = arith.constant 0 : index
    %c0_227 = arith.constant 0 : index
    %530 = vector.load %arg3[%c2_225, %c0_226, %c0_227] : memref<3x32x128xf32, #tpu.memory_space<vmem>>, vector<1x32x128xf32>
    %531 = vector.shape_cast %530 : vector<1x32x128xf32> to vector<32x128xf32>
    %cst_228 = arith.constant dense<0.000000e+00> : vector<2x128xf32>
    %532 = tpu.matmul %476, %531, %cst_228 {dimension_numbers = #tpu.dot_dimension_numbers<[1], [0], [0], [1], [0, 0, 1, 1], [], []>} : vector<2x32xf32>, vector<32x128xf32>, vector<2x128xf32> -> vector<2x128xf32>
    %533 = arith.addf %529, %532 : vector<2x128xf32>
    %c1_229 = arith.constant 1 : index
    %c0_230 = arith.constant 0 : index
    %c0_231 = arith.constant 0 : index
    %534 = vector.load %arg5[%c1_229, %c0_230, %c0_231] : memref<2x1x128xf32, #tpu.memory_space<vmem>>, vector<1x1x128xf32>
    %535 = vector.shape_cast %534 : vector<1x1x128xf32> to vector<1x128xf32>
    %536 = vector.broadcast %535 : vector<1x128xf32> to vector<2x128xf32>
    %537 = arith.addf %533, %536 : vector<2x128xf32>
    %538 = vector.extract_strided_slice %537 {offsets = [0, 0], sizes = [2, 96], strides = [1, 1]} : vector<2x128xf32> to vector<2x96xf32>
    %539 = arith.negf %538 : vector<2x96xf32>
    %540 = math.exp %539 : vector<2x96xf32>
    %cst_232 = arith.constant 1.000000e+00 : f32
    %541 = vector.broadcast %cst_232 : f32 to vector<2x96xf32>
    %542 = arith.addf %541, %540 : vector<2x96xf32>
    %543 = arith.divf %541, %542 : vector<2x96xf32>
    %544 = vector.extract_strided_slice %537 {offsets = [0, 96], sizes = [2, 32], strides = [1, 1]} : vector<2x128xf32> to vector<2x32xf32>
    %545 = math.tanh %544 : vector<2x32xf32>
    %546 = vector.extract_strided_slice %543 {offsets = [0, 0], sizes = [2, 32], strides = [1, 1]} : vector<2x96xf32> to vector<2x32xf32>
    %547 = vector.extract_strided_slice %543 {offsets = [0, 32], sizes = [2, 32], strides = [1, 1]} : vector<2x96xf32> to vector<2x32xf32>
    %548 = vector.extract_strided_slice %543 {offsets = [0, 64], sizes = [2, 32], strides = [1, 1]} : vector<2x96xf32> to vector<2x32xf32>
    %549 = arith.mulf %547, %474 : vector<2x32xf32>
    %550 = arith.mulf %546, %545 : vector<2x32xf32>
    %551 = arith.addf %549, %550 : vector<2x32xf32>
    %552 = math.tanh %551 : vector<2x32xf32>
    %553 = arith.mulf %548, %552 : vector<2x32xf32>
    %c7_i32 = arith.constant 7 : i32
    %554 = arith.index_cast %c7_i32 : i32 to index
    %c0_233 = arith.constant 0 : index
    %c0_234 = arith.constant 0 : index
    %555 = vector.load %arg2[%554, %c0_233, %c0_234] : memref<8x2x128xf32, #tpu.memory_space<vmem>>, vector<1x2x128xf32>
    %556 = vector.shape_cast %555 : vector<1x2x128xf32> to vector<2x128xf32>
    %c0_235 = arith.constant 0 : index
    %c0_236 = arith.constant 0 : index
    %c0_237 = arith.constant 0 : index
    %557 = vector.load %arg3[%c0_235, %c0_236, %c0_237] : memref<3x32x128xf32, #tpu.memory_space<vmem>>, vector<1x32x128xf32>
    %558 = vector.shape_cast %557 : vector<1x32x128xf32> to vector<32x128xf32>
    %cst_238 = arith.constant dense<0.000000e+00> : vector<2x128xf32>
    %559 = tpu.matmul %499, %558, %cst_238 {dimension_numbers = #tpu.dot_dimension_numbers<[1], [0], [0], [1], [0, 0, 1, 1], [], []>} : vector<2x32xf32>, vector<32x128xf32>, vector<2x128xf32> -> vector<2x128xf32>
    %560 = arith.addf %556, %559 : vector<2x128xf32>
    %561 = vector.extract_strided_slice %560 {offsets = [0, 0], sizes = [2, 96], strides = [1, 1]} : vector<2x128xf32> to vector<2x96xf32>
    %562 = arith.negf %561 : vector<2x96xf32>
    %563 = math.exp %562 : vector<2x96xf32>
    %cst_239 = arith.constant 1.000000e+00 : f32
    %564 = vector.broadcast %cst_239 : f32 to vector<2x96xf32>
    %565 = arith.addf %564, %563 : vector<2x96xf32>
    %566 = arith.divf %564, %565 : vector<2x96xf32>
    %567 = vector.extract_strided_slice %560 {offsets = [0, 96], sizes = [2, 32], strides = [1, 1]} : vector<2x128xf32> to vector<2x32xf32>
    %568 = math.tanh %567 : vector<2x32xf32>
    %569 = vector.extract_strided_slice %566 {offsets = [0, 0], sizes = [2, 32], strides = [1, 1]} : vector<2x96xf32> to vector<2x32xf32>
    %570 = vector.extract_strided_slice %566 {offsets = [0, 32], sizes = [2, 32], strides = [1, 1]} : vector<2x96xf32> to vector<2x32xf32>
    %571 = vector.extract_strided_slice %566 {offsets = [0, 64], sizes = [2, 32], strides = [1, 1]} : vector<2x96xf32> to vector<2x32xf32>
    %572 = arith.mulf %570, %497 : vector<2x32xf32>
    %573 = arith.mulf %569, %568 : vector<2x32xf32>
    %574 = arith.addf %572, %573 : vector<2x32xf32>
    %575 = math.tanh %574 : vector<2x32xf32>
    %576 = arith.mulf %571, %575 : vector<2x32xf32>
    %c0_240 = arith.constant 0 : index
    %c0_241 = arith.constant 0 : index
    %c0_242 = arith.constant 0 : index
    %577 = vector.load %arg4[%c0_240, %c0_241, %c0_242] : memref<2x32x128xf32, #tpu.memory_space<vmem>>, vector<1x32x128xf32>
    %578 = vector.shape_cast %577 : vector<1x32x128xf32> to vector<32x128xf32>
    %cst_243 = arith.constant dense<0.000000e+00> : vector<2x128xf32>
    %579 = tpu.matmul %576, %578, %cst_243 {dimension_numbers = #tpu.dot_dimension_numbers<[1], [0], [0], [1], [0, 0, 1, 1], [], []>} : vector<2x32xf32>, vector<32x128xf32>, vector<2x128xf32> -> vector<2x128xf32>
    %c1_244 = arith.constant 1 : index
    %c0_245 = arith.constant 0 : index
    %c0_246 = arith.constant 0 : index
    %580 = vector.load %arg3[%c1_244, %c0_245, %c0_246] : memref<3x32x128xf32, #tpu.memory_space<vmem>>, vector<1x32x128xf32>
    %581 = vector.shape_cast %580 : vector<1x32x128xf32> to vector<32x128xf32>
    %cst_247 = arith.constant dense<0.000000e+00> : vector<2x128xf32>
    %582 = tpu.matmul %526, %581, %cst_247 {dimension_numbers = #tpu.dot_dimension_numbers<[1], [0], [0], [1], [0, 0, 1, 1], [], []>} : vector<2x32xf32>, vector<32x128xf32>, vector<2x128xf32> -> vector<2x128xf32>
    %583 = arith.addf %579, %582 : vector<2x128xf32>
    %c0_248 = arith.constant 0 : index
    %c0_249 = arith.constant 0 : index
    %c0_250 = arith.constant 0 : index
    %584 = vector.load %arg5[%c0_248, %c0_249, %c0_250] : memref<2x1x128xf32, #tpu.memory_space<vmem>>, vector<1x1x128xf32>
    %585 = vector.shape_cast %584 : vector<1x1x128xf32> to vector<1x128xf32>
    %586 = vector.broadcast %585 : vector<1x128xf32> to vector<2x128xf32>
    %587 = arith.addf %583, %586 : vector<2x128xf32>
    %588 = vector.extract_strided_slice %587 {offsets = [0, 0], sizes = [2, 96], strides = [1, 1]} : vector<2x128xf32> to vector<2x96xf32>
    %589 = arith.negf %588 : vector<2x96xf32>
    %590 = math.exp %589 : vector<2x96xf32>
    %cst_251 = arith.constant 1.000000e+00 : f32
    %591 = vector.broadcast %cst_251 : f32 to vector<2x96xf32>
    %592 = arith.addf %591, %590 : vector<2x96xf32>
    %593 = arith.divf %591, %592 : vector<2x96xf32>
    %594 = vector.extract_strided_slice %587 {offsets = [0, 96], sizes = [2, 32], strides = [1, 1]} : vector<2x128xf32> to vector<2x32xf32>
    %595 = math.tanh %594 : vector<2x32xf32>
    %596 = vector.extract_strided_slice %593 {offsets = [0, 0], sizes = [2, 32], strides = [1, 1]} : vector<2x96xf32> to vector<2x32xf32>
    %597 = vector.extract_strided_slice %593 {offsets = [0, 32], sizes = [2, 32], strides = [1, 1]} : vector<2x96xf32> to vector<2x32xf32>
    %598 = vector.extract_strided_slice %593 {offsets = [0, 64], sizes = [2, 32], strides = [1, 1]} : vector<2x96xf32> to vector<2x32xf32>
    %599 = arith.mulf %597, %524 : vector<2x32xf32>
    %600 = arith.mulf %596, %595 : vector<2x32xf32>
    %601 = arith.addf %599, %600 : vector<2x32xf32>
    %602 = math.tanh %601 : vector<2x32xf32>
    %603 = arith.mulf %598, %602 : vector<2x32xf32>
    %c1_252 = arith.constant 1 : index
    %c0_253 = arith.constant 0 : index
    %c0_254 = arith.constant 0 : index
    %604 = vector.load %arg4[%c1_252, %c0_253, %c0_254] : memref<2x32x128xf32, #tpu.memory_space<vmem>>, vector<1x32x128xf32>
    %605 = vector.shape_cast %604 : vector<1x32x128xf32> to vector<32x128xf32>
    %cst_255 = arith.constant dense<0.000000e+00> : vector<2x128xf32>
    %606 = tpu.matmul %603, %605, %cst_255 {dimension_numbers = #tpu.dot_dimension_numbers<[1], [0], [0], [1], [0, 0, 1, 1], [], []>} : vector<2x32xf32>, vector<32x128xf32>, vector<2x128xf32> -> vector<2x128xf32>
    %c2_256 = arith.constant 2 : index
    %c0_257 = arith.constant 0 : index
    %c0_258 = arith.constant 0 : index
    %607 = vector.load %arg3[%c2_256, %c0_257, %c0_258] : memref<3x32x128xf32, #tpu.memory_space<vmem>>, vector<1x32x128xf32>
    %608 = vector.shape_cast %607 : vector<1x32x128xf32> to vector<32x128xf32>
    %cst_259 = arith.constant dense<0.000000e+00> : vector<2x128xf32>
    %609 = tpu.matmul %553, %608, %cst_259 {dimension_numbers = #tpu.dot_dimension_numbers<[1], [0], [0], [1], [0, 0, 1, 1], [], []>} : vector<2x32xf32>, vector<32x128xf32>, vector<2x128xf32> -> vector<2x128xf32>
    %610 = arith.addf %606, %609 : vector<2x128xf32>
    %c1_260 = arith.constant 1 : index
    %c0_261 = arith.constant 0 : index
    %c0_262 = arith.constant 0 : index
    %611 = vector.load %arg5[%c1_260, %c0_261, %c0_262] : memref<2x1x128xf32, #tpu.memory_space<vmem>>, vector<1x1x128xf32>
    %612 = vector.shape_cast %611 : vector<1x1x128xf32> to vector<1x128xf32>
    %613 = vector.broadcast %612 : vector<1x128xf32> to vector<2x128xf32>
    %614 = arith.addf %610, %613 : vector<2x128xf32>
    %615 = vector.extract_strided_slice %614 {offsets = [0, 0], sizes = [2, 96], strides = [1, 1]} : vector<2x128xf32> to vector<2x96xf32>
    %616 = arith.negf %615 : vector<2x96xf32>
    %617 = math.exp %616 : vector<2x96xf32>
    %cst_263 = arith.constant 1.000000e+00 : f32
    %618 = vector.broadcast %cst_263 : f32 to vector<2x96xf32>
    %619 = arith.addf %618, %617 : vector<2x96xf32>
    %620 = arith.divf %618, %619 : vector<2x96xf32>
    %621 = vector.extract_strided_slice %614 {offsets = [0, 96], sizes = [2, 32], strides = [1, 1]} : vector<2x128xf32> to vector<2x32xf32>
    %622 = math.tanh %621 : vector<2x32xf32>
    %623 = vector.extract_strided_slice %620 {offsets = [0, 0], sizes = [2, 32], strides = [1, 1]} : vector<2x96xf32> to vector<2x32xf32>
    %624 = vector.extract_strided_slice %620 {offsets = [0, 32], sizes = [2, 32], strides = [1, 1]} : vector<2x96xf32> to vector<2x32xf32>
    %625 = vector.extract_strided_slice %620 {offsets = [0, 64], sizes = [2, 32], strides = [1, 1]} : vector<2x96xf32> to vector<2x32xf32>
    %626 = arith.mulf %624, %551 : vector<2x32xf32>
    %627 = arith.mulf %623, %622 : vector<2x32xf32>
    %628 = arith.addf %626, %627 : vector<2x32xf32>
    %629 = math.tanh %628 : vector<2x32xf32>
    %630 = arith.mulf %625, %629 : vector<2x32xf32>
    %c8_i32 = arith.constant 8 : i32
    %c0_264 = arith.constant 0 : index
    %c0_265 = arith.constant 0 : index
    %c0_266 = arith.constant 0 : index
    %631 = vector.load %arg7[%c0_264, %c0_265, %c0_266] : memref<3x2x32xf32, #tpu.memory_space<vmem>>, vector<1x2x32xf32>
    %632 = vector.shape_cast %631 : vector<1x2x32xf32> to vector<2x32xf32>
    %633 = vector.shape_cast %576 : vector<2x32xf32> to vector<1x2x32xf32>
    tpu.vector_store %arg7[%c0_264, %c0_265, %c0_266], %633 {strides = array<i32>} : memref<3x2x32xf32, #tpu.memory_space<vmem>>, vector<1x2x32xf32>,
    %c0_267 = arith.constant 0 : index
    %c0_268 = arith.constant 0 : index
    %c0_269 = arith.constant 0 : index
    %634 = vector.load %arg8[%c0_267, %c0_268, %c0_269] : memref<3x2x32xf32, #tpu.memory_space<vmem>>, vector<1x2x32xf32>
    %635 = vector.shape_cast %634 : vector<1x2x32xf32> to vector<2x32xf32>
    %636 = vector.shape_cast %574 : vector<2x32xf32> to vector<1x2x32xf32>
    tpu.vector_store %arg8[%c0_267, %c0_268, %c0_269], %636 {strides = array<i32>} : memref<3x2x32xf32, #tpu.memory_space<vmem>>, vector<1x2x32xf32>,
    %c1_270 = arith.constant 1 : index
    %c0_271 = arith.constant 0 : index
    %c0_272 = arith.constant 0 : index
    %637 = vector.load %arg7[%c1_270, %c0_271, %c0_272] : memref<3x2x32xf32, #tpu.memory_space<vmem>>, vector<1x2x32xf32>
    %638 = vector.shape_cast %637 : vector<1x2x32xf32> to vector<2x32xf32>
    %639 = vector.shape_cast %603 : vector<2x32xf32> to vector<1x2x32xf32>
    tpu.vector_store %arg7[%c1_270, %c0_271, %c0_272], %639 {strides = array<i32>} : memref<3x2x32xf32, #tpu.memory_space<vmem>>, vector<1x2x32xf32>,
    %c1_273 = arith.constant 1 : index
    %c0_274 = arith.constant 0 : index
    %c0_275 = arith.constant 0 : index
    %640 = vector.load %arg8[%c1_273, %c0_274, %c0_275] : memref<3x2x32xf32, #tpu.memory_space<vmem>>, vector<1x2x32xf32>
    %641 = vector.shape_cast %640 : vector<1x2x32xf32> to vector<2x32xf32>
    %642 = vector.shape_cast %601 : vector<2x32xf32> to vector<1x2x32xf32>
    tpu.vector_store %arg8[%c1_273, %c0_274, %c0_275], %642 {strides = array<i32>} : memref<3x2x32xf32, #tpu.memory_space<vmem>>, vector<1x2x32xf32>,
    %c2_276 = arith.constant 2 : index
    %c0_277 = arith.constant 0 : index
    %c0_278 = arith.constant 0 : index
    %643 = vector.load %arg7[%c2_276, %c0_277, %c0_278] : memref<3x2x32xf32, #tpu.memory_space<vmem>>, vector<1x2x32xf32>
    %644 = vector.shape_cast %643 : vector<1x2x32xf32> to vector<2x32xf32>
    %645 = vector.shape_cast %630 : vector<2x32xf32> to vector<1x2x32xf32>
    tpu.vector_store %arg7[%c2_276, %c0_277, %c0_278], %645 {strides = array<i32>} : memref<3x2x32xf32, #tpu.memory_space<vmem>>, vector<1x2x32xf32>,
    %c2_279 = arith.constant 2 : index
    %c0_280 = arith.constant 0 : index
    %c0_281 = arith.constant 0 : index
    %646 = vector.load %arg8[%c2_279, %c0_280, %c0_281] : memref<3x2x32xf32, #tpu.memory_space<vmem>>, vector<1x2x32xf32>
    %647 = vector.shape_cast %646 : vector<1x2x32xf32> to vector<2x32xf32>
    %648 = vector.shape_cast %628 : vector<2x32xf32> to vector<1x2x32xf32>
    tpu.vector_store %arg8[%c2_279, %c0_280, %c0_281], %648 {strides = array<i32>} : memref<3x2x32xf32, #tpu.memory_space<vmem>>, vector<1x2x32xf32>,
    %c0_i32_282 = arith.constant 0 : i32
    %649 = arith.cmpi eq, %arg1, %c0_i32_282 : i32
    %650 = arith.extui %649 : i1 to i32
    %c0_i32_283 = arith.constant 0 : i32
    %651 = arith.cmpi ne, %650, %c0_i32_283 : i32
    scf.if %651 {
      %c0_284 = arith.constant 0 : index
      %c0_285 = arith.constant 0 : index
      %652 = vector.load %arg6[%c0_284, %c0_285] : memref<2x32xf32, #tpu.memory_space<vmem>>, vector<2x32xf32>
      tpu.vector_store %arg6[%c0_284, %c0_285], %630 {strides = array<i32>} : memref<2x32xf32, #tpu.memory_space<vmem>>, vector<2x32xf32>,
    } else {
    }
    return
  }
  func.func @transform_0(%arg0: i32, %arg1: i32) -> (i32, i32, i32) {
    %c0_i32 = arith.constant 0 : i32
    %c0_i32_0 = arith.constant 0 : i32
    return %arg1, %arg0, %c0_i32 : i32, i32, i32
  }
  func.func @transform_1(%arg0: i32, %arg1: i32) -> (i32, i32, i32) {
    %c0_i32 = arith.constant 0 : i32
    %c0_i32_0 = arith.constant 0 : i32
    %c0_i32_1 = arith.constant 0 : i32
    %c0_i32_2 = arith.constant 0 : i32
    return %c0_i32, %c0_i32_0, %c0_i32_1 : i32, i32, i32
  }
  func.func @transform_2(%arg0: i32, %arg1: i32) -> (i32, i32, i32) {
    %c0_i32 = arith.constant 0 : i32
    %c0_i32_0 = arith.constant 0 : i32
    %c0_i32_1 = arith.constant 0 : i32
    %c0_i32_2 = arith.constant 0 : i32
    return %c0_i32, %c0_i32_0, %c0_i32_1 : i32, i32, i32
  }
  func.func @transform_3(%arg0: i32, %arg1: i32) -> (i32, i32, i32) {
    %c0_i32 = arith.constant 0 : i32
    %c0_i32_0 = arith.constant 0 : i32
    %c0_i32_1 = arith.constant 0 : i32
    %c0_i32_2 = arith.constant 0 : i32
    return %c0_i32, %c0_i32_0, %c0_i32_1 : i32, i32, i32
  }
  func.func @transform_4(%arg0: i32, %arg1: i32) -> (i32, i32) {
    %c0_i32 = arith.constant 0 : i32
    %c0_i32_0 = arith.constant 0 : i32
    return %arg0, %c0_i32 : i32, i32
  }
}

</mosaic_0001>

<bundles_post_ra>
// kernel: tpu_custom_call.1
= control target key start
LH: loop header
LB: loop body
LE: loop exit
PB: predicated region body
PF: predicated region fallthrough
CT: control target
= control target key end

     0   :  { %9 = vsyncpa [#allocation5], 0  ;;  %s2978_s0 = inlined_call_operand.hbm [shape: f32[8,2,128], index: 0, kind: input, shape index: {}]   ;;  %s2979_s1 = inlined_call_operand.hbm [shape: f32[3,32,128], index: 1, kind: input, shape index: {}]   ;;  %s2980_s2 = inlined_call_operand.hbm [shape: f32[2,32,128], index: 2, kind: input, shape index: {}]   ;;  %s2981_s3 = inlined_call_operand.vmem [shape: f32[2,1,128], index: 3, kind: input, shape index: {}]   ;;  %s2982_s4 = inlined_call_operand.hbm [shape: f32[2,32], index: 4, kind: output, shape index: {}]  }
   0x1   :  { %10 = vsyncpa [#allocation8], 0  ;;  %s29_s17 = sshll.u32 %s2979_s1, 4  ;;  %s30_s17 = int_to_ptr.hbm [resolvable:$true] %s29_s17 }
   0x2   :  { %11 = vsyncpa [#allocation6], 0  ;;  %s2423_s18 = smov [#allocation7]   ;;  %s16_s22 = sshll.u32 %s2978_s0, 4  ;;  %s17_s22 = int_to_ptr.hbm [resolvable:$true] %s16_s22 }
   0x3   :  { %s31_s19 = sshll.u32 %s2423_s18, 4  ;;  %s2424_s23 = smov 128   ;;  %s32_s19 = int_to_ptr.vmem [resolvable:$true] %s31_s19 }
   0x4   :  { %s2425_s24 = smov 8   ;;  %s2426_s25 = smov [#allocation4]  }
   0x5   :  { %37 = dma.hbm_to_vmem [thread:$0]  %s30_s17, 1536, %s32_s19, [#allocation8], %s2424_s23, %s2424_s23, %s2425_s24  }
   0x6   :  { %s18_s26 = sshll.u32 %s2426_s25, 4  ;;  %s2427_s27 = smov 32   ;;  %s19_s26 = int_to_ptr.vmem [resolvable:$true] %s18_s26 }
   0x7   :  { %s2428_s28 = smov 2   ;;  %s42_s30 = sshll.u32 %s2980_s2, 4  ;;  %s43_s30 = int_to_ptr.hbm [resolvable:$true] %s42_s30 }
   0x8   :  { %24 = dma.hbm_to_vmem [thread:$0]  %s17_s22, 256, %s19_s26, [#allocation5], %s2427_s27, %s2427_s27, %s2428_s28  }
   0x9   :  { %s2429_s5 = smov [#allocation9]  }
   0xa   :  { %s44_s6 = sshll.u32 %s2429_s5, 4  ;;  %s45_s6 = int_to_ptr.vmem [resolvable:$true] %s44_s6 }
   0xb   :  { %50 = dma.hbm_to_vmem [thread:$0]  %s43_s30, 1024, %s45_s6, [#allocation8], %s2424_s23, %s2424_s23, %s2425_s24  }
   0xc   :  { %2417 = dma.done.wait [#allocation5], 256  }
   0xd   :  { %2418 = vsyncadd [#allocation5], 4294967040 }
   0xe   :  { %2419 = dma.done.wait [#allocation8], 2560  }
   0xf   :  { %2420 = vsyncadd [#allocation8], 4294964736  ;;  %vm69_vm0 = vcmask 254976   ;;  %v2430_v0 = vmov 0.0   ;;  %v2476_v1 = vld [vmem:[#allocation7 + $0x18] sm:$0xff]  ;;  %v2478_v2 = vld [vmem:[#allocation7 + $0x10] sm:$0xff] }
  0x10   :  { %70 = vst.msk [vmem:[#allocation2] sm:$0x3] %vm69_vm0, %v2430_v0  ;;  %107 = vmatpush.msra.mxu0 %v2476_v1  ;;  %v2481_v3 = vld [vmem:[#allocation7 + $0x8] sm:$0xff]  ;;  %v2484_v4 = vld [vmem:[#allocation7] sm:$0xff]  ;;  %vm91_vm1 = vcmask 261120   ;;  %v2496_v31 = vld [vmem:[#allocation7 + $0x38] sm:$0xff] }
  0x11   :  { %71 = vst.msk [vmem:[#allocation2 + $0x2] sm:$0x3] %vm69_vm0, %v2430_v0  ;;  %v86_v6 = vld [vmem:[#allocation4] sm:$0x3]  ;;  %181 = vmatpush.msra.mxu1 %v2496_v31  ;;  %v2501_v33 = vld [vmem:[#allocation9 + $0x18] sm:$0xff]  ;;  %v2503_v34 = vld [vmem:[#allocation7 + $0x28] sm:$0xff] }
  0x12   :  { %72 = vst.msk [vmem:[#allocation2 + $0x4] sm:$0x3] %vm69_vm0, %v2430_v0  ;;  %108 = vmatpush.msra.mxu0 %v2478_v2  ;;  %v2498_v32 = vld [vmem:[#allocation7 + $0x30] sm:$0xff]  ;;  %206 = vmatpush.msra.mxu2 %v2501_v33  ;;  %v2509_v36 = vld [vmem:[#allocation9 + $0x8] sm:$0xff]  ;;  %v2511_v37 = vld [vmem:[#allocation7 + $0x20] sm:$0xff]  ;;  %s2431_s0 = smov 64  }
  0x13   :  { %73 = vst.msk [vmem:[#allocation3] sm:$0x3] %vm69_vm0, %v2430_v0  ;;  %v2506_v35 = vld [vmem:[#allocation9 + $0x10] sm:$0xff]  ;;  %182 = vmatpush.msra.mxu1 %v2498_v32  ;;  %v2515_v39 = vld [vmem:[#allocation9] sm:$0xff]  ;;  %s2433_s14 = smov [#allocation10]   ;;  %s2018_s18 = sshll.u32 %s2982_s4, 4  ;;  %s2019_s18 = int_to_ptr.hbm [resolvable:$true] %s2018_s18 }
  0x14   :  { %74 = vst.msk [vmem:[#allocation3 + $0x2] sm:$0x3] %vm69_vm0, %v2430_v0  ;;  %109 = vmatpush.msra.mxu0 %v2481_v3  ;;  %207 = vmatpush.msra.mxu2 %v2506_v35  ;;  %v366_v45 = vld [vmem:[#allocation4 + $0x2] sm:$0x3]  ;;  %v2540_v48 = vld [vmem:[%s2981_s3] ss:$0 sm:$0xff] }
  0x15   :  { %75 = vst.msk [vmem:[#allocation3 + $0x4] sm:$0x3] %vm69_vm0, %v2430_v0  ;;  %183 = vmatpush.msra.mxu1 %v2503_v34  ;;  %s2016_s15 = sshll.u32 %s2433_s14, 4  ;;  %s2017_s15 = int_to_ptr.vmem [resolvable:$true] %s2016_s15 }
  0x16   :  { %110 = vmatpush.msra.mxu0 %v2484_v4  ;;  %208 = vmatpush.msra.mxu2 %v2509_v36 }
  0x17   :  { %v76_v5 = vld [vmem:[#allocation2] sm:$0x3]  ;;  %184 = vmatpush.msra.mxu1 %v2511_v37 }
  0x18   :  { %2029 = vmatmul.msk.f32.vlgmr.msra.gmra.mxu0 %vm91_vm1, %v76_v5  ;;  %v78_v38 = vld [vmem:[#allocation2 + $0x2] sm:$0x3]  ;;  %209 = vmatpush.msra.mxu2 %v2515_v39 }
  0x19   :  { %2031 = vmatmul.msk.f32.vlgmr.msra.gmra.mxu1 %vm91_vm1, %v78_v38 }
  0x1a   :  { %v81_v10 = vld [vmem:[#allocation3] sm:$0x3]  ;;  %379 = vmatpush.msrb.mxu1 %v2476_v1  ;;  %437 = vmatpush.msrb.mxu2 %v2496_v31 }
  0x1b   :  { %v83_v42 = vld [vmem:[#allocation3 + $0x2] sm:$0x3] }
  0x1c   :  { %380 = vmatpush.msrb.mxu1 %v2478_v2  ;;  %438 = vmatpush.msrb.mxu2 %v2498_v32 }
  0x1e   :  { %381 = vmatpush.msrb.mxu1 %v2481_v3  ;;  %439 = vmatpush.msrb.mxu2 %v2503_v34 }
  0x20   :  { %382 = vmatpush.msrb.mxu1 %v2484_v4  ;;  %440 = vmatpush.msrb.mxu2 %v2511_v37 }
  0x95   :  { %v112_v7 = vpop.f32.mrf.mxu0 }
  0x96   :  { %v115_v8 = vadd.f32 %v112_v7, %v86_v6  ;;  %v186_v44 = vpop.f32.mrf.mxu1 }
  0x98   :  { %2107 = vtanh.f32 %v115_v8  ;;  %v2030_v11 = vmul.f32 -1.442695, %v115_v8 }
  0x9a   :  { %2109 = vpow2.f32 %v2030_v11 }
  0x9e   :  { %v2108_v9 = vpop.eup %2107 }
  0x9f   :  { %142 = vrot.lane.b32.xlu0 %v2108_v9, %s2427_s27 }
  0xa0   :  { %v2110_v12 = vpop.eup %2109 }
  0xa1   :  { %v119_v13 = vadd.f32 1.0, %v2110_v12 }
  0xa3   :  { %2111 = vrcp.f32 %v119_v13  ;;  %v131_v19 = vand.u32 2147483648, %v119_v13  ;;  %vm125_vm3 = vweird.f32 %v119_v13  ;;  %v129_v20 = vand.u32 2147483647, %v119_v13 }
  0xa5   :  { %v132_v22 = vor.u32 1.1754944e-38, %v131_v19  ;;  %vm130_vm5 = vcmp.eq.f32.partialorder %v129_v20, 8.507059e+37 }
  0xa7   :  { %137 = vrot.lane.b32.xlu0 %v81_v10, %s2427_s27 }
  0xa9   :  { %v2112_v14 = vpop.eup %2111 }
  0xaa   :  { %v121_v15 = vmul.f32 %v2112_v14, %v119_v13  ;;  %vm126_vm2 = vweird.f32 %v2112_v14 }
  0xab   :  { %vm127_vm4 = vmor %vm125_vm3, %vm126_vm2 }
  0xac   :  { %v122_v16 = vsub.f32 1.0, %v121_v15 }
  0xae   :  { %v123_v17 = vmul.f32 %v2112_v14, %v122_v16 }
  0xb0   :  { %v124_v18 = vadd.f32 %v2112_v14, %v123_v17 }
  0xb2   :  { %v128_v21 = vsel %vm127_vm4, %v2112_v14, %v124_v18 }
  0xb3   :  { %v133_v24 = vsel %vm130_vm5, %v132_v22, %v128_v21 }
 0x111   :  { %v143_v23 = vpop.permute.xlu0 %142 }
 0x112   :  { %v145_v25 = vmul.f32 %v143_v23, %v133_v24 }
 0x114   :  { %147 = vrot.lane.b32.xlu1 %v145_v25, %s2427_s27 }
 0x119   :  { %v138_v26 = vpop.permute.xlu0 %137 }
 0x11a   :  { %v140_v27 = vmul.f32 %v138_v26, %v133_v24 }
 0x186   :  { %v148_v28 = vpop.permute.xlu1 %147 }
 0x187   :  { %v2492_v29 = vadd.f32 %v148_v28, %v140_v27 }
 0x189   :  { %2113 = vtanh.f32 %v2492_v29 }
 0x18f   :  { %v2114_v30 = vpop.eup %2113 }
 0x190   :  { %153 = vrot.lane.b32.xlu1 %v2114_v30, %s2427_s27 }
 0x198   :  { %240 = vrot.lane.b32.xlu1 %v83_v42, %s2427_s27  ;;  %v2556_v42 = vld [vmem:[#allocation7 + $0x58] sm:$0xff] }
 0x199   :  { %285 = vmatpush.msra.mxu3 %v2556_v42 }
 0x202   :  { %v154_v40 = vpop.permute.xlu1 %153 }
 0x203   :  { %v156_v41 = vmul.f32 %v154_v40, %v133_v24 }
 0x205   :  { %190 = vrot.lane.b32.xlu2 %v156_v41, %s2431_s0 }
 0x20a   :  { %v241_v24 = vpop.permute.xlu1 %240 }
 0x25f   :  { %v191_v43 = vpop.permute.xlu2 %190 }
 0x260   :  { %2032 = vmatmul.msk.f32.vlgmr.msra.gmra.mxu2 %vm91_vm1, %v191_v43  ;;  %2038 = vmatmul.msk.f32.vlgmr.msrb.gmra.mxu1 %vm91_vm1, %v191_v43  ;;  %v2558_v43 = vld [vmem:[#allocation7 + $0x50] sm:$0xff] }
 0x261   :  { %610 = vmatpush.msra.mxu2 %v2476_v1  ;;  %286 = vmatpush.msra.mxu3 %v2558_v43 }
 0x263   :  { %611 = vmatpush.msra.mxu2 %v2478_v2 }
 0x265   :  { %612 = vmatpush.msra.mxu2 %v2481_v3 }
 0x267   :  { %613 = vmatpush.msra.mxu2 %v2484_v4 }
 0x2dd   :  { %v384_v46 = vpop.f32.mrf.mxu1 }
 0x2de   :  { %v387_v47 = vadd.f32 %v384_v46, %v366_v45  ;;  %v2563_v45 = vld [vmem:[#allocation7 + $0x48] sm:$0xff] }
 0x2df   :  { %v2570_v46 = vld [vmem:[#allocation9 + $0x28] sm:$0xff]  ;;  %287 = vmatpush.msra.mxu3 %v2563_v45 }
 0x2e0   :  { %2115 = vtanh.f32 %v387_v47  ;;  %v2039_v57 = vmul.f32 -1.442695, %v387_v47  ;;  %v2572_v47 = vld [vmem:[#allocation7 + $0x40] sm:$0xff] }
 0x2e1   :  { %288 = vmatpush.msra.mxu3 %v2572_v47 }
 0x2e3   :  { %v211_v49 = vpop.f32.mrf.mxu2  ;;  %462 = vmatpush.msrb.mxu3 %v2501_v33 }
 0x2e4   :  { %v212_v50 = vadd.f32 %v211_v49, %v186_v44  ;;  %v2561_v44 = vld [vmem:[#allocation9 + $0x38] sm:$0xff]  ;;  %v80_v49 = vld [vmem:[#allocation2 + $0x4] sm:$0x3] }
 0x2e5   :  { %310 = vmatpush.msrb.mxu0 %v2561_v44  ;;  %550 = vmatpush.msra.mxu1 %v2561_v44 }
 0x2e6   :  { %v2116_v51 = vpop.eup %2115  ;;  %v218_v52 = vadd.f32 %v2540_v48, %v212_v50  ;;  %v2577_v50 = vld [vmem:[#allocation9 + $0x20] sm:$0xff]  ;;  %2034 = vmatmul.msk.f32.vlgmr.msra.gmra.mxu3 %vm91_vm1, %v80_v49 }
 0x2e7   :  { %410 = vrot.lane.b32.xlu0 %v2116_v51, %s2427_s27  ;;  %463 = vmatpush.msrb.mxu3 %v2506_v35 }
 0x2e8   :  { %2117 = vtanh.f32 %v218_v52  ;;  %v2033_v54 = vmul.f32 -1.442695, %v218_v52 }
 0x2e9   :  { %464 = vmatpush.msrb.mxu3 %v2509_v36 }
 0x2ea   :  { %2119 = vpow2.f32 %v2033_v54 }
 0x2eb   :  { %465 = vmatpush.msrb.mxu3 %v2515_v39 }
 0x2ed   :  { %668 = vmatpush.msra.mxu3 %v2496_v31 }
 0x2ee   :  { %v2118_v53 = vpop.eup %2117 }
 0x2ef   :  { %245 = vrot.lane.b32.xlu2 %v2118_v53, %s2427_s27  ;;  %669 = vmatpush.msra.mxu3 %v2498_v32 }
 0x2f0   :  { %v2120_v55 = vpop.eup %2119 }
 0x2f1   :  { %v222_v56 = vadd.f32 1.0, %v2120_v55  ;;  %670 = vmatpush.msra.mxu3 %v2503_v34 }
 0x2f3   :  { %2121 = vrcp.f32 %v222_v56  ;;  %v234_v6 = vand.u32 2147483648, %v222_v56  ;;  %vm228_vm7 = vweird.f32 %v222_v56  ;;  %v232_v7 = vand.u32 2147483647, %v222_v56  ;;  %671 = vmatpush.msra.mxu3 %v2511_v37 }
 0x2f4   :  { %2123 = vpow2.f32 %v2039_v57 }
 0x2f5   :  { %v235_v10 = vor.u32 1.1754944e-38, %v234_v6  ;;  %vm233_vm9 = vcmp.eq.f32.partialorder %v232_v7, 8.507059e+37 }
 0x2f9   :  { %v2122_v58 = vpop.eup %2121 }
 0x2fa   :  { %v2124_v59 = vpop.eup %2123  ;;  %v224_v60 = vmul.f32 %v2122_v58, %v222_v56  ;;  %vm229_vm6 = vweird.f32 %v2122_v58 }
 0x2fb   :  { %v391_v61 = vadd.f32 1.0, %v2124_v59  ;;  %vm230_vm8 = vmor %vm228_vm7, %vm229_vm6 }
 0x2fc   :  { %v225_v62 = vsub.f32 1.0, %v224_v60 }
 0x2fd   :  { %2125 = vrcp.f32 %v391_v61  ;;  %v403_v17 = vand.u32 2147483648, %v391_v61  ;;  %vm397_vm11 = vweird.f32 %v391_v61  ;;  %v401_v18 = vand.u32 2147483647, %v391_v61 }
 0x2fe   :  { %v226_v63 = vmul.f32 %v2122_v58, %v225_v62 }
 0x2ff   :  { %v404_v20 = vor.u32 1.1754944e-38, %v403_v17  ;;  %vm402_vm13 = vcmp.eq.f32.partialorder %v401_v18, 8.507059e+37 }
 0x300   :  { %v227_v0 = vadd.f32 %v2122_v58, %v226_v63 }
 0x302   :  { %v231_v8 = vsel %vm230_vm8, %v2122_v58, %v227_v0  ;;  %v2626_v58 = vld [vmem:[%s2981_s3 + $0x1] ss:$0 sm:$0xff]  ;;  %v85_v0 = vld [vmem:[#allocation3 + $0x4] sm:$0x3] }
 0x303   :  { %v2126_v5 = vpop.eup %2125  ;;  %v236_v11 = vsel %vm233_vm9, %v235_v10, %v231_v8 }
 0x304   :  { %v393_v9 = vmul.f32 %v2126_v5, %v391_v61  ;;  %vm398_vm10 = vweird.f32 %v2126_v5  ;;  %v243_v25 = vmul.f32 %v241_v24, %v236_v11 }
 0x305   :  { %vm399_vm12 = vmor %vm397_vm11, %vm398_vm10 }
 0x306   :  { %v394_v14 = vsub.f32 1.0, %v393_v9 }
 0x308   :  { %v395_v15 = vmul.f32 %v2126_v5, %v394_v14 }
 0x30a   :  { %v396_v16 = vadd.f32 %v2126_v5, %v395_v15 }
 0x30c   :  { %v400_v19 = vsel %vm399_vm12, %v2126_v5, %v396_v16  ;;  %v597_v5 = vld [vmem:[#allocation4 + $0x4] sm:$0x3] }
 0x30d   :  { %v405_v22 = vsel %vm402_vm13, %v404_v20, %v400_v19 }
 0x30e   :  { %v408_v30 = vmul.f32 %v405_v22, %v2492_v29  ;;  %v2566_v29 = vld [vmem:[#allocation9 + $0x30] sm:$0xff] }
 0x30f   :  { %311 = vmatpush.msrb.mxu0 %v2566_v29  ;;  %551 = vmatpush.msra.mxu1 %v2566_v29 }
 0x311   :  { %312 = vmatpush.msrb.mxu0 %v2570_v46  ;;  %552 = vmatpush.msra.mxu1 %v2570_v46 }
 0x313   :  { %313 = vmatpush.msrb.mxu0 %v2577_v50  ;;  %553 = vmatpush.msra.mxu1 %v2577_v50 }
 0x315   :  { %525 = vmatpush.msra.mxu0 %v2556_v42  ;;  %756 = vmatpush.msrb.mxu1 %v2556_v42 }
 0x317   :  { %526 = vmatpush.msra.mxu0 %v2558_v43  ;;  %757 = vmatpush.msrb.mxu1 %v2558_v43 }
 0x319   :  { %527 = vmatpush.msra.mxu0 %v2563_v45  ;;  %758 = vmatpush.msrb.mxu1 %v2563_v45 }
 0x31b   :  { %528 = vmatpush.msra.mxu0 %v2572_v47  ;;  %759 = vmatpush.msrb.mxu1 %v2572_v47 }
 0x349   :  { %v246_v12 = vpop.permute.xlu2 %245 }
 0x34a   :  { %v248_v13 = vmul.f32 %v246_v12, %v236_v11 }
 0x34c   :  { %250 = vrot.lane.b32.xlu2 %v248_v13, %s2427_s27 }
 0x359   :  { %v411_v21 = vpop.permute.xlu0 %410 }
 0x35a   :  { %v413_v23 = vmul.f32 %v411_v21, %v405_v22 }
 0x35c   :  { %415 = vrot.lane.b32.xlu0 %v413_v23, %s2427_s27 }
 0x369   :  { %v290_v57 = vpop.f32.mrf.mxu3 }
 0x3a6   :  { %v251_v26 = vpop.permute.xlu2 %250 }
 0x3a7   :  { %v2547_v27 = vadd.f32 %v251_v26, %v243_v25 }
 0x3a9   :  { %2127 = vtanh.f32 %v2547_v27 }
 0x3af   :  { %v2128_v28 = vpop.eup %2127 }
 0x3b0   :  { %256 = vrot.lane.b32.xlu1 %v2128_v28, %s2427_s27 }
 0x3ce   :  { %v416_v38 = vpop.permute.xlu0 %415 }
 0x3cf   :  { %v2552_v40 = vadd.f32 %v416_v38, %v408_v30 }
 0x3d1   :  { %2129 = vtanh.f32 %v2552_v40 }
 0x3d7   :  { %v2130_v41 = vpop.eup %2129 }
 0x3d8   :  { %421 = vrot.lane.b32.xlu2 %v2130_v41, %s2427_s27 }
 0x422   :  { %v257_v51 = vpop.permute.xlu1 %256 }
 0x423   :  { %v259_v52 = vmul.f32 %v257_v51, %v236_v11 }
 0x425   :  { %294 = vrot.lane.b32.xlu0 %v259_v52, %s2431_s0 }
 0x432   :  { %v422_v53 = vpop.permute.xlu2 %421 }
 0x433   :  { %v424_v54 = vmul.f32 %v422_v53, %v405_v22 }
 0x435   :  { %446 = vrot.lane.b32.xlu1 %v424_v54, %s2431_s0 }
 0x497   :  { %v295_v55 = vpop.permute.xlu0 %294 }
 0x498   :  { %2035 = vmatmul.msk.f32.vlgmr.msrb.gmra.mxu0 %vm91_vm1, %v295_v55  ;;  %2040 = vmatmul.msk.f32.vlgmr.msrb.gmra.mxu2 %vm91_vm1, %v295_v55 }
 0x499   :  { %693 = vmatpush.msrb.mxu0 %v2501_v33  ;;  %781 = vmatpush.msrb.mxu2 %v2561_v44 }
 0x49b   :  { %694 = vmatpush.msrb.mxu0 %v2506_v35  ;;  %782 = vmatpush.msrb.mxu2 %v2566_v29 }
 0x49d   :  { %695 = vmatpush.msrb.mxu0 %v2509_v36  ;;  %783 = vmatpush.msrb.mxu2 %v2570_v46 }
 0x49f   :  { %696 = vmatpush.msrb.mxu0 %v2515_v39  ;;  %784 = vmatpush.msrb.mxu2 %v2577_v50 }
 0x4a7   :  { %v447_v56 = vpop.permute.xlu1 %446 }
 0x4a8   :  { %2041 = vmatmul.msk.f32.vlgmr.msrb.gmra.mxu3 %vm91_vm1, %v447_v56  ;;  %2046 = vmatmul.msk.f32.vlgmr.msra.gmra.mxu2 %vm91_vm1, %v447_v56 }
 0x4a9   :  { %841 = vmatpush.msrb.mxu3 %v2476_v1  ;;  %987 = vmatpush.msra.mxu2 %v2556_v42 }
 0x4ab   :  { %842 = vmatpush.msrb.mxu3 %v2478_v2  ;;  %988 = vmatpush.msra.mxu2 %v2558_v43 }
 0x4ad   :  { %843 = vmatpush.msrb.mxu3 %v2481_v3  ;;  %989 = vmatpush.msra.mxu2 %v2563_v45 }
 0x4af   :  { %844 = vmatpush.msrb.mxu3 %v2484_v4  ;;  %990 = vmatpush.msra.mxu2 %v2572_v47 }
 0x515   :  { %v315_v59 = vpop.f32.mrf.mxu0 }
 0x516   :  { %v316_v60 = vadd.f32 %v315_v59, %v290_v57 }
 0x518   :  { %v323_v61 = vadd.f32 %v2626_v58, %v316_v60 }
 0x51a   :  { %2131 = vtanh.f32 %v323_v61  ;;  %v2037_v13 = vmul.f32 -1.442695, %v323_v61 }
 0x51b   :  { %v442_v63 = vpop.f32.mrf.mxu2 }
 0x520   :  { %v2132_v62 = vpop.eup %2131 }
 0x521   :  { %350 = vrot.lane.b32.xlu2 %v2132_v62, %s2427_s27 }
 0x529   :  { %345 = vrot.lane.b32.xlu2 %v85_v0, %s2427_s27 }
 0x52b   :  { %v467_v6 = vpop.f32.mrf.mxu3  ;;  %v615_v7 = vpop.f32.mrf.mxu2 }
 0x52c   :  { %v468_v8 = vadd.f32 %v467_v6, %v442_v63  ;;  %v618_v9 = vadd.f32 %v615_v7, %v597_v5 }
 0x52e   :  { %v470_v10 = vadd.f32 %v2540_v48, %v468_v8  ;;  %2133 = vtanh.f32 %v618_v9  ;;  %v2047_v25 = vmul.f32 -1.442695, %v618_v9 }
 0x530   :  { %2135 = vtanh.f32 %v470_v10  ;;  %v2042_v30 = vmul.f32 -1.442695, %v470_v10 }
 0x531   :  { %2137 = vpow2.f32 %v2037_v13 }
 0x534   :  { %v2134_v11 = vpop.eup %2133 }
 0x535   :  { %641 = vrot.lane.b32.xlu1 %v2134_v11, %s2427_s27 }
 0x536   :  { %v2136_v12 = vpop.eup %2135 }
 0x537   :  { %493 = vrot.lane.b32.xlu0 %v2136_v12, %s2427_s27  ;;  %v2138_v14 = vpop.eup %2137 }
 0x538   :  { %v327_v15 = vadd.f32 1.0, %v2138_v14 }
 0x53a   :  { %2139 = vrcp.f32 %v327_v15  ;;  %v339_v21 = vand.u32 2147483648, %v327_v15  ;;  %vm333_vm15 = vweird.f32 %v327_v15  ;;  %v337_v22 = vand.u32 2147483647, %v327_v15 }
 0x53b   :  { %2141 = vpow2.f32 %v2047_v25 }
 0x53c   :  { %v340_v24 = vor.u32 1.1754944e-38, %v339_v21  ;;  %vm338_vm3 = vcmp.eq.f32.partialorder %v337_v22, 8.507059e+37  ;;  %2143 = vpow2.f32 %v2042_v30 }
 0x540   :  { %v2140_v16 = vpop.eup %2139 }
 0x541   :  { %v329_v17 = vmul.f32 %v2140_v16, %v327_v15  ;;  %vm334_vm14 = vweird.f32 %v2140_v16  ;;  %v2142_v41 = vpop.eup %2141 }
 0x542   :  { %vm335_vm2 = vmor %vm333_vm15, %vm334_vm14  ;;  %v2144_v49 = vpop.eup %2143  ;;  %v622_v51 = vadd.f32 1.0, %v2142_v41 }
 0x543   :  { %v330_v18 = vsub.f32 1.0, %v329_v17  ;;  %v474_v52 = vadd.f32 1.0, %v2144_v49 }
 0x544   :  { %2145 = vrcp.f32 %v622_v51  ;;  %v634_v63 = vand.u32 2147483648, %v622_v51  ;;  %vm628_vm5 = vweird.f32 %v622_v51  ;;  %v632_v0 = vand.u32 2147483647, %v622_v51 }
 0x545   :  { %v331_v19 = vmul.f32 %v2140_v16, %v330_v18  ;;  %2147 = vrcp.f32 %v474_v52  ;;  %v486_v6 = vand.u32 2147483648, %v474_v52  ;;  %vm480_vm8 = vweird.f32 %v474_v52 }
 0x546   :  { %v484_v8 = vand.u32 2147483647, %v474_v52  ;;  %v635_v9 = vor.u32 1.1754944e-38, %v634_v63  ;;  %vm633_vm10 = vcmp.eq.f32.partialorder %v632_v0, 8.507059e+37 }
 0x547   :  { %v332_v20 = vadd.f32 %v2140_v16, %v331_v19  ;;  %v487_v13 = vor.u32 1.1754944e-38, %v486_v6 }
 0x548   :  { %vm485_vm11 = vcmp.eq.f32.partialorder %v484_v8, 8.507059e+37 }
 0x549   :  { %v336_v23 = vsel %vm335_vm2, %v2140_v16, %v332_v20 }
 0x54a   :  { %v2634_v28 = vsel %vm338_vm3, %v340_v24, %v336_v23  ;;  %v2146_v53 = vpop.eup %2145 }
 0x54b   :  { %v2148_v54 = vpop.eup %2147  ;;  %v624_v55 = vmul.f32 %v2146_v53, %v622_v51  ;;  %vm629_vm4 = vweird.f32 %v2146_v53 }
 0x54c   :  { %v476_v56 = vmul.f32 %v2148_v54, %v474_v52  ;;  %vm481_vm6 = vweird.f32 %v2148_v54  ;;  %vm630_vm7 = vmor %vm628_vm5, %vm629_vm4 }
 0x54d   :  { %v625_v57 = vsub.f32 1.0, %v624_v55  ;;  %vm482_vm9 = vmor %vm480_vm8, %vm481_vm6 }
 0x54e   :  { %v477_v59 = vsub.f32 1.0, %v476_v56 }
 0x54f   :  { %v626_v60 = vmul.f32 %v2146_v53, %v625_v57 }
 0x550   :  { %v478_v61 = vmul.f32 %v2148_v54, %v477_v59 }
 0x551   :  { %v627_v62 = vadd.f32 %v2146_v53, %v626_v60 }
 0x552   :  { %v479_v5 = vadd.f32 %v2148_v54, %v478_v61 }
 0x553   :  { %v631_v7 = vsel %vm630_vm7, %v2146_v53, %v627_v62 }
 0x554   :  { %v483_v10 = vsel %vm482_vm9, %v2148_v54, %v479_v5  ;;  %v636_v12 = vsel %vm633_vm10, %v635_v9, %v631_v7  ;;  %v828_v7 = vld [vmem:[#allocation4 + $0x6] sm:$0x3] }
 0x555   :  { %v488_v16 = vsel %vm485_vm11, %v487_v13, %v483_v10  ;;  %v639_v23 = vmul.f32 %v636_v12, %v2552_v40 }
 0x556   :  { %v491_v30 = vmul.f32 %v488_v16, %v2547_v27 }
 0x57b   :  { %v351_v26 = vpop.permute.xlu2 %350 }
 0x57c   :  { %v353_v38 = vmul.f32 %v351_v26, %v2634_v28 }
 0x57e   :  { %355 = vrot.lane.b32.xlu0 %v353_v38, %s2427_s27 }
 0x583   :  { %v346_v18 = vpop.permute.xlu2 %345 }
 0x584   :  { %v348_v19 = vmul.f32 %v346_v18, %v2634_v28 }
 0x5a7   :  { %v642_v11 = vpop.permute.xlu1 %641 }
 0x5a8   :  { %v644_v14 = vmul.f32 %v642_v11, %v636_v12 }
 0x5a9   :  { %v494_v15 = vpop.permute.xlu0 %493 }
 0x5aa   :  { %v496_v17 = vmul.f32 %v494_v15, %v488_v16  ;;  %646 = vrot.lane.b32.xlu2 %v644_v14, %s2427_s27 }
 0x5ac   :  { %498 = vrot.lane.b32.xlu1 %v496_v17, %s2427_s27 }
 0x5f0   :  { %v356_v20 = vpop.permute.xlu0 %355 }
 0x5f1   :  { %v2641_v21 = vadd.f32 %v356_v20, %v348_v19 }
 0x5f3   :  { %2149 = vtanh.f32 %v2641_v21 }
 0x5f9   :  { %v2150_v22 = vpop.eup %2149 }
 0x5fa   :  { %361 = vrot.lane.b32.xlu0 %v2150_v22, %s2427_s27 }
 0x604   :  { %v647_v24 = vpop.permute.xlu2 %646 }
 0x605   :  { %v2646_v25 = vadd.f32 %v647_v24, %v639_v23 }
 0x607   :  { %2151 = vtanh.f32 %v2646_v25 }
 0x60d   :  { %v2152_v26 = vpop.eup %2151 }
 0x60e   :  { %652 = vrot.lane.b32.xlu2 %v2152_v26, %s2427_s27 }
 0x61e   :  { %v499_v38 = vpop.permute.xlu1 %498 }
 0x61f   :  { %v2651_v41 = vadd.f32 %v499_v38, %v491_v30 }
 0x621   :  { %2153 = vtanh.f32 %v2651_v41 }
 0x627   :  { %v2154_v49 = vpop.eup %2153 }
 0x628   :  { %504 = vrot.lane.b32.xlu1 %v2154_v49, %s2427_s27 }
 0x668   :  { %v653_v51 = vpop.permute.xlu2 %652 }
 0x669   :  { %v655_v40 = vmul.f32 %v653_v51, %v636_v12 }
 0x66b   :  { %677 = vrot.lane.b32.xlu2 %v655_v40, %s2431_s0 }
 0x66c   :  { %v362_v52 = vpop.permute.xlu0 %361 }
 0x66d   :  { %v364_v53 = vmul.f32 %v362_v52, %v2634_v28 }
 0x66f   :  { %509 = vrot.lane.b32.xlu0 %v364_v53, %s2431_s0 }
 0x69a   :  { %v505_v54 = vpop.permute.xlu1 %504 }
 0x69b   :  { %v507_v55 = vmul.f32 %v505_v54, %v488_v16 }
 0x69d   :  { %534 = vrot.lane.b32.xlu1 %v507_v55, %s2431_s0 }
 0x6c5   :  { %v678_v56 = vpop.permute.xlu2 %677 }
 0x6e1   :  { %v510_v27 = vpop.permute.xlu0 %509 }
 0x6e2   :  { %2043 = vmatmul.msk.f32.vlgmr.msra.gmra.mxu0 %vm91_vm1, %v510_v27 }
 0x6e3   :  { %899 = vmatpush.msra.mxu0 %v2496_v31 }
 0x6e5   :  { %900 = vmatpush.msra.mxu0 %v2498_v32 }
 0x6e7   :  { %901 = vmatpush.msra.mxu0 %v2503_v34 }
 0x6e9   :  { %902 = vmatpush.msra.mxu0 %v2511_v37 }
 0x6ea   :  { %2049 = vmatmul.msk.f32.vlgmr.msrb.gmra.mxu0 %vm91_vm1, %v678_v56 }
 0x6eb   :  { %1072 = vmatpush.msrb.mxu0 %v2476_v1 }
 0x6ed   :  { %1073 = vmatpush.msrb.mxu0 %v2478_v2 }
 0x6ef   :  { %1074 = vmatpush.msrb.mxu0 %v2481_v3 }
 0x6f1   :  { %1075 = vmatpush.msrb.mxu0 %v2484_v4 }
 0x70f   :  { %v535_v28 = vpop.permute.xlu1 %534 }
 0x710   :  { %2044 = vmatmul.msk.f32.vlgmr.msra.gmra.mxu1 %vm91_vm1, %v535_v28  ;;  %2048 = vmatmul.msk.f32.vlgmr.msra.gmra.mxu3 %vm91_vm1, %v535_v28 }
 0x711   :  { %924 = vmatpush.msra.mxu1 %v2501_v33  ;;  %1012 = vmatpush.msra.mxu3 %v2561_v44 }
 0x713   :  { %925 = vmatpush.msra.mxu1 %v2506_v35  ;;  %1013 = vmatpush.msra.mxu3 %v2566_v29 }
 0x715   :  { %926 = vmatpush.msra.mxu1 %v2509_v36  ;;  %1014 = vmatpush.msra.mxu3 %v2570_v46 }
 0x717   :  { %927 = vmatpush.msra.mxu1 %v2515_v39  ;;  %1015 = vmatpush.msra.mxu3 %v2577_v50 }
 0x718   :  { %2054 = vmatmul.msk.f32.vlgmr.msrb.gmra.mxu3 %vm91_vm1, %v678_v56 }
 0x719   :  { %1218 = vmatpush.msrb.mxu3 %v2556_v42 }
 0x71b   :  { %1219 = vmatpush.msrb.mxu3 %v2558_v43 }
 0x71d   :  { %1220 = vmatpush.msrb.mxu3 %v2563_v45 }
 0x71f   :  { %1221 = vmatpush.msrb.mxu3 %v2572_v47 }
 0x75f   :  { %v530_v57 = vpop.f32.mrf.mxu0 }
 0x767   :  { %v698_v62 = vpop.f32.mrf.mxu0 }
 0x78d   :  { %v555_v59 = vpop.f32.mrf.mxu1 }
 0x78e   :  { %v556_v60 = vadd.f32 %v555_v59, %v530_v57 }
 0x790   :  { %v558_v61 = vadd.f32 %v2626_v58, %v556_v60 }
 0x792   :  { %2155 = vtanh.f32 %v558_v61  ;;  %v2045_v14 = vmul.f32 -1.442695, %v558_v61 }
 0x793   :  { %v673_v63 = vpop.f32.mrf.mxu3 }
 0x794   :  { %v699_v0 = vadd.f32 %v698_v62, %v673_v63 }
 0x796   :  { %v701_v5 = vadd.f32 %v2540_v48, %v699_v0 }
 0x798   :  { %v2156_v6 = vpop.eup %2155  ;;  %2157 = vtanh.f32 %v701_v5  ;;  %v2050_v16 = vmul.f32 -1.442695, %v701_v5 }
 0x799   :  { %581 = vrot.lane.b32.xlu0 %v2156_v6, %s2427_s27 }
 0x79b   :  { %v846_v8 = vpop.f32.mrf.mxu3 }
 0x79c   :  { %v849_v9 = vadd.f32 %v846_v8, %v828_v7 }
 0x79e   :  { %v2158_v10 = vpop.eup %2157  ;;  %2159 = vtanh.f32 %v849_v9  ;;  %v2055_v12 = vmul.f32 -1.442695, %v849_v9 }
 0x79f   :  { %724 = vrot.lane.b32.xlu1 %v2158_v10, %s2427_s27 }
 0x7a0   :  { %2161 = vpow2.f32 %v2055_v12 }
 0x7a1   :  { %2163 = vpow2.f32 %v2045_v14 }
 0x7a4   :  { %v2160_v11 = vpop.eup %2159 }
 0x7a5   :  { %872 = vrot.lane.b32.xlu2 %v2160_v11, %s2427_s27 }
 0x7a6   :  { %v2162_v13 = vpop.eup %2161 }
 0x7a7   :  { %v853_v15 = vadd.f32 1.0, %v2162_v13  ;;  %v2164_v17 = vpop.eup %2163 }
 0x7a8   :  { %v562_v19 = vadd.f32 1.0, %v2164_v17 }
 0x7a9   :  { %2165 = vrcp.f32 %v853_v15  ;;  %v865_v51 = vand.u32 2147483648, %v853_v15  ;;  %vm859_vm13 = vweird.f32 %v853_v15  ;;  %v863_v40 = vand.u32 2147483647, %v853_v15 }
 0x7aa   :  { %2167 = vpow2.f32 %v2050_v16  ;;  %v574_v62 = vand.u32 2147483648, %v562_v19  ;;  %vm568_vm3 = vweird.f32 %v562_v19  ;;  %v572_v63 = vand.u32 2147483647, %v562_v19 }
 0x7ab   :  { %2169 = vrcp.f32 %v562_v19  ;;  %v866_v55 = vor.u32 1.1754944e-38, %v865_v51  ;;  %vm864_vm15 = vcmp.eq.f32.partialorder %v863_v40, 8.507059e+37 }
 0x7ac   :  { %v575_v6 = vor.u32 1.1754944e-38, %v574_v62  ;;  %vm573_vm5 = vcmp.eq.f32.partialorder %v572_v63, 8.507059e+37 }
 0x7af   :  { %v2166_v18 = vpop.eup %2165 }
 0x7b0   :  { %v855_v20 = vmul.f32 %v2166_v18, %v853_v15  ;;  %v2168_v22 = vpop.eup %2167  ;;  %vm860_vm12 = vweird.f32 %v2166_v18 }
 0x7b1   :  { %v705_v24 = vadd.f32 1.0, %v2168_v22  ;;  %v2170_v30 = vpop.eup %2169  ;;  %vm861_vm14 = vmor %vm859_vm13, %vm860_vm12 }
 0x7b2   :  { %v856_v23 = vsub.f32 1.0, %v855_v20  ;;  %v564_v49 = vmul.f32 %v2170_v30, %v562_v19  ;;  %vm569_vm2 = vweird.f32 %v2170_v30 }
 0x7b3   :  { %2171 = vrcp.f32 %v705_v24  ;;  %vm570_vm4 = vmor %vm568_vm3, %vm569_vm2  ;;  %v717_v10 = vand.u32 2147483648, %v705_v24  ;;  %vm711_vm7 = vweird.f32 %v705_v24  ;;  %v715_v12 = vand.u32 2147483647, %v705_v24 }
 0x7b4   :  { %v857_v26 = vmul.f32 %v2166_v18, %v856_v23  ;;  %v565_v54 = vsub.f32 1.0, %v564_v49 }
 0x7b5   :  { %v718_v14 = vor.u32 1.1754944e-38, %v717_v10  ;;  %vm716_vm9 = vcmp.eq.f32.partialorder %v715_v12, 8.507059e+37 }
 0x7b6   :  { %v858_v38 = vadd.f32 %v2166_v18, %v857_v26  ;;  %v566_v59 = vmul.f32 %v2170_v30, %v565_v54 }
 0x7b8   :  { %v862_v53 = vsel %vm861_vm14, %v2166_v18, %v858_v38  ;;  %v567_v61 = vadd.f32 %v2170_v30, %v566_v59 }
 0x7b9   :  { %v2172_v52 = vpop.eup %2171  ;;  %v867_v28 = vsel %vm864_vm15, %v866_v55, %v862_v53 }
 0x7ba   :  { %v707_v27 = vmul.f32 %v2172_v52, %v705_v24  ;;  %v571_v5 = vsel %vm570_vm4, %v2170_v30, %v567_v61  ;;  %vm712_vm6 = vweird.f32 %v2172_v52  ;;  %v870_v18 = vmul.f32 %v867_v28, %v2646_v25 }
 0x7bb   :  { %v576_v9 = vsel %vm573_vm5, %v575_v6, %v571_v5  ;;  %vm713_vm8 = vmor %vm711_vm7, %vm712_vm6 }
 0x7bc   :  { %v708_v60 = vsub.f32 1.0, %v707_v27  ;;  %v579_v23 = vmul.f32 %v576_v9, %v2641_v21 }
 0x7be   :  { %v709_v0 = vmul.f32 %v2172_v52, %v708_v60 }
 0x7c0   :  { %v710_v7 = vadd.f32 %v2172_v52, %v709_v0 }
 0x7c2   :  { %v714_v13 = vsel %vm713_vm8, %v2172_v52, %v710_v7 }
 0x7c3   :  { %v719_v16 = vsel %vm716_vm9, %v718_v14, %v714_v13 }
 0x7c4   :  { %v722_v30 = vmul.f32 %v719_v16, %v2651_v41 }
 0x7ff   :  { %v873_v56 = vpop.permute.xlu2 %872 }
 0x800   :  { %v875_v57 = vmul.f32 %v873_v56, %v867_v28 }
 0x802   :  { %877 = vrot.lane.b32.xlu2 %v875_v57, %s2427_s27 }
 0x80b   :  { %v582_v8 = vpop.permute.xlu0 %581 }
 0x80c   :  { %v584_v11 = vmul.f32 %v582_v8, %v576_v9 }
 0x80e   :  { %586 = vrot.lane.b32.xlu0 %v584_v11, %s2427_s27 }
 0x811   :  { %v725_v15 = vpop.permute.xlu1 %724 }
 0x812   :  { %v727_v17 = vmul.f32 %v725_v15, %v719_v16 }
 0x814   :  { %729 = vrot.lane.b32.xlu1 %v727_v17, %s2427_s27 }
 0x85c   :  { %v878_v19 = vpop.permute.xlu2 %877 }
 0x85d   :  { %v2693_v20 = vadd.f32 %v878_v19, %v870_v18 }
 0x85f   :  { %2173 = vtanh.f32 %v2693_v20 }
 0x865   :  { %v2174_v22 = vpop.eup %2173 }
 0x866   :  { %883 = vrot.lane.b32.xlu2 %v2174_v22, %s2427_s27 }
 0x880   :  { %v587_v24 = vpop.permute.xlu0 %586 }
 0x881   :  { %v2698_v26 = vadd.f32 %v587_v24, %v579_v23 }
 0x883   :  { %2175 = vtanh.f32 %v2698_v26 }
 0x886   :  { %v730_v38 = vpop.permute.xlu1 %729 }
 0x887   :  { %v2702_v49 = vadd.f32 %v730_v38, %v722_v30 }
 0x889   :  { %v2176_v25 = vpop.eup %2175  ;;  %2177 = vtanh.f32 %v2702_v49 }
 0x88a   :  { %592 = vrot.lane.b32.xlu0 %v2176_v25, %s2427_s27 }
 0x88f   :  { %v2178_v51 = vpop.eup %2177 }
 0x890   :  { %735 = vrot.lane.b32.xlu1 %v2178_v51, %s2427_s27 }
 0x8c0   :  { %v884_v40 = vpop.permute.xlu2 %883 }
 0x8c1   :  { %v886_v21 = vmul.f32 %v884_v40, %v867_v28 }
 0x8c3   :  { %908 = vrot.lane.b32.xlu2 %v886_v21, %s2431_s0 }
 0x8fc   :  { %v593_v52 = vpop.permute.xlu0 %592 }
 0x8fd   :  { %v595_v53 = vmul.f32 %v593_v52, %v576_v9 }
 0x8ff   :  { %740 = vrot.lane.b32.xlu0 %v595_v53, %s2431_s0 }
 0x902   :  { %v736_v41 = vpop.permute.xlu1 %735 }
 0x903   :  { %v738_v54 = vmul.f32 %v736_v41, %v719_v16 }
 0x905   :  { %765 = vrot.lane.b32.xlu1 %v738_v54, %s2431_s0 }
 0x91d   :  { %v909_v56 = vpop.permute.xlu2 %908 }
 0x971   :  { %v741_v55 = vpop.permute.xlu0 %740 }
 0x972   :  { %2051 = vmatmul.msk.f32.vlgmr.msrb.gmra.mxu1 %vm91_vm1, %v741_v55 }
 0x973   :  { %1130 = vmatpush.msrb.mxu1 %v2496_v31 }
 0x975   :  { %1131 = vmatpush.msrb.mxu1 %v2498_v32 }
 0x977   :  { %v766_v27 = vpop.permute.xlu1 %765  ;;  %1132 = vmatpush.msrb.mxu1 %v2503_v34  ;;  %v1059_v34 = vld [vmem:[#allocation4 + $0x8] sm:$0x3] }
 0x978   :  { %2052 = vmatmul.msk.f32.vlgmr.msrb.gmra.mxu2 %vm91_vm1, %v766_v27  ;;  %2056 = vmatmul.msk.f32.vlgmr.msra.gmra.mxu0 %vm91_vm1, %v766_v27 }
 0x979   :  { %1133 = vmatpush.msrb.mxu1 %v2511_v37  ;;  %1155 = vmatpush.msrb.mxu2 %v2501_v33 }
 0x97a   :  { %2057 = vmatmul.msk.f32.vlgmr.msra.gmra.mxu1 %vm91_vm1, %v909_v56  ;;  %1243 = vmatpush.msra.mxu0 %v2561_v44 }
 0x97b   :  { %1303 = vmatpush.msra.mxu1 %v2476_v1  ;;  %1156 = vmatpush.msrb.mxu2 %v2506_v35 }
 0x97c   :  { %1244 = vmatpush.msra.mxu0 %v2566_v29 }
 0x97d   :  { %1304 = vmatpush.msra.mxu1 %v2478_v2  ;;  %1157 = vmatpush.msrb.mxu2 %v2509_v36 }
 0x97e   :  { %1245 = vmatpush.msra.mxu0 %v2570_v46 }
 0x97f   :  { %1305 = vmatpush.msra.mxu1 %v2481_v3  ;;  %1158 = vmatpush.msrb.mxu2 %v2515_v39 }
 0x980   :  { %2062 = vmatmul.msk.f32.vlgmr.msrb.gmra.mxu0 %vm91_vm1, %v909_v56 }
 0x981   :  { %1306 = vmatpush.msra.mxu1 %v2484_v4  ;;  %1246 = vmatpush.msra.mxu0 %v2577_v50 }
 0x983   :  { %1449 = vmatpush.msrb.mxu0 %v2556_v42 }
 0x985   :  { %1450 = vmatpush.msrb.mxu0 %v2558_v43 }
 0x987   :  { %1451 = vmatpush.msrb.mxu0 %v2563_v45 }
 0x989   :  { %1452 = vmatpush.msrb.mxu0 %v2572_v47 }
 0x9ef   :  { %v761_v1 = vpop.f32.mrf.mxu1 }
 0x9f5   :  { %v904_v2 = vpop.f32.mrf.mxu0 }
 0x9f7   :  { %v929_v31 = vpop.f32.mrf.mxu1 }
 0x9f8   :  { %v930_v3 = vadd.f32 %v929_v31, %v904_v2 }
 0x9fa   :  { %v932_v32 = vadd.f32 %v2540_v48, %v930_v3 }
 0x9fb   :  { %v786_v33 = vpop.f32.mrf.mxu2 }
 0x9fc   :  { %2179 = vtanh.f32 %v932_v32  ;;  %v787_v4 = vadd.f32 %v786_v33, %v761_v1  ;;  %v2058_v61 = vmul.f32 -1.442695, %v932_v32 }
 0x9fd   :  { %v1077_v35 = vpop.f32.mrf.mxu0 }
 0x9fe   :  { %v789_v36 = vadd.f32 %v2626_v58, %v787_v4  ;;  %v1080_v37 = vadd.f32 %v1077_v35, %v1059_v34 }
 0xa00   :  { %2181 = vtanh.f32 %v789_v36  ;;  %v2063_v48 = vmul.f32 -1.442695, %v1080_v37  ;;  %v2053_v63 = vmul.f32 -1.442695, %v789_v36 }
 0xa01   :  { %2183 = vtanh.f32 %v1080_v37 }
 0xa02   :  { %v2180_v39 = vpop.eup %2179  ;;  %2185 = vpow2.f32 %v2063_v48 }
 0xa03   :  { %955 = vrot.lane.b32.xlu1 %v2180_v39, %s2427_s27 }
 0xa06   :  { %v2182_v28 = vpop.eup %2181 }
 0xa07   :  { %v2184_v57 = vpop.eup %2183  ;;  %812 = vrot.lane.b32.xlu0 %v2182_v28, %s2427_s27 }
 0xa08   :  { %1103 = vrot.lane.b32.xlu2 %v2184_v57, %s2427_s27  ;;  %v2186_v59 = vpop.eup %2185 }
 0xa09   :  { %v1084_v60 = vadd.f32 1.0, %v2186_v59 }
 0xa0b   :  { %2187 = vrcp.f32 %v1084_v60  ;;  %v1096_v12 = vand.u32 2147483648, %v1084_v60  ;;  %vm1090_vm11 = vweird.f32 %v1084_v60  ;;  %v1094_v13 = vand.u32 2147483647, %v1084_v60 }
 0xa0c   :  { %2189 = vpow2.f32 %v2058_v61 }
 0xa0d   :  { %2191 = vpow2.f32 %v2053_v63  ;;  %v1097_v16 = vor.u32 1.1754944e-38, %v1096_v12  ;;  %vm1095_vm13 = vcmp.eq.f32.partialorder %v1094_v13, 8.507059e+37  ;;  %v2779_v12 = vld [vmem:[#allocation7 + $0x30] sm:$0xff]  ;;  %v2782_v13 = vld [vmem:[#allocation9] sm:$0xff] }
 0xa11   :  { %v2188_v62 = vpop.eup %2187 }
 0xa12   :  { %v1086_v0 = vmul.f32 %v2188_v62, %v1084_v60  ;;  %v2190_v5 = vpop.eup %2189  ;;  %vm1091_vm10 = vweird.f32 %v2188_v62 }
 0xa13   :  { %v936_v7 = vadd.f32 1.0, %v2190_v5  ;;  %v2192_v8 = vpop.eup %2191  ;;  %vm1092_vm12 = vmor %vm1090_vm11, %vm1091_vm10 }
 0xa14   :  { %v1087_v6 = vsub.f32 1.0, %v1086_v0  ;;  %v793_v10 = vadd.f32 1.0, %v2192_v8 }
 0xa15   :  { %2193 = vrcp.f32 %v936_v7  ;;  %v948_v21 = vand.u32 2147483648, %v936_v7  ;;  %vm942_vm15 = vweird.f32 %v936_v7  ;;  %v946_v52 = vand.u32 2147483647, %v936_v7 }
 0xa16   :  { %v1088_v9 = vmul.f32 %v2188_v62, %v1087_v6  ;;  %2195 = vrcp.f32 %v793_v10  ;;  %v805_v55 = vand.u32 2147483648, %v793_v10  ;;  %vm799_vm5 = vweird.f32 %v793_v10 }
 0xa17   :  { %v949_v54 = vor.u32 1.1754944e-38, %v948_v21  ;;  %vm947_vm4 = vcmp.eq.f32.partialorder %v946_v52, 8.507059e+37  ;;  %v803_v27 = vand.u32 2147483647, %v793_v10 }
 0xa18   :  { %v1089_v11 = vadd.f32 %v2188_v62, %v1088_v9  ;;  %v806_v3 = vor.u32 1.1754944e-38, %v805_v55  ;;  %v2767_v9 = vld [vmem:[#allocation9 + $0x10] sm:$0xff] }
 0xa19   :  { %vm804_vm7 = vcmp.eq.f32.partialorder %v803_v27, 8.507059e+37 }
 0xa1a   :  { %v1093_v15 = vsel %vm1092_vm12, %v2188_v62, %v1089_v11  ;;  %v2775_v11 = vld [vmem:[#allocation9 + $0x8] sm:$0xff] }
 0xa1b   :  { %v2194_v14 = vpop.eup %2193  ;;  %v1098_v18 = vsel %vm1095_vm13, %v1097_v16, %v1093_v15  ;;  %v2800_v15 = vld [vmem:[#allocation7 + $0x10] sm:$0xff]  ;;  %v1290_v16 = vld [vmem:[#allocation4 + $0xa] sm:$0x3] }
 0xa1c   :  { %v938_v19 = vmul.f32 %v2194_v14, %v936_v7  ;;  %v2196_v22 = vpop.eup %2195  ;;  %vm943_vm14 = vweird.f32 %v2194_v14  ;;  %v1101_v4 = vmul.f32 %v1098_v18, %v2693_v20  ;;  %v2763_v7 = vld [vmem:[#allocation9 + $0x18] sm:$0xff] }
 0xa1d   :  { %v795_v30 = vmul.f32 %v2196_v22, %v793_v10  ;;  %vm944_vm2 = vmor %vm942_vm15, %vm943_vm14  ;;  %vm800_vm3 = vweird.f32 %v2196_v22  ;;  %v2772_v10 = vld [vmem:[#allocation7 + $0x38] sm:$0xff] }
 0xa1e   :  { %v939_v24 = vsub.f32 1.0, %v938_v19  ;;  %vm801_vm6 = vmor %vm799_vm5, %vm800_vm3 }
 0xa1f   :  { %v796_v25 = vsub.f32 1.0, %v795_v30 }
 0xa20   :  { %v940_v38 = vmul.f32 %v2194_v14, %v939_v24 }
 0xa21   :  { %v797_v40 = vmul.f32 %v2196_v22, %v796_v25  ;;  %v2815_v25 = vld [vmem:[%s2981_s3] ss:$0 sm:$0xff] }
 0xa22   :  { %v941_v51 = vadd.f32 %v2194_v14, %v940_v38 }
 0xa23   :  { %v798_v41 = vadd.f32 %v2196_v22, %v797_v40 }
 0xa24   :  { %v945_v53 = vsel %vm944_vm2, %v2194_v14, %v941_v51  ;;  %v2796_v14 = vld [vmem:[#allocation7 + $0x18] sm:$0xff] }
 0xa25   :  { %v950_v1 = vsel %vm947_vm4, %v949_v54, %v945_v53  ;;  %v802_v31 = vsel %vm801_vm6, %v2196_v22, %v798_v41 }
 0xa26   :  { %v807_v33 = vsel %vm804_vm7, %v806_v3, %v802_v31  ;;  %v953_v39 = vmul.f32 %v950_v1, %v2702_v49 }
 0xa27   :  { %v810_v48 = vmul.f32 %v807_v33, %v2698_v26 }
 0xa62   :  { %v1104_v17 = vpop.permute.xlu2 %1103 }
 0xa63   :  { %v1106_v23 = vmul.f32 %v1104_v17, %v1098_v18 }
 0xa65   :  { %1108 = vrot.lane.b32.xlu2 %v1106_v23, %s2427_s27 }
 0xa75   :  { %v956_v56 = vpop.permute.xlu1 %955 }
 0xa76   :  { %v958_v2 = vmul.f32 %v956_v56, %v950_v1 }
 0xa78   :  { %960 = vrot.lane.b32.xlu1 %v958_v2, %s2427_s27 }
 0xa79   :  { %v813_v32 = vpop.permute.xlu0 %812 }
 0xa7a   :  { %v815_v34 = vmul.f32 %v813_v32, %v807_v33 }
 0xa7c   :  { %817 = vrot.lane.b32.xlu0 %v815_v34, %s2427_s27 }
 0xabf   :  { %v1109_v35 = vpop.permute.xlu2 %1108 }
 0xac0   :  { %v2744_v36 = vadd.f32 %v1109_v35, %v1101_v4 }
 0xac2   :  { %2197 = vtanh.f32 %v2744_v36 }
 0xac8   :  { %v2198_v37 = vpop.eup %2197 }
 0xac9   :  { %1114 = vrot.lane.b32.xlu2 %v2198_v37, %s2427_s27 }
 0xaea   :  { %v961_v28 = vpop.permute.xlu1 %960 }
 0xaeb   :  { %v2749_v57 = vadd.f32 %v961_v28, %v953_v39 }
 0xaed   :  { %2199 = vtanh.f32 %v2749_v57 }
 0xaee   :  { %v818_v59 = vpop.permute.xlu0 %817 }
 0xaef   :  { %v2753_v60 = vadd.f32 %v818_v59, %v810_v48 }
 0xaf1   :  { %2201 = vtanh.f32 %v2753_v60 }
 0xaf3   :  { %v2200_v20 = vpop.eup %2199 }
 0xaf4   :  { %966 = vrot.lane.b32.xlu1 %v2200_v20, %s2427_s27 }
 0xaf7   :  { %v2202_v61 = vpop.eup %2201 }
 0xaf8   :  { %823 = vrot.lane.b32.xlu0 %v2202_v61, %s2427_s27 }
 0xb23   :  { %v1115_v62 = vpop.permute.xlu2 %1114 }
 0xb24   :  { %v1117_v49 = vmul.f32 %v1115_v62, %v1098_v18 }
 0xb26   :  { %1139 = vrot.lane.b32.xlu2 %v1117_v49, %s2431_s0 }
 0xb66   :  { %v967_v63 = vpop.permute.xlu1 %966 }
 0xb67   :  { %v969_v0 = vmul.f32 %v967_v63, %v950_v1 }
 0xb69   :  { %996 = vrot.lane.b32.xlu1 %v969_v0, %s2431_s0 }
 0xb6a   :  { %v824_v26 = vpop.permute.xlu0 %823 }
 0xb6b   :  { %v826_v5 = vmul.f32 %v824_v26, %v807_v33 }
 0xb6d   :  { %971 = vrot.lane.b32.xlu0 %v826_v5, %s2431_s0 }
 0xbdb   :  { %v997_v6 = vpop.permute.xlu1 %996 }
 0xbdc   :  { %2060 = vmatmul.msk.f32.vlgmr.msra.gmra.mxu3 %vm91_vm1, %v997_v6  ;;  %2064 = vmatmul.msk.f32.vlgmr.msrb.gmra.mxu1 %vm91_vm1, %v997_v6 }
 0xbdd   :  { %1386 = vmatpush.msra.mxu3 %v2763_v7  ;;  %1474 = vmatpush.msrb.mxu1 %v2561_v44  ;;  %v1140_v44 = vpop.permute.xlu2 %1139 }
 0xbdf   :  { %v972_v8 = vpop.permute.xlu0 %971  ;;  %1387 = vmatpush.msra.mxu3 %v2767_v9  ;;  %1475 = vmatpush.msrb.mxu1 %v2566_v29  ;;  %v2786_v29 = vld [vmem:[#allocation7 + $0x28] sm:$0xff] }
 0xbe0   :  { %2059 = vmatmul.msk.f32.vlgmr.msra.gmra.mxu2 %vm91_vm1, %v972_v8 }
 0xbe1   :  { %1361 = vmatpush.msra.mxu2 %v2772_v10  ;;  %1388 = vmatpush.msra.mxu3 %v2775_v11 }
 0xbe2   :  { %1476 = vmatpush.msrb.mxu1 %v2570_v46  ;;  %v2791_v46 = vld [vmem:[#allocation7 + $0x20] sm:$0xff] }
 0xbe3   :  { %1362 = vmatpush.msra.mxu2 %v2779_v12  ;;  %1389 = vmatpush.msra.mxu3 %v2782_v13 }
 0xbe4   :  { %2070 = vmatmul.msk.f32.vlgmr.msra.gmra.mxu1 %vm91_vm1, %v1140_v44 }
 0xbe5   :  { %1363 = vmatpush.msra.mxu2 %v2786_v29  ;;  %1477 = vmatpush.msrb.mxu1 %v2577_v50  ;;  %v2807_v50 = vld [vmem:[#allocation7] sm:$0xff] }
 0xbe7   :  { %1680 = vmatpush.msra.mxu1 %v2556_v42  ;;  %1364 = vmatpush.msra.mxu2 %v2791_v46  ;;  %v2804_v42 = vld [vmem:[#allocation7 + $0x8] sm:$0xff] }
 0xbe8   :  { %2065 = vmatmul.msk.f32.vlgmr.msrb.gmra.mxu2 %vm91_vm1, %v1140_v44 }
 0xbe9   :  { %1681 = vmatpush.msra.mxu1 %v2558_v43  ;;  %1534 = vmatpush.msrb.mxu2 %v2796_v14 }
 0xbeb   :  { %1682 = vmatpush.msra.mxu1 %v2563_v45  ;;  %1535 = vmatpush.msrb.mxu2 %v2800_v15 }
 0xbed   :  { %1683 = vmatpush.msra.mxu1 %v2572_v47  ;;  %1536 = vmatpush.msrb.mxu2 %v2804_v42 }
 0xbef   :  { %1537 = vmatpush.msrb.mxu2 %v2807_v50 }
 0xc59   :  { %v1135_v43 = vpop.f32.mrf.mxu1 }
 0xc5f   :  { %v1017_v19 = vpop.f32.mrf.mxu3 }
 0xc61   :  { %v1308_v17 = vpop.f32.mrf.mxu1 }
 0xc62   :  { %v1311_v18 = vadd.f32 %v1308_v17, %v1290_v16 }
 0xc63   :  { %v992_v45 = vpop.f32.mrf.mxu2 }
 0xc64   :  { %2203 = vtanh.f32 %v1311_v18  ;;  %v1018_v22 = vadd.f32 %v1017_v19, %v992_v45 }
 0xc66   :  { %v1020_v23 = vadd.f32 %v2626_v58, %v1018_v22  ;;  %v2071_v58 = vmul.f32 -1.442695, %v1311_v18 }
 0xc68   :  { %2205 = vtanh.f32 %v1020_v23  ;;  %v2061_v54 = vmul.f32 -1.442695, %v1020_v23 }
 0xc6a   :  { %v2204_v47 = vpop.eup %2203 }
 0xc6b   :  { %1334 = vrot.lane.b32.xlu2 %v2204_v47, %s2427_s27  ;;  %v1160_v24 = vpop.f32.mrf.mxu2 }
 0xc6c   :  { %v1161_v30 = vadd.f32 %v1160_v24, %v1135_v43 }
 0xc6e   :  { %v2206_v38 = vpop.eup %2205  ;;  %v1163_v51 = vadd.f32 %v2815_v25, %v1161_v30 }
 0xc6f   :  { %1043 = vrot.lane.b32.xlu0 %v2206_v38, %s2427_s27 }
 0xc70   :  { %2207 = vtanh.f32 %v1163_v51  ;;  %v2066_v56 = vmul.f32 -1.442695, %v1163_v51 }
 0xc71   :  { %2209 = vpow2.f32 %v2071_v58 }
 0xc76   :  { %v2208_v40 = vpop.eup %2207 }
 0xc77   :  { %1186 = vrot.lane.b32.xlu1 %v2208_v40, %s2427_s27  ;;  %v2210_v21 = vpop.eup %2209 }
 0xc78   :  { %v1315_v52 = vadd.f32 1.0, %v2210_v21 }
 0xc7a   :  { %2211 = vrcp.f32 %v1315_v52  ;;  %v1327_v31 = vand.u32 2147483648, %v1315_v52  ;;  %vm1321_vm9 = vweird.f32 %v1315_v52  ;;  %v1325_v3 = vand.u32 2147483647, %v1315_v52 }
 0xc7b   :  { %2213 = vpow2.f32 %v2061_v54 }
 0xc7c   :  { %2215 = vpow2.f32 %v2066_v56  ;;  %v1328_v34 = vor.u32 1.1754944e-38, %v1327_v31  ;;  %vm1326_vm11 = vcmp.eq.f32.partialorder %v1325_v3, 8.507059e+37 }
 0xc80   :  { %v2212_v53 = vpop.eup %2211 }
 0xc81   :  { %v1317_v41 = vmul.f32 %v2212_v53, %v1315_v52  ;;  %v2214_v1 = vpop.eup %2213  ;;  %vm1322_vm8 = vweird.f32 %v2212_v53 }
 0xc82   :  { %v1024_v32 = vadd.f32 1.0, %v2214_v1  ;;  %vm1323_vm10 = vmor %vm1321_vm9, %vm1322_vm8  ;;  %v2216_v37 = vpop.eup %2215 }
 0xc83   :  { %v1318_v55 = vsub.f32 1.0, %v1317_v41  ;;  %v1167_v28 = vadd.f32 1.0, %v2216_v37  ;;  %v2317_v37 = vld [vmem:[#allocation7 + $0x50] sm:$0xff] }
 0xc84   :  { %2217 = vrcp.f32 %v1024_v32  ;;  %v1036_v26 = vand.u32 2147483648, %v1024_v32  ;;  %vm1030_vm13 = vweird.f32 %v1024_v32  ;;  %v1034_v5 = vand.u32 2147483647, %v1024_v32 }
 0xc85   :  { %v1319_v27 = vmul.f32 %v2212_v53, %v1318_v55  ;;  %2219 = vrcp.f32 %v1167_v28  ;;  %v1179_v19 = vand.u32 2147483648, %v1167_v28  ;;  %vm1173_vm3 = vweird.f32 %v1167_v28 }
 0xc86   :  { %v1037_v44 = vor.u32 1.1754944e-38, %v1036_v26  ;;  %vm1035_vm15 = vcmp.eq.f32.partialorder %v1034_v5, 8.507059e+37  ;;  %v1177_v45 = vand.u32 2147483647, %v1167_v28  ;;  %v1521_v26 = vld [vmem:[#allocation4 + $0xc] sm:$0x3] }
 0xc87   :  { %v1320_v2 = vadd.f32 %v2212_v53, %v1319_v27  ;;  %v1180_v23 = vor.u32 1.1754944e-38, %v1179_v19 }
 0xc88   :  { %vm1178_vm5 = vcmp.eq.f32.partialorder %v1177_v45, 8.507059e+37 }
 0xc89   :  { %v1324_v33 = vsel %vm1323_vm10, %v2212_v53, %v1320_v2 }
 0xc8a   :  { %v1329_v35 = vsel %vm1326_vm11, %v1328_v34, %v1324_v33  ;;  %v2218_v48 = vpop.eup %2217  ;;  %v2851_v34 = vld [vmem:[#allocation9 + $0x38] sm:$0xff] }
 0xc8b   :  { %v1026_v59 = vmul.f32 %v2218_v48, %v1024_v32  ;;  %v2220_v61 = vpop.eup %2219  ;;  %vm1031_vm12 = vweird.f32 %v2218_v48  ;;  %v1332_v38 = vmul.f32 %v1329_v35, %v2744_v36 }
 0xc8c   :  { %v1169_v49 = vmul.f32 %v2220_v61, %v1167_v28  ;;  %vm1032_vm14 = vmor %vm1030_vm13, %vm1031_vm12  ;;  %vm1174_vm2 = vweird.f32 %v2220_v61 }
 0xc8d   :  { %v1027_v20 = vsub.f32 1.0, %v1026_v59  ;;  %vm1175_vm4 = vmor %vm1173_vm3, %vm1174_vm2 }
 0xc8e   :  { %v1170_v0 = vsub.f32 1.0, %v1169_v49 }
 0xc8f   :  { %v1028_v62 = vmul.f32 %v2218_v48, %v1027_v20  ;;  %v2873_v20 = vld [vmem:[%s2981_s3 + $0x1] ss:$0 sm:$0xff]  ;;  %s2432_s3 = smov 96  }
 0xc90   :  { %v1171_v8 = vmul.f32 %v2220_v61, %v1170_v0 }
 0xc91   :  { %v1029_v63 = vadd.f32 %v2218_v48, %v1028_v62 }
 0xc92   :  { %v1172_v18 = vadd.f32 %v2220_v61, %v1171_v8 }
 0xc93   :  { %v1033_v6 = vsel %vm1032_vm14, %v2218_v48, %v1029_v63 }
 0xc94   :  { %v1038_v16 = vsel %vm1035_vm15, %v1037_v44, %v1033_v6  ;;  %v1176_v22 = vsel %vm1175_vm4, %v2220_v61, %v1172_v18 }
 0xc95   :  { %v1181_v24 = vsel %vm1178_vm5, %v1180_v23, %v1176_v22  ;;  %v1041_v21 = vmul.f32 %v1038_v16, %v2753_v60 }
 0xc96   :  { %v1184_v41 = vmul.f32 %v1181_v24, %v2749_v57 }
 0xcc5   :  { %v1335_v4 = vpop.permute.xlu2 %1334 }
 0xcc6   :  { %v1337_v39 = vmul.f32 %v1335_v4, %v1329_v35  ;;  %v2856_v4 = vld [vmem:[#allocation9 + $0x30] sm:$0xff] }
 0xcc8   :  { %1339 = vrot.lane.b32.xlu2 %v1337_v39, %s2427_s27  ;;  %v2318_v39 = vld [vmem:[#allocation7 + $0x48] sm:$0xff] }
 0xce1   :  { %v1044_v43 = vpop.permute.xlu0 %1043 }
 0xce2   :  { %v1046_v17 = vmul.f32 %v1044_v43, %v1038_v16 }
 0xce4   :  { %1048 = vrot.lane.b32.xlu0 %v1046_v17, %s2427_s27 }
 0xce9   :  { %v1187_v47 = vpop.permute.xlu1 %1186 }
 0xcea   :  { %v1189_v30 = vmul.f32 %v1187_v47, %v1181_v24 }
 0xcec   :  { %1191 = vrot.lane.b32.xlu1 %v1189_v30, %s2427_s27 }
 0xd22   :  { %v1340_v51 = vpop.permute.xlu2 %1339 }
 0xd23   :  { %v2824_v40 = vadd.f32 %v1340_v51, %v1332_v38 }
 0xd25   :  { %2221 = vtanh.f32 %v2824_v40 }
 0xd2b   :  { %v2222_v58 = vpop.eup %2221 }
 0xd2c   :  { %1345 = vrot.lane.b32.xlu2 %v2222_v58, %s2427_s27 }
 0xd56   :  { %v1049_v52 = vpop.permute.xlu0 %1048 }
 0xd57   :  { %v2829_v53 = vadd.f32 %v1049_v52, %v1041_v21 }
 0xd59   :  { %2223 = vtanh.f32 %v2829_v53 }
 0xd5e   :  { %v1192_v54 = vpop.permute.xlu1 %1191 }
 0xd5f   :  { %v2224_v55 = vpop.eup %2223  ;;  %v2833_v36 = vadd.f32 %v1192_v54, %v1184_v41 }
 0xd60   :  { %1054 = vrot.lane.b32.xlu0 %v2224_v55, %s2427_s27 }
 0xd61   :  { %2225 = vtanh.f32 %v2833_v36 }
 0xd67   :  { %v2226_v27 = vpop.eup %2225 }
 0xd68   :  { %1197 = vrot.lane.b32.xlu1 %v2226_v27, %s2427_s27 }
 0xd86   :  { %v1346_v56 = vpop.permute.xlu2 %1345 }
 0xd87   :  { %v1348_v60 = vmul.f32 %v1346_v56, %v1329_v35  ;;  %v2861_v35 = vld [vmem:[#allocation9 + $0x28] sm:$0xff] }
 0xd89   :  { %1370 = vrot.lane.b32.xlu2 %v1348_v60, %s2431_s0 }
 0xdd2   :  { %v1055_v1 = vpop.permute.xlu0 %1054 }
 0xdd3   :  { %v1057_v2 = vmul.f32 %v1055_v1, %v1038_v16 }
 0xdd5   :  { %1202 = vrot.lane.b32.xlu0 %v1057_v2, %s2431_s0 }
 0xdda   :  { %v1198_v57 = vpop.permute.xlu1 %1197 }
 0xddb   :  { %v1200_v31 = vmul.f32 %v1198_v57, %v1181_v24 }
 0xddd   :  { %1227 = vrot.lane.b32.xlu1 %v1200_v31, %s2431_s0 }
 0xde3   :  { %v1371_v33 = vpop.permute.xlu2 %1370 }
 0xe47   :  { %v1203_v3 = vpop.permute.xlu0 %1202 }
 0xe48   :  { %2067 = vmatmul.msk.f32.vlgmr.msrb.gmra.mxu3 %vm91_vm1, %v1203_v3 }
 0xe49   :  { %1592 = vmatpush.msrb.mxu3 %v2772_v10 }
 0xe4b   :  { %1593 = vmatpush.msrb.mxu3 %v2779_v12 }
 0xe4d   :  { %1594 = vmatpush.msrb.mxu3 %v2786_v29 }
 0xe4f   :  { %v1228_v32 = vpop.permute.xlu1 %1227  ;;  %1595 = vmatpush.msrb.mxu3 %v2791_v46 }
 0xe50   :  { %2068 = vmatmul.msk.f32.vlgmr.msra.gmra.mxu0 %vm91_vm1, %v1228_v32  ;;  %2072 = vmatmul.msk.f32.vlgmr.msra.gmra.mxu2 %vm91_vm1, %v1228_v32 }
 0xe51   :  { %2073 = vmatmul.msk.f32.vlgmr.msra.gmra.mxu3 %vm91_vm1, %v1371_v33  ;;  %1617 = vmatpush.msra.mxu0 %v2763_v7 }
 0xe52   :  { %1765 = vmatpush.msra.mxu3 %v2796_v14  ;;  %1705 = vmatpush.msra.mxu2 %v2851_v34  ;;  %v2867_v14 = vld [vmem:[#allocation9 + $0x20] sm:$0xff] }
 0xe53   :  { %1618 = vmatpush.msra.mxu0 %v2767_v9 }
 0xe54   :  { %1766 = vmatpush.msra.mxu3 %v2800_v15  ;;  %1706 = vmatpush.msra.mxu2 %v2856_v4  ;;  %v2316_v15 = vld [vmem:[#allocation7 + $0x58] sm:$0xff] }
 0xe55   :  { %1619 = vmatpush.msra.mxu0 %v2775_v11 }
 0xe56   :  { %1767 = vmatpush.msra.mxu3 %v2804_v42  ;;  %1707 = vmatpush.msra.mxu2 %v2861_v35  ;;  %v2319_v42 = vld [vmem:[#allocation7 + $0x40] sm:$0xff] }
 0xe57   :  { %1620 = vmatpush.msra.mxu0 %v2782_v13 }
 0xe58   :  { %2078 = vmatmul.msk.f32.vlgmr.msrb.gmra.mxu2 %vm91_vm1, %v1371_v33  ;;  %1768 = vmatpush.msra.mxu3 %v2807_v50 }
 0xe59   :  { %1708 = vmatpush.msra.mxu2 %v2867_v14 }
 0xe5b   :  { %1911 = vmatpush.msrb.mxu2 %v2316_v15 }
 0xe5d   :  { %1912 = vmatpush.msrb.mxu2 %v2317_v37 }
 0xe5f   :  { %1913 = vmatpush.msrb.mxu2 %v2318_v39 }
 0xe61   :  { %1914 = vmatpush.msrb.mxu2 %v2319_v42 }
 0xecb   :  { %v1223_v28 = vpop.f32.mrf.mxu3 }
 0xecd   :  { %v1248_v48 = vpop.f32.mrf.mxu0 }
 0xece   :  { %v1249_v59 = vadd.f32 %v1248_v48, %v1223_v28 }
 0xed0   :  { %v1251_v50 = vadd.f32 %v2873_v20, %v1249_v59 }
 0xed2   :  { %2227 = vtanh.f32 %v1251_v50  ;;  %v2069_v17 = vmul.f32 -1.442695, %v1251_v50 }
 0xed3   :  { %v1366_v61 = vpop.f32.mrf.mxu2 }
 0xed4   :  { %v1391_v62 = vpop.f32.mrf.mxu3 }
 0xed5   :  { %v1392_v49 = vadd.f32 %v1391_v62, %v1366_v61 }
 0xed7   :  { %v1394_v63 = vadd.f32 %v2815_v25, %v1392_v49 }
 0xed8   :  { %v2228_v0 = vpop.eup %2227 }
 0xed9   :  { %2229 = vtanh.f32 %v1394_v63  ;;  %1274 = vrot.lane.b32.xlu0 %v2228_v0, %s2427_s27  ;;  %v2074_v19 = vmul.f32 -1.442695, %v1394_v63 }
 0xedb   :  { %v1539_v5 = vpop.f32.mrf.mxu2 }
 0xedc   :  { %v1542_v6 = vadd.f32 %v1539_v5, %v1521_v26 }
 0xede   :  { %2231 = vtanh.f32 %v1542_v6  ;;  %v2079_v43 = vmul.f32 -1.442695, %v1542_v6 }
 0xedf   :  { %v2230_v8 = vpop.eup %2229 }
 0xee0   :  { %1417 = vrot.lane.b32.xlu1 %v2230_v8, %s2427_s27  ;;  %2233 = vpow2.f32 %v2079_v43 }
 0xee1   :  { %2235 = vpow2.f32 %v2069_v17 }
 0xee4   :  { %v2232_v44 = vpop.eup %2231 }
 0xee5   :  { %1565 = vrot.lane.b32.xlu2 %v2232_v44, %s2427_s27 }
 0xee6   :  { %v2234_v16 = vpop.eup %2233 }
 0xee7   :  { %v1546_v18 = vadd.f32 1.0, %v2234_v16  ;;  %v2236_v45 = vpop.eup %2235 }
 0xee8   :  { %v1255_v23 = vadd.f32 1.0, %v2236_v45 }
 0xee9   :  { %2237 = vrcp.f32 %v1546_v18  ;;  %v1558_v41 = vand.u32 2147483648, %v1546_v18  ;;  %vm1552_vm7 = vweird.f32 %v1546_v18  ;;  %v1556_v54 = vand.u32 2147483647, %v1546_v18 }
 0xeea   :  { %2239 = vpow2.f32 %v2074_v19  ;;  %v1267_v15 = vand.u32 2147483648, %v1255_v23  ;;  %vm1261_vm11 = vweird.f32 %v1255_v23  ;;  %v1265_v37 = vand.u32 2147483647, %v1255_v23 }
 0xeeb   :  { %2241 = vrcp.f32 %v1255_v23  ;;  %v1559_v60 = vor.u32 1.1754944e-38, %v1558_v41  ;;  %vm1557_vm9 = vcmp.eq.f32.partialorder %v1556_v54, 8.507059e+37 }
 0xeec   :  { %v1268_v28 = vor.u32 1.1754944e-38, %v1267_v15  ;;  %vm1266_vm13 = vcmp.eq.f32.partialorder %v1265_v37, 8.507059e+37 }
 0xeef   :  { %v2238_v22 = vpop.eup %2237 }
 0xef0   :  { %v1548_v47 = vmul.f32 %v2238_v22, %v1546_v18  ;;  %v2240_v24 = vpop.eup %2239  ;;  %vm1553_vm6 = vweird.f32 %v2238_v22 }
 0xef1   :  { %v1398_v38 = vadd.f32 1.0, %v2240_v24  ;;  %v2242_v58 = vpop.eup %2241  ;;  %vm1554_vm8 = vmor %vm1552_vm7, %vm1553_vm6 }
 0xef2   :  { %v1549_v30 = vsub.f32 1.0, %v1548_v47  ;;  %v1257_v52 = vmul.f32 %v2242_v58, %v1255_v23  ;;  %vm1262_vm10 = vweird.f32 %v2242_v58 }
 0xef3   :  { %2243 = vrcp.f32 %v1398_v38  ;;  %vm1263_vm12 = vmor %vm1261_vm11, %vm1262_vm10  ;;  %v1410_v62 = vand.u32 2147483648, %v1398_v38  ;;  %vm1404_vm15 = vweird.f32 %v1398_v38  ;;  %v1408_v49 = vand.u32 2147483647, %v1398_v38 }
 0xef4   :  { %v1550_v51 = vmul.f32 %v2238_v22, %v1549_v30  ;;  %v1258_v56 = vsub.f32 1.0, %v1257_v52 }
 0xef5   :  { %v1411_v0 = vor.u32 1.1754944e-38, %v1410_v62  ;;  %vm1409_vm3 = vcmp.eq.f32.partialorder %v1408_v49, 8.507059e+37 }
 0xef6   :  { %v1551_v21 = vadd.f32 %v2238_v22, %v1550_v51  ;;  %v1259_v3 = vmul.f32 %v2242_v58, %v1258_v56 }
 0xef8   :  { %v1555_v27 = vsel %vm1554_vm8, %v2238_v22, %v1551_v21  ;;  %v1260_v33 = vadd.f32 %v2242_v58, %v1259_v3 }
 0xef9   :  { %v2244_v55 = vpop.eup %2243  ;;  %v1560_v2 = vsel %vm1557_vm9, %v1559_v60, %v1555_v27 }
 0xefa   :  { %v1400_v57 = vmul.f32 %v2244_v55, %v1398_v38  ;;  %v1264_v42 = vsel %vm1263_vm12, %v2242_v58, %v1260_v33  ;;  %vm1405_vm14 = vweird.f32 %v2244_v55  ;;  %v1563_v8 = vmul.f32 %v1560_v2, %v2824_v40 }
 0xefb   :  { %v1269_v59 = vsel %vm1266_vm13, %v1268_v28, %v1264_v42  ;;  %vm1406_vm2 = vmor %vm1404_vm15, %vm1405_vm14 }
 0xefc   :  { %v1401_v32 = vsub.f32 1.0, %v1400_v57  ;;  %v1272_v17 = vmul.f32 %v1269_v59, %v2829_v53 }
 0xefe   :  { %v1402_v39 = vmul.f32 %v2244_v55, %v1401_v32 }
 0xf00   :  { %v1403_v50 = vadd.f32 %v2244_v55, %v1402_v39 }
 0xf02   :  { %v1407_v63 = vsel %vm1406_vm2, %v2244_v55, %v1403_v50 }
 0xf03   :  { %v1412_v5 = vsel %vm1409_vm3, %v1411_v0, %v1407_v63 }
 0xf04   :  { %v1415_v45 = vmul.f32 %v1412_v5, %v2833_v36 }
 0xf3f   :  { %v1566_v1 = vpop.permute.xlu2 %1565 }
 0xf40   :  { %v1568_v31 = vmul.f32 %v1566_v1, %v1560_v2 }
 0xf42   :  { %1570 = vrot.lane.b32.xlu2 %v1568_v31, %s2427_s27 }
 0xf4b   :  { %v1275_v48 = vpop.permute.xlu0 %1274 }
 0xf4c   :  { %v1277_v61 = vmul.f32 %v1275_v48, %v1269_v59 }
 0xf4e   :  { %1279 = vrot.lane.b32.xlu0 %v1277_v61, %s2427_s27 }
 0xf52   :  { %v1418_v26 = vpop.permute.xlu1 %1417 }
 0xf53   :  { %v1420_v6 = vmul.f32 %v1418_v26, %v1412_v5 }
 0xf55   :  { %1422 = vrot.lane.b32.xlu1 %v1420_v6, %s2427_s27 }
 0xf9c   :  { %v1571_v44 = vpop.permute.xlu2 %1570 }
 0xf9d   :  { %v2884_v43 = vadd.f32 %v1571_v44, %v1563_v8 }
 0xf9f   :  { %2245 = vtanh.f32 %v2884_v43 }
 0xfa5   :  { %v2246_v16 = vpop.eup %2245 }
 0xfa6   :  { %1576 = vrot.lane.b32.xlu2 %v2246_v16, %s2427_s27 }
 0xfc0   :  { %v1280_v18 = vpop.permute.xlu0 %1279 }
 0xfc1   :  { %v2889_v19 = vadd.f32 %v1280_v18, %v1272_v17 }
 0xfc3   :  { %2247 = vtanh.f32 %v2889_v19 }
 0xfc7   :  { %v1423_v22 = vpop.permute.xlu1 %1422 }
 0xfc8   :  { %v2893_v23 = vadd.f32 %v1423_v22, %v1415_v45 }
 0xfc9   :  { %v2248_v40 = vpop.eup %2247 }
 0xfca   :  { %2249 = vtanh.f32 %v2893_v23  ;;  %1285 = vrot.lane.b32.xlu0 %v2248_v40, %s2427_s27 }
 0xfd0   :  { %v2250_v47 = vpop.eup %2249 }
 0xfd1   :  { %1428 = vrot.lane.b32.xlu1 %v2250_v47, %s2427_s27 }
0x1000   :  { %v1577_v24 = vpop.permute.xlu2 %1576 }
0x1001   :  { %v1579_v53 = vmul.f32 %v1577_v24, %v1560_v2 }
0x1003   :  { %1601 = vrot.lane.b32.xlu2 %v1579_v53, %s2431_s0 }
0x103c   :  { %v1286_v30 = vpop.permute.xlu0 %1285 }
0x103d   :  { %v1288_v38 = vmul.f32 %v1286_v30, %v1269_v59 }
0x103f   :  { %1433 = vrot.lane.b32.xlu0 %v1288_v38, %s2431_s0 }
0x1043   :  { %v1429_v36 = vpop.permute.xlu1 %1428 }
0x1044   :  { %v1431_v51 = vmul.f32 %v1429_v36, %v1412_v5 }
0x1046   :  { %1458 = vrot.lane.b32.xlu1 %v1431_v51, %s2431_s0 }
0x105d   :  { %v1602_v52 = vpop.permute.xlu2 %1601 }
0x10b1   :  { %v1434_v58 = vpop.permute.xlu0 %1433 }
0x10b2   :  { %2075 = vmatmul.msk.f32.vlgmr.msrb.gmra.mxu0 %vm91_vm1, %v1434_v58 }
0x10b3   :  { %1823 = vmatpush.msrb.mxu0 %v2772_v10 }
0x10b5   :  { %1824 = vmatpush.msrb.mxu0 %v2779_v12 }
0x10b7   :  { %1825 = vmatpush.msrb.mxu0 %v2786_v29 }
0x10b8   :  { %v1459_v21 = vpop.permute.xlu1 %1458 }
0x10b9   :  { %2076 = vmatmul.msk.f32.vlgmr.msrb.gmra.mxu1 %vm91_vm1, %v1459_v21  ;;  %2080 = vmatmul.msk.f32.vlgmr.msrb.gmra.mxu3 %vm91_vm1, %v1459_v21 }
0x10ba   :  { %2081 = vmatmul.msk.f32.vlgmr.msra.gmra.mxu0 %vm91_vm1, %v1602_v52  ;;  %1848 = vmatpush.msrb.mxu1 %v2763_v7 }
0x10bb   :  { %1826 = vmatpush.msrb.mxu0 %v2791_v46  ;;  %1936 = vmatpush.msrb.mxu3 %v2851_v34 }
0x10bc   :  { %1849 = vmatpush.msrb.mxu1 %v2767_v9 }
0x10bd   :  { %1937 = vmatpush.msrb.mxu3 %v2856_v4 }
0x10be   :  { %1850 = vmatpush.msrb.mxu1 %v2775_v11 }
0x10bf   :  { %1938 = vmatpush.msrb.mxu3 %v2861_v35 }
0x10c0   :  { %1851 = vmatpush.msrb.mxu1 %v2782_v13  ;;  %v1752_v13 = vld [vmem:[#allocation4 + $0xe] sm:$0x3] }
0x10c1   :  { %2086 = vmatmul.msk.f32.vlgmr.msra.gmra.mxu3 %vm91_vm1, %v1602_v52 }
0x10c2   :  { %1939 = vmatpush.msrb.mxu3 %v2867_v14 }
0x112f   :  { %v1454_v10 = vpop.f32.mrf.mxu0 }
0x1136   :  { %v1479_v7 = vpop.f32.mrf.mxu1 }
0x1137   :  { %v1480_v12 = vadd.f32 %v1479_v7, %v1454_v10  ;;  %v1622_v46 = vpop.f32.mrf.mxu0 }
0x1139   :  { %v1482_v29 = vadd.f32 %v2873_v20, %v1480_v12 }
0x113b   :  { %2251 = vtanh.f32 %v1482_v29  ;;  %v2077_v56 = vmul.f32 -1.442695, %v1482_v29 }
0x113c   :  { %v1597_v9 = vpop.f32.mrf.mxu3 }
0x113d   :  { %v1623_v34 = vadd.f32 %v1622_v46, %v1597_v9 }
0x113f   :  { %v1625_v4 = vadd.f32 %v2815_v25, %v1623_v34 }
0x1141   :  { %v2252_v11 = vpop.eup %2251  ;;  %2253 = vtanh.f32 %v1625_v4  ;;  %v2082_v1 = vmul.f32 -1.442695, %v1625_v4 }
0x1142   :  { %1505 = vrot.lane.b32.xlu0 %v2252_v11, %s2427_s27 }
0x1144   :  { %v1770_v35 = vpop.f32.mrf.mxu3 }
0x1145   :  { %v1773_v41 = vadd.f32 %v1770_v35, %v1752_v13 }
0x1147   :  { %v2254_v54 = vpop.eup %2253  ;;  %2255 = vtanh.f32 %v1773_v41  ;;  %v2087_v55 = vmul.f32 -1.442695, %v1773_v41 }
0x1148   :  { %1648 = vrot.lane.b32.xlu1 %v2254_v54, %s2427_s27 }
0x1149   :  { %2257 = vpow2.f32 %v2087_v55 }
0x114a   :  { %2259 = vpow2.f32 %v2077_v56 }
0x114d   :  { %v2256_v14 = vpop.eup %2255 }
0x114e   :  { %1796 = vrot.lane.b32.xlu2 %v2256_v14, %s2427_s27 }
0x114f   :  { %v2258_v27 = vpop.eup %2257 }
0x1150   :  { %v1777_v60 = vadd.f32 1.0, %v2258_v27  ;;  %v2260_v2 = vpop.eup %2259 }
0x1151   :  { %v1486_v31 = vadd.f32 1.0, %v2260_v2 }
0x1152   :  { %2261 = vrcp.f32 %v1777_v60  ;;  %v1789_v48 = vand.u32 2147483648, %v1777_v60  ;;  %vm1783_vm5 = vweird.f32 %v1777_v60  ;;  %v1787_v59 = vand.u32 2147483647, %v1777_v60 }
0x1153   :  { %2263 = vpow2.f32 %v2082_v1  ;;  %v1498_v16 = vand.u32 2147483648, %v1486_v31  ;;  %vm1492_vm9 = vweird.f32 %v1486_v31  ;;  %v1496_v17 = vand.u32 2147483647, %v1486_v31 }
0x1154   :  { %2265 = vrcp.f32 %v1486_v31  ;;  %v1790_v49 = vor.u32 1.1754944e-38, %v1789_v48  ;;  %vm1788_vm7 = vcmp.eq.f32.partialorder %v1787_v59, 8.507059e+37 }
0x1155   :  { %v1499_v22 = vor.u32 1.1754944e-38, %v1498_v16  ;;  %vm1497_vm11 = vcmp.eq.f32.partialorder %v1496_v17, 8.507059e+37 }
0x1158   :  { %v2262_v57 = vpop.eup %2261 }
0x1159   :  { %v1779_v3 = vmul.f32 %v2262_v57, %v1777_v60  ;;  %v2264_v32 = vpop.eup %2263  ;;  %vm1784_vm4 = vweird.f32 %v2262_v57 }
0x115a   :  { %v1629_v15 = vadd.f32 1.0, %v2264_v32  ;;  %v2266_v39 = vpop.eup %2265  ;;  %vm1785_vm6 = vmor %vm1783_vm5, %vm1784_vm4 }
0x115b   :  { %v1780_v33 = vsub.f32 1.0, %v1779_v3  ;;  %v1488_v28 = vmul.f32 %v2266_v39, %v1486_v31  ;;  %vm1493_vm8 = vweird.f32 %v2266_v39 }
0x115c   :  { %2267 = vrcp.f32 %v1629_v15  ;;  %vm1494_vm10 = vmor %vm1492_vm9, %vm1493_vm8  ;;  %v1641_v53 = vand.u32 2147483648, %v1629_v15  ;;  %vm1635_vm13 = vweird.f32 %v1629_v15  ;;  %v1639_v38 = vand.u32 2147483647, %v1629_v15 }
0x115d   :  { %v1781_v37 = vmul.f32 %v2262_v57, %v1780_v33  ;;  %v1489_v62 = vsub.f32 1.0, %v1488_v28 }
0x115e   :  { %v1642_v51 = vor.u32 1.1754944e-38, %v1641_v53  ;;  %vm1640_vm15 = vcmp.eq.f32.partialorder %v1639_v38, 8.507059e+37 }
0x115f   :  { %v1782_v42 = vadd.f32 %v2262_v57, %v1781_v37  ;;  %v1490_v6 = vmul.f32 %v2266_v39, %v1489_v62 }
0x1161   :  { %v1786_v61 = vsel %vm1785_vm6, %v2262_v57, %v1782_v42  ;;  %v1491_v44 = vadd.f32 %v2266_v39, %v1490_v6 }
0x1162   :  { %v2268_v50 = vpop.eup %2267  ;;  %v1791_v26 = vsel %vm1788_vm7, %v1790_v49, %v1786_v61 }
0x1163   :  { %v1631_v63 = vmul.f32 %v2268_v50, %v1629_v15  ;;  %v1495_v45 = vsel %vm1494_vm10, %v2266_v39, %v1491_v44  ;;  %vm1636_vm12 = vweird.f32 %v2268_v50  ;;  %v1794_v10 = vmul.f32 %v1791_v26, %v2884_v43 }
0x1164   :  { %v1500_v24 = vsel %vm1497_vm11, %v1499_v22, %v1495_v45  ;;  %vm1637_vm14 = vmor %vm1635_vm13, %vm1636_vm12 }
0x1165   :  { %v1632_v8 = vsub.f32 1.0, %v1631_v63  ;;  %v1503_v46 = vmul.f32 %v1500_v24, %v2889_v19 }
0x1167   :  { %v1633_v18 = vmul.f32 %v2268_v50, %v1632_v8 }
0x1169   :  { %v1634_v40 = vadd.f32 %v2268_v50, %v1633_v18 }
0x116b   :  { %v1638_v36 = vsel %vm1637_vm14, %v2268_v50, %v1634_v40 }
0x116c   :  { %v1643_v21 = vsel %vm1640_vm15, %v1642_v51, %v1638_v36 }
0x116d   :  { %v1646_v4 = vmul.f32 %v1643_v21, %v2893_v23 }
0x11a8   :  { %v1797_v0 = vpop.permute.xlu2 %1796 }
0x11a9   :  { %v1799_v5 = vmul.f32 %v1797_v0, %v1791_v26 }
0x11ab   :  { %1801 = vrot.lane.b32.xlu2 %v1799_v5, %s2427_s27 }
0x11b4   :  { %v1506_v47 = vpop.permute.xlu0 %1505 }
0x11b5   :  { %v1508_v30 = vmul.f32 %v1506_v47, %v1500_v24 }
0x11b7   :  { %1510 = vrot.lane.b32.xlu0 %v1508_v30, %s2427_s27 }
0x11ba   :  { %v1649_v58 = vpop.permute.xlu1 %1648 }
0x11bb   :  { %v1651_v52 = vmul.f32 %v1649_v58, %v1643_v21 }
0x11bd   :  { %1653 = vrot.lane.b32.xlu1 %v1651_v52, %s2427_s27 }
0x1205   :  { %v1802_v7 = vpop.permute.xlu2 %1801 }
0x1206   :  { %v2927_v12 = vadd.f32 %v1802_v7, %v1794_v10 }
0x1208   :  { %2269 = vtanh.f32 %v2927_v12 }
0x120e   :  { %v2270_v29 = vpop.eup %2269 }
0x120f   :  { %1807 = vrot.lane.b32.xlu2 %v2270_v29, %s2427_s27 }
0x1229   :  { %v1511_v9 = vpop.permute.xlu0 %1510 }
0x122a   :  { %v2932_v34 = vadd.f32 %v1511_v9, %v1503_v46 }
0x122c   :  { %2271 = vtanh.f32 %v2932_v34 }
0x122f   :  { %v1654_v11 = vpop.permute.xlu1 %1653 }
0x1230   :  { %v2936_v13 = vadd.f32 %v1654_v11, %v1646_v4 }
0x1232   :  { %v2272_v43 = vpop.eup %2271  ;;  %2273 = vtanh.f32 %v2936_v13 }
0x1233   :  { %1516 = vrot.lane.b32.xlu0 %v2272_v43, %s2427_s27 }
0x1238   :  { %v2274_v35 = vpop.eup %2273 }
0x1239   :  { %1659 = vrot.lane.b32.xlu1 %v2274_v35, %s2427_s27 }
0x1269   :  { %v1808_v41 = vpop.permute.xlu2 %1807 }
0x126a   :  { %v1810_v19 = vmul.f32 %v1808_v41, %v1791_v26 }
0x126c   :  { %1832 = vrot.lane.b32.xlu2 %v1810_v19, %s2431_s0 }
0x12a5   :  { %v1517_v54 = vpop.permute.xlu0 %1516 }
0x12a6   :  { %v1519_v14 = vmul.f32 %v1517_v54, %v1500_v24 }
0x12a8   :  { %1664 = vrot.lane.b32.xlu0 %v1519_v14, %s2431_s0 }
0x12ab   :  { %v1660_v23 = vpop.permute.xlu1 %1659 }
0x12ac   :  { %v1662_v55 = vmul.f32 %v1660_v23, %v1643_v21 }
0x12ae   :  { %1689 = vrot.lane.b32.xlu1 %v1662_v55, %s2431_s0 }
0x12c6   :  { %v1833_v27 = vpop.permute.xlu2 %1832 }
0x12c7   :  { %1984 = vst.msk [vmem:[#allocation2] sm:$0x3] %vm69_vm0, %v1833_v27 }
0x131a   :  { %v1665_v56 = vpop.permute.xlu0 %1664 }
0x131b   :  { %2083 = vmatmul.msk.f32.vlgmr.msra.gmra.mxu1 %vm91_vm1, %v1665_v56 }
0x1320   :  { %v1690_v60 = vpop.permute.xlu1 %1689 }
0x1321   :  { %2084 = vmatmul.msk.f32.vlgmr.msra.gmra.mxu2 %vm91_vm1, %v1690_v60  ;;  %2088 = vmatmul.msk.f32.vlgmr.msrb.gmra.mxu0 %vm91_vm1, %v1690_v60 }
0x1323   :  { %2089 = vmatmul.msk.f32.vlgmr.msrb.gmra.mxu1 %vm91_vm1, %v1833_v27 }
0x1398   :  { %v1685_v1 = vpop.f32.mrf.mxu1 }
0x139e   :  { %v1828_v2 = vpop.f32.mrf.mxu0 }
0x13a0   :  { %v1853_v57 = vpop.f32.mrf.mxu1 }
0x13a1   :  { %v1854_v31 = vadd.f32 %v1853_v57, %v1828_v2 }
0x13a3   :  { %v1856_v3 = vadd.f32 %v2815_v25, %v1854_v31 }
0x13a4   :  { %v1710_v32 = vpop.f32.mrf.mxu2 }
0x13a5   :  { %2275 = vtanh.f32 %v1856_v3  ;;  %v1711_v33 = vadd.f32 %v1710_v32, %v1685_v1  ;;  %v2090_v42 = vmul.f32 -1.442695, %v1856_v3 }
0x13a7   :  { %v1713_v15 = vadd.f32 %v2873_v20, %v1711_v33 }
0x13a9   :  { %2277 = vtanh.f32 %v1713_v15  ;;  %v2085_v28 = vmul.f32 -1.442695, %v1713_v15 }
0x13aa   :  { %2279 = vpow2.f32 %v2090_v42 }
0x13ab   :  { %v2276_v37 = vpop.eup %2275  ;;  %2281 = vpow2.f32 %v2085_v28 }
0x13ac   :  { %1879 = vrot.lane.b32.xlu1 %v2276_v37, %s2427_s27 }
0x13af   :  { %v2278_v39 = vpop.eup %2277 }
0x13b0   :  { %1736 = vrot.lane.b32.xlu0 %v2278_v39, %s2427_s27  ;;  %v2280_v48 = vpop.eup %2279 }
0x13b1   :  { %v1860_v59 = vadd.f32 1.0, %v2280_v48  ;;  %v2282_v50 = vpop.eup %2281 }
0x13b2   :  { %v1717_v25 = vadd.f32 1.0, %v2282_v50 }
0x13b3   :  { %2283 = vrcp.f32 %v1860_v59  ;;  %v1872_v44 = vand.u32 2147483648, %v1860_v59  ;;  %vm1866_vm3 = vweird.f32 %v1860_v59  ;;  %v1870_v16 = vand.u32 2147483647, %v1860_v59 }
0x13b4   :  { %2285 = vrcp.f32 %v1717_v25  ;;  %v1729_v22 = vand.u32 2147483648, %v1717_v25  ;;  %vm1723_vm7 = vweird.f32 %v1717_v25  ;;  %v1727_v40 = vand.u32 2147483647, %v1717_v25 }
0x13b5   :  { %v1873_v45 = vor.u32 1.1754944e-38, %v1872_v44  ;;  %vm1871_vm6 = vcmp.eq.f32.partialorder %v1870_v16, 8.507059e+37 }
0x13b6   :  { %v1730_v38 = vor.u32 1.1754944e-38, %v1729_v22  ;;  %vm1728_vm9 = vcmp.eq.f32.partialorder %v1727_v40, 8.507059e+37 }
0x13b9   :  { %v2284_v61 = vpop.eup %2283 }
0x13ba   :  { %v1862_v62 = vmul.f32 %v2284_v61, %v1860_v59  ;;  %v2286_v49 = vpop.eup %2285  ;;  %vm1867_vm2 = vweird.f32 %v2284_v61 }
0x13bb   :  { %v1719_v0 = vmul.f32 %v2286_v49, %v1717_v25  ;;  %vm1868_vm4 = vmor %vm1866_vm3, %vm1867_vm2  ;;  %vm1724_vm5 = vweird.f32 %v2286_v49 }
0x13bc   :  { %v1863_v63 = vsub.f32 1.0, %v1862_v62  ;;  %vm1725_vm8 = vmor %vm1723_vm7, %vm1724_vm5 }
0x13bd   :  { %v1720_v5 = vsub.f32 1.0, %v1719_v0 }
0x13be   :  { %v1864_v26 = vmul.f32 %v2284_v61, %v1863_v63 }
0x13bf   :  { %v1721_v8 = vmul.f32 %v2286_v49, %v1720_v5 }
0x13c0   :  { %v1865_v6 = vadd.f32 %v2284_v61, %v1864_v26 }
0x13c1   :  { %v1722_v18 = vadd.f32 %v2286_v49, %v1721_v8 }
0x13c2   :  { %v1869_v17 = vsel %vm1868_vm4, %v2284_v61, %v1865_v6 }
0x13c3   :  { %v1874_v24 = vsel %vm1871_vm6, %v1873_v45, %v1869_v17  ;;  %v1726_v30 = vsel %vm1725_vm8, %v2286_v49, %v1722_v18 }
0x13c4   :  { %v1731_v51 = vsel %vm1728_vm9, %v1730_v38, %v1726_v30  ;;  %v1877_v29 = vmul.f32 %v1874_v24, %v2936_v13 }
0x13c5   :  { %v1734_v21 = vmul.f32 %v1731_v51, %v2932_v34 }
0x141e   :  { %v1880_v47 = vpop.permute.xlu1 %1879 }
0x141f   :  { %v1882_v53 = vmul.f32 %v1880_v47, %v1874_v24 }
0x1421   :  { %1884 = vrot.lane.b32.xlu0 %v1882_v53, %s2427_s27 }
0x1422   :  { %v1737_v36 = vpop.permute.xlu0 %1736 }
0x1423   :  { %v1739_v58 = vmul.f32 %v1737_v36, %v1731_v51 }
0x1425   :  { %1741 = vrot.lane.b32.xlu2 %v1739_v58, %s2427_s27 }
0x147f   :  { %v1742_v52 = vpop.permute.xlu2 %1741 }
0x1480   :  { %v1744_v10 = vadd.f32 %v1742_v52, %v1734_v21 }
0x1482   :  { %2287 = vtanh.f32 %v1744_v10 }
0x1488   :  { %v2288_v7 = vpop.eup %2287 }
0x1489   :  { %1747 = vrot.lane.b32.xlu1 %v2288_v7, %s2427_s27 }
0x1493   :  { %v1885_v46 = vpop.permute.xlu0 %1884 }
0x1494   :  { %v1887_v9 = vadd.f32 %v1885_v46, %v1877_v29 }
0x1496   :  { %2289 = vtanh.f32 %v1887_v9 }
0x149c   :  { %v2290_v4 = vpop.eup %2289 }
0x149d   :  { %1890 = vrot.lane.b32.xlu2 %v2290_v4, %s2427_s27 }
0x14f7   :  { %v1891_v11 = vpop.permute.xlu2 %1890 }
0x14f8   :  { %v1893_v43 = vmul.f32 %v1891_v11, %v1874_v24 }
0x14fa   :  { %1920 = vrot.lane.b32.xlu1 %v1893_v43, %s2431_s0 }
0x14fb   :  { %v1748_v35 = vpop.permute.xlu1 %1747 }
0x14fc   :  { %v1750_v34 = vmul.f32 %v1748_v35, %v1731_v51 }
0x14fe   :  { %1895 = vrot.lane.b32.xlu0 %v1750_v34, %s2431_s0 }
0x156c   :  { %v1921_v41 = vpop.permute.xlu1 %1920 }
0x156d   :  { %1991 = vst.msk [vmem:[#allocation2 + $0x2] sm:$0x3] %vm69_vm0, %v1921_v41  ;;  %2092 = vmatmul.msk.f32.vlgmr.msrb.gmra.mxu3 %vm91_vm1, %v1921_v41 }
0x1570   :  { %v1896_v13 = vpop.permute.xlu0 %1895 }
0x1571   :  { %2091 = vmatmul.msk.f32.vlgmr.msrb.gmra.mxu2 %vm91_vm1, %v1896_v13 }
0x15f0   :  { %v1941_v19 = vpop.f32.mrf.mxu3 }
0x15f4   :  { %v1916_v54 = vpop.f32.mrf.mxu2 }
0x15f5   :  { %v1942_v14 = vadd.f32 %v1941_v19, %v1916_v54 }
0x15f7   :  { %v1944_v23 = vadd.f32 %v2873_v20, %v1942_v14 }
0x15f9   :  { %2291 = vtanh.f32 %v1944_v23  ;;  %v2093_v27 = vmul.f32 -1.442695, %v1944_v23 }
0x15fb   :  { %2293 = vpow2.f32 %v2093_v27 }
0x15ff   :  { %v2292_v55 = vpop.eup %2291 }
0x1600   :  { %1967 = vrot.lane.b32.xlu2 %v2292_v55, %s2427_s27 }
0x1601   :  { %v2294_v56 = vpop.eup %2293 }
0x1602   :  { %v1948_v60 = vadd.f32 1.0, %v2294_v56 }
0x1604   :  { %2295 = vrcp.f32 %v1948_v60  ;;  %v1960_v32 = vand.u32 2147483648, %v1948_v60  ;;  %vm1954_vm10 = vweird.f32 %v1948_v60  ;;  %v1958_v33 = vand.u32 2147483647, %v1948_v60 }
0x1606   :  { %v1961_v15 = vor.u32 1.1754944e-38, %v1960_v32  ;;  %vm1959_vm12 = vcmp.eq.f32.partialorder %v1958_v33, 8.507059e+37 }
0x160a   :  { %v2296_v1 = vpop.eup %2295 }
0x160b   :  { %v1950_v2 = vmul.f32 %v2296_v1, %v1948_v60  ;;  %vm1955_vm1 = vweird.f32 %v2296_v1 }
0x160c   :  { %vm1956_vm11 = vmor %vm1954_vm10, %vm1955_vm1 }
0x160d   :  { %v1951_v57 = vsub.f32 1.0, %v1950_v2 }
0x160f   :  { %v1952_v31 = vmul.f32 %v2296_v1, %v1951_v57 }
0x1611   :  { %v1953_v3 = vadd.f32 %v2296_v1, %v1952_v31 }
0x1613   :  { %v1957_v20 = vsel %vm1956_vm11, %v2296_v1, %v1953_v3 }
0x1614   :  { %v1962_v39 = vsel %vm1959_vm12, %v1961_v15, %v1957_v20 }
0x1615   :  { %v1965_v28 = vmul.f32 %v1962_v39, %v1744_v10 }
0x165a   :  { %v1968_v37 = vpop.permute.xlu2 %1967 }
0x165b   :  { %v1970_v42 = vmul.f32 %v1968_v37, %v1962_v39 }
0x165d   :  { %1972 = vrot.lane.b32.xlu0 %v1970_v42, %s2427_s27 }
0x1665   :  { %1986 = vrot.lane.b32.xlu0 %v2927_v12, %s2432_s3 }
0x16cf   :  { %v1973_v48 = vpop.permute.xlu0 %1972 }
0x16d0   :  { %v1975_v59 = vadd.f32 %v1973_v48, %v1965_v28 }
0x16d2   :  { %2297 = vtanh.f32 %v1975_v59 }
0x16d7   :  { %v1987_v50 = vpop.permute.xlu0 %1986 }
0x16d8   :  { %v2298_v25 = vpop.eup %2297  ;;  %1989 = vst.msk [vmem:[#allocation3] sm:$0x3] %vm69_vm0, %v1987_v50 }
0x16d9   :  { %1978 = vrot.lane.b32.xlu1 %v2298_v25, %s2427_s27 }
0x16e1   :  { %1993 = vrot.lane.b32.xlu1 %v1887_v9, %s2432_s3 }
0x174b   :  { %v1979_v61 = vpop.permute.xlu1 %1978 }
0x174c   :  { %v1981_v62 = vmul.f32 %v1979_v61, %v1962_v39 }
0x174e   :  { %1998 = vrot.lane.b32.xlu2 %v1981_v62, %s2431_s0 }
0x1753   :  { %v1994_v49 = vpop.permute.xlu1 %1993 }
0x1754   :  { %1996 = vst.msk [vmem:[#allocation3 + $0x2] sm:$0x3] %vm69_vm0, %v1994_v49 }
0x1756   :  { %2003 = vrot.lane.b32.xlu2 %v1975_v59, %s2432_s3 }
0x17a8   :  { %v1999_v12 = vpop.permute.xlu2 %1998 }
0x17a9   :  { %2001 = vst.msk [vmem:[#allocation2 + $0x4] sm:$0x3] %vm69_vm0, %v1999_v12 }
0x17aa   :  { %2010 = vst.msk [vmem:[#allocation10] sm:$0x3] %vm69_vm0, %v1999_v12 }
0x17ab   :  { %2021 = dma.vmem_to_hbm [thread:$0]  %s2017_s15, 32, %s2019_s18, [#allocation6]  }
0x17b0   :  { %v2004_v63 = vpop.permute.xlu2 %2003 }
0x17b1   :  { %2006 = vst.msk [vmem:[#allocation3 + $0x4] sm:$0x3] %vm69_vm0, %v2004_v63 }
0x17b2   :  { %2421 = dma.done.wait [#allocation6], 32  }
0x17b3   :  { %2422 = vsyncadd [#allocation6], 4294967264 }
0x17b4   :  { %2026 = vsyncpa [#allocation5], 1 }
0x17b5   :  { %2027 = vsyncpa [#allocation8], 1 }
0x17b6   :  { %2028 = vsyncpa [#allocation6], 1 }

</bundles_post_ra>
